<compile_context>
chip_gen: v5e
topology: v5e:2x2
jax: 0.10.0
libtpu: 0.0.40
codegen_flags: <defaults>
</compile_context>

<pallas_src>
import functools
import math

import jax
import jax.numpy as jnp
from jax import lax
from jax.experimental import pallas as pl
from jax.experimental.pallas import tpu as pltpu


# ----------------------------------------------------------------------------
# Fused Pallas kernel: all BiLSTM layers + classification head
# ----------------------------------------------------------------------------
def _bilstm_model_kernel(x_ref, lens_ref, *refs, hidden_dim, num_layers,
                         num_act):
    H = hidden_dim
    L = num_layers
    H2, H4, H8 = 2 * H, 4 * H, 8 * H

    w_refs = refs[:4 * L]                                     # w_ih, whh_f, whh_b, bias per layer
    gamma_ref, beta_ref, w1_ref, b1_ref, w2_ref, b2_ref = refs[4 * L:4 * L + 6]
    out_ref = refs[4 * L + 6]
    gx_scr = refs[4 * L + 7]                                  # (T, B, 8H) bf16
    act_bufs = refs[4 * L + 8:4 * L + 8 + num_act]            # (T, B, 2H) f32 each

    T = x_ref.shape[0]
    B = x_ref.shape[1]
    lens = lens_ref[...]                                      # (B, 1) int32

    unroll = True if T <= 32 else 8

    h_f = h_b = None
    for layer in range(L):
        w_ih = w_refs[4 * layer][...]                         # (Din, 8H) bf16 [fwd 4H | bwd 4H]
        whh_f = w_refs[4 * layer + 1][...]                    # (H, 4H)  bf16
        whh_b = w_refs[4 * layer + 2][...]                    # (H, 4H)  bf16
        bias = w_refs[4 * layer + 3][...]                     # (1, 8H)  f32
        in_ref = x_ref if layer == 0 else act_bufs[(layer - 1) % num_act]
        is_last = layer == L - 1
        out_act = None if is_last else act_bufs[layer % num_act]

        Din = in_ref.shape[2]

        # ---- hoisted input projection: ONE (T*B, Din) GEMM for all timesteps
        #      and both directions; bias folded in; cached in bf16 VMEM. ----
        x2d = in_ref[...].reshape(T * B, Din).astype(jnp.bfloat16)
        gx = jnp.dot(x2d, w_ih, preferred_element_type=jnp.float32) + bias
        gx_scr[...] = gx.astype(gx_scr.dtype).reshape(T, B, H8)

        # ---- fused fwd/bwd recurrence: step s handles fwd time s and bwd time
        #      T-1-s; two dense (B,H)@(H,4H) recurrent dots, no concatenates. ----
        def step(s, carry):
            h_f, c_f, h_b, c_b = carry                        # (B, H) f32 each
            tb = T - 1 - s
            m_f = s < lens                                    # (B, 1) bool
            m_b = tb < lens

            g_f = gx_scr[s, :, 0:H4].astype(jnp.float32) + jnp.dot(
                h_f.astype(jnp.bfloat16), whh_f,
                preferred_element_type=jnp.float32)
            g_b = gx_scr[tb, :, H4:H8].astype(jnp.float32) + jnp.dot(
                h_b.astype(jnp.bfloat16), whh_b,
                preferred_element_type=jnp.float32)

            # PyTorch gate order within each 4H block: i, f, g, o
            i_f = jax.nn.sigmoid(g_f[:, 0 * H:1 * H])
            f_f = jax.nn.sigmoid(g_f[:, 1 * H:2 * H])
            gg_f = jnp.tanh(g_f[:, 2 * H:3 * H])
            o_f = jax.nn.sigmoid(g_f[:, 3 * H:4 * H])
            i_b = jax.nn.sigmoid(g_b[:, 0 * H:1 * H])
            f_b = jax.nn.sigmoid(g_b[:, 1 * H:2 * H])
            gg_b = jnp.tanh(g_b[:, 2 * H:3 * H])
            o_b = jax.nn.sigmoid(g_b[:, 3 * H:4 * H])

            c_f_new = f_f * c_f + i_f * gg_f
            h_f_new = o_f * jnp.tanh(c_f_new)
            c_b_new = f_b * c_b + i_b * gg_b
            h_b_new = o_b * jnp.tanh(c_b_new)

            if out_act is not None:
                # Next-layer input, concatenated (T, B, 2H) layout; padded -> 0.
                out_act[s, :, 0:H] = jnp.where(m_f, h_f_new, 0.0)
                out_act[tb, :, H:H2] = jnp.where(m_b, h_b_new, 0.0)

            h_f = jnp.where(m_f, h_f_new, h_f)                # freeze past length
            c_f = jnp.where(m_f, c_f_new, c_f)
            h_b = jnp.where(m_b, h_b_new, h_b)
            c_b = jnp.where(m_b, c_b_new, c_b)
            return h_f, c_f, h_b, c_b

        z = jnp.zeros((B, H), jnp.float32)
        h_f, c_f, h_b, c_b = lax.fori_loop(0, T, step, (z, z, z, z),
                                           unroll=unroll)

    # ---- classification head fused as an epilogue:
    #      LayerNorm(cat(h_fwd_fin, h_bwd_fin)) -> Linear -> ReLU -> Linear ----
    hcat = jnp.concatenate([h_f, h_b], axis=-1)               # (B, 2H) f32
    mean = jnp.mean(hcat, axis=-1, keepdims=True)
    var = jnp.mean(jnp.square(hcat - mean), axis=-1, keepdims=True)
    hn = (hcat - mean) * lax.rsqrt(var + 1e-5)
    hn = hn * gamma_ref[...] + beta_ref[...]
    hid = jnp.dot(hn, w1_ref[...], preferred_element_type=jnp.float32) + b1_ref[...]
    hid = jnp.maximum(hid, 0.0)
    out_ref[...] = (jnp.dot(hid, w2_ref[...], preferred_element_type=jnp.float32)
                    + b2_ref[...])


# ----------------------------------------------------------------------------
# Parameter init (PyTorch-equivalent, pre-transposed) and kernel packing
# ----------------------------------------------------------------------------
def init_params(key, vocab, hidden_dim, num_layers, num_classes, padding_id):
    H = hidden_dim
    k_emb, k_lstm, k_head = jax.random.split(key, 3)

    emb = jax.random.normal(k_emb, (vocab, H), jnp.float32)
    emb = emb.at[padding_id].set(0.0)              # nn.Embedding padding_idx row

    bound = 1.0 / (H ** 0.5)

    def u(kx, shape, b):
        return jax.random.uniform(kx, shape, jnp.float32, minval=-b, maxval=b)

    lstm_layers = []
    lkeys = jax.random.split(k_lstm, num_layers)
    for layer in range(num_layers):
        din = H if layer == 0 else 2 * H
        kk = jax.random.split(lkeys[layer], 8)
        # stored transposed vs. PyTorch: (Din, 4H) / (H, 4H); bias = b_ih + b_hh
        wih_f = u(kk[0], (din, 4 * H), bound)
        whh_f = u(kk[1], (H, 4 * H), bound)
        b_f = u(kk[2], (1, 4 * H), bound) + u(kk[3], (1, 4 * H), bound)
        wih_b = u(kk[4], (din, 4 * H), bound)
        whh_b = u(kk[5], (H, 4 * H), bound)
        b_b = u(kk[6], (1, 4 * H), bound) + u(kk[7], (1, 4 * H), bound)
        lstm_layers.append((wih_f, whh_f, b_f, wih_b, whh_b, b_b))

    hk = jax.random.split(k_head, 4)
    gamma = jnp.ones((1, 2 * H), jnp.float32)
    beta = jnp.zeros((1, 2 * H), jnp.float32)
    b1_bound = 1.0 / ((2 * H) ** 0.5)
    w1 = u(hk[0], (2 * H, H), b1_bound)            # hidden_layer (transposed)
    b1 = u(hk[1], (1, H), b1_bound)
    b2_bound = 1.0 / (H ** 0.5)
    w2 = u(hk[2], (H, num_classes), b2_bound)      # projection (transposed)
    b2 = u(hk[3], (1, num_classes), b2_bound)
    head_params = (gamma, beta, w1, b1, w2, b2)

    return {"embedding": emb, "lstm_layers": lstm_layers, "head": head_params}


def prepare_params(params):
    """Pack per-direction weights into the fused kernel operand layout.

    Per layer:
      w_ih  (Din, 8H) bf16 = [W_ih_fwd | W_ih_bwd]   (matmul operand)
      whh_f (H, 4H)   bf16,  whh_b (H, 4H) bf16      (dense per-direction dots)
      bias  (1, 8H)   f32  = [b_fwd | b_bwd]         (added after f32-acc GEMM)
    """
    fused = []
    for (wih_f, whh_f, b_f, wih_b, whh_b, b_b) in params["lstm_layers"]:
        w_ih = jnp.concatenate([wih_f, wih_b], axis=1).astype(jnp.bfloat16)
        bias = jnp.concatenate([b_f, b_b], axis=1)            # stays f32
        fused.append((w_ih,
                      whh_f.astype(jnp.bfloat16),
                      whh_b.astype(jnp.bfloat16),
                      bias))
    return {"embedding": params["embedding"], "lstm": fused,
            "head": params["head"]}


# ----------------------------------------------------------------------------
# Full forward pass (mirrors BiLSTMModel.forward)
# ----------------------------------------------------------------------------
def _full_spec(arr):
    nd = arr.ndim
    return pl.BlockSpec(arr.shape, lambda b, _nd=nd: (0,) * _nd)


def bilstm_model_forward(sequence_lengths, input_ids, fused_params, *,
                         hidden_dim, num_classes, batch_tile=8):
    # embedding lookup (gather) -- plain-JAX glue
    embeds = fused_params["embedding"][input_ids]             # (B, T, H) f32
    x = jnp.transpose(embeds, (1, 0, 2))                      # time-major (T, B, H)
    lens = sequence_lengths.astype(jnp.int32)[:, None]        # (B, 1)

    T, B, H = x.shape
    BT = batch_tile
    B_pad = ((B + BT - 1) // BT) * BT                         # sublane-dense batch
    if B_pad != B:
        x = jnp.pad(x, ((0, 0), (0, B_pad - B), (0, 0)))
        lens = jnp.pad(lens, ((0, B_pad - B), (0, 0)))        # pad rows: length 0

    layer_ws = fused_params["lstm"]
    L = len(layer_ws)
    flat_ws = [w for quad in layer_ws for w in quad]
    head_ws = list(fused_params["head"])
    num_act = min(max(L - 1, 0), 2)                           # ping-pong only if needed

    in_specs = (
        [pl.BlockSpec((T, BT, H), lambda b: (0, b, 0)),
         pl.BlockSpec((BT, 1), lambda b: (b, 0))]
        + [_full_spec(w) for w in flat_ws]
        + [_full_spec(w) for w in head_ws]
    )
    out_spec = pl.BlockSpec((BT, num_classes), lambda b: (b, 0))
    scratch = ([pltpu.VMEM((T, BT, 8 * H), jnp.bfloat16)]     # hoisted gate inputs
               + [pltpu.VMEM((T, BT, 2 * H), jnp.float32)] * num_act)

    # --- explicit VMEM budget (computed, not hardcoded) ---
    def nbytes(a):
        return math.prod(a.shape) * jnp.dtype(a.dtype).itemsize

    block_bytes = (T * BT * H * 4) + (BT * 4) + (BT * num_classes * 4)
    weight_bytes = sum(nbytes(w) for w in flat_ws) + sum(nbytes(w) for w in head_ws)
    scratch_bytes = (T * BT * 8 * H * 2) + num_act * (T * BT * 2 * H * 4)
    needed = 2 * block_bytes + 2 * weight_bytes + scratch_bytes
    vmem_limit = int(min(max(2 * needed + (4 << 20), 32 << 20), 100 << 20))

    kern = functools.partial(_bilstm_model_kernel, hidden_dim=H, num_layers=L,
                             num_act=num_act)

    out = pl.pallas_call(
        kern,
        out_shape=jax.ShapeDtypeStruct((B_pad, num_classes), jnp.float32),
        grid_spec=pltpu.PrefetchScalarGridSpec(
            num_scalar_prefetch=0,
            grid=(B_pad // BT,),                              # batch tiles -> cores
            in_specs=in_specs,
            out_specs=out_spec,
            scratch_shapes=scratch),
        compiler_params=pltpu.CompilerParams(
            dimension_semantics=("parallel",),
            vmem_limit_bytes=vmem_limit),
    )(x, lens, *flat_ws, *head_ws)
    return out[:B]


if __name__ == "__main__":
    # small, forward-consistent shapes
    VOCAB = 50
    HIDDEN = 32
    LAYERS = 2
    NUM_CLASSES = 4
    PADDING_ID = 0
    B, T = 2, 8

    key = jax.random.PRNGKey(0)
    k_params, k_ids = jax.random.split(key)
    params = init_params(k_params, VOCAB, HIDDEN, LAYERS, NUM_CLASSES,
                         PADDING_ID)
    fused_params = prepare_params(params)

    sequence_lengths = jnp.array([8, 5], dtype=jnp.int32)
    input_ids = jax.random.randint(k_ids, (B, T), 1, VOCAB, dtype=jnp.int32)
    # zero out padded positions with padding_id, like a padded batch
    pos = jnp.arange(T)[None, :]
    input_ids = jnp.where(pos < sequence_lengths[:, None], input_ids,
                          PADDING_ID)

    fwd = jax.jit(functools.partial(bilstm_model_forward,
                                    hidden_dim=HIDDEN,
                                    num_classes=NUM_CLASSES))
    logits = fwd(sequence_lengths, input_ids, fused_params)
    logits = jax.block_until_ready(logits)

    assert logits.shape == (B, NUM_CLASSES)
    assert bool(jnp.all(jnp.isfinite(logits)))
    print("KERNEL_OK")
</pallas_src>

<mosaic_0001>
module attributes {stable_mosaic.version = 11 : i64} {
  func.func @_bilstm_model_kernel(%arg0: i32, %arg1: memref<8x8x32xf32, #tpu.memory_space<vmem>>, %arg2: memref<8x1xi32, #tpu.memory_space<vmem>>, %arg3: memref<32x256xbf16, #tpu.memory_space<vmem>>, %arg4: memref<32x128xbf16, #tpu.memory_space<vmem>>, %arg5: memref<32x128xbf16, #tpu.memory_space<vmem>>, %arg6: memref<1x256xf32, #tpu.memory_space<vmem>>, %arg7: memref<64x256xbf16, #tpu.memory_space<vmem>>, %arg8: memref<32x128xbf16, #tpu.memory_space<vmem>>, %arg9: memref<32x128xbf16, #tpu.memory_space<vmem>>, %arg10: memref<1x256xf32, #tpu.memory_space<vmem>>, %arg11: memref<1x64xf32, #tpu.memory_space<vmem>>, %arg12: memref<1x64xf32, #tpu.memory_space<vmem>>, %arg13: memref<64x32xf32, #tpu.memory_space<vmem>>, %arg14: memref<1x32xf32, #tpu.memory_space<vmem>>, %arg15: memref<32x4xf32, #tpu.memory_space<vmem>>, %arg16: memref<1x4xf32, #tpu.memory_space<vmem>>, %arg17: memref<8x4xf32, #tpu.memory_space<vmem>>, %arg18: memref<8x8x256xbf16, #tpu.memory_space<vmem>>, %arg19: memref<8x8x64xf32, #tpu.memory_space<vmem>>) attributes {dimension_semantics = [#tpu.dimension_semantics<parallel>], iteration_bounds = array<i64: 1>, scalar_prefetch = 0 : i64, scratch_operands = 2 : i64, tpu.core_type = #tpu.core_type<tc>, window_params = [{transform_indices = @transform_0, window_bounds = array<i64: 8, 8, 32>}, {transform_indices = @transform_1, window_bounds = array<i64: 8, 1>}, {pipeline_mode = #tpu.pipeline_mode<synchronous>, transform_indices = @transform_2, window_bounds = array<i64: 32, 256>}, {pipeline_mode = #tpu.pipeline_mode<synchronous>, transform_indices = @transform_3, window_bounds = array<i64: 32, 128>}, {pipeline_mode = #tpu.pipeline_mode<synchronous>, transform_indices = @transform_4, window_bounds = array<i64: 32, 128>}, {pipeline_mode = #tpu.pipeline_mode<synchronous>, transform_indices = @transform_5, window_bounds = array<i64: 1, 256>}, {pipeline_mode = #tpu.pipeline_mode<synchronous>, transform_indices = @transform_6, window_bounds = array<i64: 64, 256>}, {pipeline_mode = #tpu.pipeline_mode<synchronous>, transform_indices = @transform_7, window_bounds = array<i64: 32, 128>}, {pipeline_mode = #tpu.pipeline_mode<synchronous>, transform_indices = @transform_8, window_bounds = array<i64: 32, 128>}, {pipeline_mode = #tpu.pipeline_mode<synchronous>, transform_indices = @transform_9, window_bounds = array<i64: 1, 256>}, {pipeline_mode = #tpu.pipeline_mode<synchronous>, transform_indices = @transform_10, window_bounds = array<i64: 1, 64>}, {pipeline_mode = #tpu.pipeline_mode<synchronous>, transform_indices = @transform_11, window_bounds = array<i64: 1, 64>}, {pipeline_mode = #tpu.pipeline_mode<synchronous>, transform_indices = @transform_12, window_bounds = array<i64: 64, 32>}, {pipeline_mode = #tpu.pipeline_mode<synchronous>, transform_indices = @transform_13, window_bounds = array<i64: 1, 32>}, {pipeline_mode = #tpu.pipeline_mode<synchronous>, transform_indices = @transform_14, window_bounds = array<i64: 32, 4>}, {pipeline_mode = #tpu.pipeline_mode<synchronous>, transform_indices = @transform_15, window_bounds = array<i64: 1, 4>}, {transform_indices = @transform_16, window_bounds = array<i64: 8, 4>}]} {
    %c0 = arith.constant 0 : index
    %c0_0 = arith.constant 0 : index
    %0 = vector.load %arg2[%c0, %c0_0] : memref<8x1xi32, #tpu.memory_space<vmem>>, vector<8x1xi32>
    %c0_1 = arith.constant 0 : index
    %c0_2 = arith.constant 0 : index
    %1 = vector.load %arg3[%c0_1, %c0_2] : memref<32x256xbf16, #tpu.memory_space<vmem>>, vector<32x256xbf16>
    %c0_3 = arith.constant 0 : index
    %c0_4 = arith.constant 0 : index
    %2 = vector.load %arg4[%c0_3, %c0_4] : memref<32x128xbf16, #tpu.memory_space<vmem>>, vector<32x128xbf16>
    %c0_5 = arith.constant 0 : index
    %c0_6 = arith.constant 0 : index
    %3 = vector.load %arg5[%c0_5, %c0_6] : memref<32x128xbf16, #tpu.memory_space<vmem>>, vector<32x128xbf16>
    %c0_7 = arith.constant 0 : index
    %c0_8 = arith.constant 0 : index
    %4 = vector.load %arg6[%c0_7, %c0_8] : memref<1x256xf32, #tpu.memory_space<vmem>>, vector<1x256xf32>
    %c0_9 = arith.constant 0 : index
    %c0_10 = arith.constant 0 : index
    %c0_11 = arith.constant 0 : index
    %5 = vector.load %arg1[%c0_9, %c0_10, %c0_11] : memref<8x8x32xf32, #tpu.memory_space<vmem>>, vector<8x8x32xf32>
    %6 = vector.shape_cast %5 : vector<8x8x32xf32> to vector<64x32xf32>
    %7 = arith.truncf %6 : vector<64x32xf32> to vector<64x32xbf16>
    %cst = arith.constant dense<0.000000e+00> : vector<64x256xf32>
    %8 = tpu.matmul %7, %1, %cst {dimension_numbers = #tpu.dot_dimension_numbers<[1], [0], [0], [1], [0, 0, 1, 1], [], []>} : vector<64x32xbf16>, vector<32x256xbf16>, vector<64x256xf32> -> vector<64x256xf32>
    %9 = vector.broadcast %4 : vector<1x256xf32> to vector<64x256xf32>
    %10 = arith.addf %8, %9 : vector<64x256xf32>
    %11 = arith.truncf %10 : vector<64x256xf32> to vector<64x256xbf16>
    %12 = vector.shape_cast %11 : vector<64x256xbf16> to vector<8x8x256xbf16>
    %c0_12 = arith.constant 0 : index
    %c0_13 = arith.constant 0 : index
    %c0_14 = arith.constant 0 : index
    %13 = vector.load %arg18[%c0_12, %c0_13, %c0_14] : memref<8x8x256xbf16, #tpu.memory_space<vmem>>, vector<8x8x256xbf16>
    tpu.vector_store %arg18[%c0_12, %c0_13, %c0_14], %12 {strides = array<i32>} : memref<8x8x256xbf16, #tpu.memory_space<vmem>>, vector<8x8x256xbf16>,
    %cst_15 = arith.constant 0.000000e+00 : f32
    %14 = vector.broadcast %cst_15 : f32 to vector<8x32xf32>
    %c0_i32 = arith.constant 0 : i32
    %c7_i32 = arith.constant 7 : i32
    %15 = arith.subi %c7_i32, %c0_i32 : i32
    %16 = vector.broadcast %c0_i32 : i32 to vector<8x1xi32>
    %17 = arith.cmpi slt, %16, %0 : vector<8x1xi32>
    %18 = vector.broadcast %15 : i32 to vector<8x1xi32>
    %19 = arith.cmpi slt, %18, %0 : vector<8x1xi32>
    %20 = arith.index_cast %c0_i32 : i32 to index
    %c0_16 = arith.constant 0 : index
    %c0_17 = arith.constant 0 : index
    %21 = vector.load %arg18[%20, %c0_16, %c0_17] : memref<8x8x256xbf16, #tpu.memory_space<vmem>>, vector<1x8x128xbf16>
    %22 = vector.shape_cast %21 : vector<1x8x128xbf16> to vector<8x128xbf16>
    %23 = arith.extf %22 : vector<8x128xbf16> to vector<8x128xf32>
    %24 = arith.truncf %14 : vector<8x32xf32> to vector<8x32xbf16>
    %cst_18 = arith.constant dense<0.000000e+00> : vector<8x128xf32>
    %25 = tpu.matmul %24, %2, %cst_18 {dimension_numbers = #tpu.dot_dimension_numbers<[1], [0], [0], [1], [0, 0, 1, 1], [], []>} : vector<8x32xbf16>, vector<32x128xbf16>, vector<8x128xf32> -> vector<8x128xf32>
    %26 = arith.addf %23, %25 : vector<8x128xf32>
    %27 = arith.index_cast %15 : i32 to index
    %c0_19 = arith.constant 0 : index
    %c128 = arith.constant 128 : index
    %28 = vector.load %arg18[%27, %c0_19, %c128] : memref<8x8x256xbf16, #tpu.memory_space<vmem>>, vector<1x8x128xbf16>
    %29 = vector.shape_cast %28 : vector<1x8x128xbf16> to vector<8x128xbf16>
    %30 = arith.extf %29 : vector<8x128xbf16> to vector<8x128xf32>
    %31 = arith.truncf %14 : vector<8x32xf32> to vector<8x32xbf16>
    %cst_20 = arith.constant dense<0.000000e+00> : vector<8x128xf32>
    %32 = tpu.matmul %31, %3, %cst_20 {dimension_numbers = #tpu.dot_dimension_numbers<[1], [0], [0], [1], [0, 0, 1, 1], [], []>} : vector<8x32xbf16>, vector<32x128xbf16>, vector<8x128xf32> -> vector<8x128xf32>
    %33 = arith.addf %30, %32 : vector<8x128xf32>
    %34 = vector.extract_strided_slice %26 {offsets = [0, 0], sizes = [8, 32], strides = [1, 1]} : vector<8x128xf32> to vector<8x32xf32>
    %35 = arith.negf %34 : vector<8x32xf32>
    %36 = math.exp %35 : vector<8x32xf32>
    %cst_21 = arith.constant 1.000000e+00 : f32
    %37 = vector.broadcast %cst_21 : f32 to vector<8x32xf32>
    %38 = arith.addf %37, %36 : vector<8x32xf32>
    %39 = arith.divf %37, %38 : vector<8x32xf32>
    %40 = vector.extract_strided_slice %26 {offsets = [0, 32], sizes = [8, 32], strides = [1, 1]} : vector<8x128xf32> to vector<8x32xf32>
    %41 = arith.negf %40 : vector<8x32xf32>
    %42 = math.exp %41 : vector<8x32xf32>
    %cst_22 = arith.constant 1.000000e+00 : f32
    %43 = vector.broadcast %cst_22 : f32 to vector<8x32xf32>
    %44 = arith.addf %43, %42 : vector<8x32xf32>
    %45 = arith.divf %43, %44 : vector<8x32xf32>
    %46 = vector.extract_strided_slice %26 {offsets = [0, 64], sizes = [8, 32], strides = [1, 1]} : vector<8x128xf32> to vector<8x32xf32>
    %47 = math.tanh %46 : vector<8x32xf32>
    %48 = vector.extract_strided_slice %26 {offsets = [0, 96], sizes = [8, 32], strides = [1, 1]} : vector<8x128xf32> to vector<8x32xf32>
    %49 = arith.negf %48 : vector<8x32xf32>
    %50 = math.exp %49 : vector<8x32xf32>
    %cst_23 = arith.constant 1.000000e+00 : f32
    %51 = vector.broadcast %cst_23 : f32 to vector<8x32xf32>
    %52 = arith.addf %51, %50 : vector<8x32xf32>
    %53 = arith.divf %51, %52 : vector<8x32xf32>
    %54 = vector.extract_strided_slice %33 {offsets = [0, 0], sizes = [8, 32], strides = [1, 1]} : vector<8x128xf32> to vector<8x32xf32>
    %55 = arith.negf %54 : vector<8x32xf32>
    %56 = math.exp %55 : vector<8x32xf32>
    %cst_24 = arith.constant 1.000000e+00 : f32
    %57 = vector.broadcast %cst_24 : f32 to vector<8x32xf32>
    %58 = arith.addf %57, %56 : vector<8x32xf32>
    %59 = arith.divf %57, %58 : vector<8x32xf32>
    %60 = vector.extract_strided_slice %33 {offsets = [0, 32], sizes = [8, 32], strides = [1, 1]} : vector<8x128xf32> to vector<8x32xf32>
    %61 = arith.negf %60 : vector<8x32xf32>
    %62 = math.exp %61 : vector<8x32xf32>
    %cst_25 = arith.constant 1.000000e+00 : f32
    %63 = vector.broadcast %cst_25 : f32 to vector<8x32xf32>
    %64 = arith.addf %63, %62 : vector<8x32xf32>
    %65 = arith.divf %63, %64 : vector<8x32xf32>
    %66 = vector.extract_strided_slice %33 {offsets = [0, 64], sizes = [8, 32], strides = [1, 1]} : vector<8x128xf32> to vector<8x32xf32>
    %67 = math.tanh %66 : vector<8x32xf32>
    %68 = vector.extract_strided_slice %33 {offsets = [0, 96], sizes = [8, 32], strides = [1, 1]} : vector<8x128xf32> to vector<8x32xf32>
    %69 = arith.negf %68 : vector<8x32xf32>
    %70 = math.exp %69 : vector<8x32xf32>
    %cst_26 = arith.constant 1.000000e+00 : f32
    %71 = vector.broadcast %cst_26 : f32 to vector<8x32xf32>
    %72 = arith.addf %71, %70 : vector<8x32xf32>
    %73 = arith.divf %71, %72 : vector<8x32xf32>
    %74 = arith.mulf %45, %14 : vector<8x32xf32>
    %75 = arith.mulf %39, %47 : vector<8x32xf32>
    %76 = arith.addf %74, %75 : vector<8x32xf32>
    %77 = math.tanh %76 : vector<8x32xf32>
    %78 = arith.mulf %53, %77 : vector<8x32xf32>
    %79 = arith.mulf %65, %14 : vector<8x32xf32>
    %80 = arith.mulf %59, %67 : vector<8x32xf32>
    %81 = arith.addf %79, %80 : vector<8x32xf32>
    %82 = math.tanh %81 : vector<8x32xf32>
    %83 = arith.mulf %73, %82 : vector<8x32xf32>
    %cst_27 = arith.constant 0.000000e+00 : f32
    %84 = vector.shape_cast %17 : vector<8x1xi1> to vector<8x1xi1>
    %85 = vector.broadcast %84 : vector<8x1xi1> to vector<8x32xi1>
    %86 = vector.broadcast %cst_27 : f32 to vector<8x32xf32>
    %87 = arith.select %85, %78, %86 : vector<8x32xi1>, vector<8x32xf32>
    %88 = arith.index_cast %c0_i32 : i32 to index
    %c0_28 = arith.constant 0 : index
    %c0_29 = arith.constant 0 : index
    %89 = vector.load %arg19[%88, %c0_28, %c0_29] : memref<8x8x64xf32, #tpu.memory_space<vmem>>, vector<1x8x32xf32>
    %90 = vector.shape_cast %89 : vector<1x8x32xf32> to vector<8x32xf32>
    %91 = vector.shape_cast %87 : vector<8x32xf32> to vector<1x8x32xf32>
    tpu.vector_store %arg19[%88, %c0_28, %c0_29], %91 {strides = array<i32>} : memref<8x8x64xf32, #tpu.memory_space<vmem>>, vector<1x8x32xf32>,
    %cst_30 = arith.constant 0.000000e+00 : f32
    %92 = vector.shape_cast %19 : vector<8x1xi1> to vector<8x1xi1>
    %93 = vector.broadcast %92 : vector<8x1xi1> to vector<8x32xi1>
    %94 = vector.broadcast %cst_30 : f32 to vector<8x32xf32>
    %95 = arith.select %93, %83, %94 : vector<8x32xi1>, vector<8x32xf32>
    %96 = arith.index_cast %15 : i32 to index
    %c0_31 = arith.constant 0 : index
    %c32 = arith.constant 32 : index
    %97 = vector.load %arg19[%96, %c0_31, %c32] : memref<8x8x64xf32, #tpu.memory_space<vmem>>, vector<1x8x32xf32>
    %98 = vector.shape_cast %97 : vector<1x8x32xf32> to vector<8x32xf32>
    %99 = vector.shape_cast %95 : vector<8x32xf32> to vector<1x8x32xf32>
    tpu.vector_store %arg19[%96, %c0_31, %c32], %99 {strides = array<i32>} : memref<8x8x64xf32, #tpu.memory_space<vmem>>, vector<1x8x32xf32>,
    %100 = vector.shape_cast %17 : vector<8x1xi1> to vector<8x1xi1>
    %101 = vector.broadcast %100 : vector<8x1xi1> to vector<8x32xi1>
    %102 = arith.select %101, %78, %14 : vector<8x32xi1>, vector<8x32xf32>
    %103 = vector.shape_cast %17 : vector<8x1xi1> to vector<8x1xi1>
    %104 = vector.broadcast %103 : vector<8x1xi1> to vector<8x32xi1>
    %105 = arith.select %104, %76, %14 : vector<8x32xi1>, vector<8x32xf32>
    %106 = vector.shape_cast %19 : vector<8x1xi1> to vector<8x1xi1>
    %107 = vector.broadcast %106 : vector<8x1xi1> to vector<8x32xi1>
    %108 = arith.select %107, %83, %14 : vector<8x32xi1>, vector<8x32xf32>
    %109 = vector.shape_cast %19 : vector<8x1xi1> to vector<8x1xi1>
    %110 = vector.broadcast %109 : vector<8x1xi1> to vector<8x32xi1>
    %111 = arith.select %110, %81, %14 : vector<8x32xi1>, vector<8x32xf32>
    %c1_i32 = arith.constant 1 : i32
    %c7_i32_32 = arith.constant 7 : i32
    %112 = arith.subi %c7_i32_32, %c1_i32 : i32
    %113 = vector.broadcast %c1_i32 : i32 to vector<8x1xi32>
    %114 = arith.cmpi slt, %113, %0 : vector<8x1xi32>
    %115 = vector.broadcast %112 : i32 to vector<8x1xi32>
    %116 = arith.cmpi slt, %115, %0 : vector<8x1xi32>
    %117 = arith.index_cast %c1_i32 : i32 to index
    %c0_33 = arith.constant 0 : index
    %c0_34 = arith.constant 0 : index
    %118 = vector.load %arg18[%117, %c0_33, %c0_34] : memref<8x8x256xbf16, #tpu.memory_space<vmem>>, vector<1x8x128xbf16>
    %119 = vector.shape_cast %118 : vector<1x8x128xbf16> to vector<8x128xbf16>
    %120 = arith.extf %119 : vector<8x128xbf16> to vector<8x128xf32>
    %121 = arith.truncf %102 : vector<8x32xf32> to vector<8x32xbf16>
    %cst_35 = arith.constant dense<0.000000e+00> : vector<8x128xf32>
    %122 = tpu.matmul %121, %2, %cst_35 {dimension_numbers = #tpu.dot_dimension_numbers<[1], [0], [0], [1], [0, 0, 1, 1], [], []>} : vector<8x32xbf16>, vector<32x128xbf16>, vector<8x128xf32> -> vector<8x128xf32>
    %123 = arith.addf %120, %122 : vector<8x128xf32>
    %124 = arith.index_cast %112 : i32 to index
    %c0_36 = arith.constant 0 : index
    %c128_37 = arith.constant 128 : index
    %125 = vector.load %arg18[%124, %c0_36, %c128_37] : memref<8x8x256xbf16, #tpu.memory_space<vmem>>, vector<1x8x128xbf16>
    %126 = vector.shape_cast %125 : vector<1x8x128xbf16> to vector<8x128xbf16>
    %127 = arith.extf %126 : vector<8x128xbf16> to vector<8x128xf32>
    %128 = arith.truncf %108 : vector<8x32xf32> to vector<8x32xbf16>
    %cst_38 = arith.constant dense<0.000000e+00> : vector<8x128xf32>
    %129 = tpu.matmul %128, %3, %cst_38 {dimension_numbers = #tpu.dot_dimension_numbers<[1], [0], [0], [1], [0, 0, 1, 1], [], []>} : vector<8x32xbf16>, vector<32x128xbf16>, vector<8x128xf32> -> vector<8x128xf32>
    %130 = arith.addf %127, %129 : vector<8x128xf32>
    %131 = vector.extract_strided_slice %123 {offsets = [0, 0], sizes = [8, 32], strides = [1, 1]} : vector<8x128xf32> to vector<8x32xf32>
    %132 = arith.negf %131 : vector<8x32xf32>
    %133 = math.exp %132 : vector<8x32xf32>
    %cst_39 = arith.constant 1.000000e+00 : f32
    %134 = vector.broadcast %cst_39 : f32 to vector<8x32xf32>
    %135 = arith.addf %134, %133 : vector<8x32xf32>
    %136 = arith.divf %134, %135 : vector<8x32xf32>
    %137 = vector.extract_strided_slice %123 {offsets = [0, 32], sizes = [8, 32], strides = [1, 1]} : vector<8x128xf32> to vector<8x32xf32>
    %138 = arith.negf %137 : vector<8x32xf32>
    %139 = math.exp %138 : vector<8x32xf32>
    %cst_40 = arith.constant 1.000000e+00 : f32
    %140 = vector.broadcast %cst_40 : f32 to vector<8x32xf32>
    %141 = arith.addf %140, %139 : vector<8x32xf32>
    %142 = arith.divf %140, %141 : vector<8x32xf32>
    %143 = vector.extract_strided_slice %123 {offsets = [0, 64], sizes = [8, 32], strides = [1, 1]} : vector<8x128xf32> to vector<8x32xf32>
    %144 = math.tanh %143 : vector<8x32xf32>
    %145 = vector.extract_strided_slice %123 {offsets = [0, 96], sizes = [8, 32], strides = [1, 1]} : vector<8x128xf32> to vector<8x32xf32>
    %146 = arith.negf %145 : vector<8x32xf32>
    %147 = math.exp %146 : vector<8x32xf32>
    %cst_41 = arith.constant 1.000000e+00 : f32
    %148 = vector.broadcast %cst_41 : f32 to vector<8x32xf32>
    %149 = arith.addf %148, %147 : vector<8x32xf32>
    %150 = arith.divf %148, %149 : vector<8x32xf32>
    %151 = vector.extract_strided_slice %130 {offsets = [0, 0], sizes = [8, 32], strides = [1, 1]} : vector<8x128xf32> to vector<8x32xf32>
    %152 = arith.negf %151 : vector<8x32xf32>
    %153 = math.exp %152 : vector<8x32xf32>
    %cst_42 = arith.constant 1.000000e+00 : f32
    %154 = vector.broadcast %cst_42 : f32 to vector<8x32xf32>
    %155 = arith.addf %154, %153 : vector<8x32xf32>
    %156 = arith.divf %154, %155 : vector<8x32xf32>
    %157 = vector.extract_strided_slice %130 {offsets = [0, 32], sizes = [8, 32], strides = [1, 1]} : vector<8x128xf32> to vector<8x32xf32>
    %158 = arith.negf %157 : vector<8x32xf32>
    %159 = math.exp %158 : vector<8x32xf32>
    %cst_43 = arith.constant 1.000000e+00 : f32
    %160 = vector.broadcast %cst_43 : f32 to vector<8x32xf32>
    %161 = arith.addf %160, %159 : vector<8x32xf32>
    %162 = arith.divf %160, %161 : vector<8x32xf32>
    %163 = vector.extract_strided_slice %130 {offsets = [0, 64], sizes = [8, 32], strides = [1, 1]} : vector<8x128xf32> to vector<8x32xf32>
    %164 = math.tanh %163 : vector<8x32xf32>
    %165 = vector.extract_strided_slice %130 {offsets = [0, 96], sizes = [8, 32], strides = [1, 1]} : vector<8x128xf32> to vector<8x32xf32>
    %166 = arith.negf %165 : vector<8x32xf32>
    %167 = math.exp %166 : vector<8x32xf32>
    %cst_44 = arith.constant 1.000000e+00 : f32
    %168 = vector.broadcast %cst_44 : f32 to vector<8x32xf32>
    %169 = arith.addf %168, %167 : vector<8x32xf32>
    %170 = arith.divf %168, %169 : vector<8x32xf32>
    %171 = arith.mulf %142, %105 : vector<8x32xf32>
    %172 = arith.mulf %136, %144 : vector<8x32xf32>
    %173 = arith.addf %171, %172 : vector<8x32xf32>
    %174 = math.tanh %173 : vector<8x32xf32>
    %175 = arith.mulf %150, %174 : vector<8x32xf32>
    %176 = arith.mulf %162, %111 : vector<8x32xf32>
    %177 = arith.mulf %156, %164 : vector<8x32xf32>
    %178 = arith.addf %176, %177 : vector<8x32xf32>
    %179 = math.tanh %178 : vector<8x32xf32>
    %180 = arith.mulf %170, %179 : vector<8x32xf32>
    %cst_45 = arith.constant 0.000000e+00 : f32
    %181 = vector.shape_cast %114 : vector<8x1xi1> to vector<8x1xi1>
    %182 = vector.broadcast %181 : vector<8x1xi1> to vector<8x32xi1>
    %183 = vector.broadcast %cst_45 : f32 to vector<8x32xf32>
    %184 = arith.select %182, %175, %183 : vector<8x32xi1>, vector<8x32xf32>
    %185 = arith.index_cast %c1_i32 : i32 to index
    %c0_46 = arith.constant 0 : index
    %c0_47 = arith.constant 0 : index
    %186 = vector.load %arg19[%185, %c0_46, %c0_47] : memref<8x8x64xf32, #tpu.memory_space<vmem>>, vector<1x8x32xf32>
    %187 = vector.shape_cast %186 : vector<1x8x32xf32> to vector<8x32xf32>
    %188 = vector.shape_cast %184 : vector<8x32xf32> to vector<1x8x32xf32>
    tpu.vector_store %arg19[%185, %c0_46, %c0_47], %188 {strides = array<i32>} : memref<8x8x64xf32, #tpu.memory_space<vmem>>, vector<1x8x32xf32>,
    %cst_48 = arith.constant 0.000000e+00 : f32
    %189 = vector.shape_cast %116 : vector<8x1xi1> to vector<8x1xi1>
    %190 = vector.broadcast %189 : vector<8x1xi1> to vector<8x32xi1>
    %191 = vector.broadcast %cst_48 : f32 to vector<8x32xf32>
    %192 = arith.select %190, %180, %191 : vector<8x32xi1>, vector<8x32xf32>
    %193 = arith.index_cast %112 : i32 to index
    %c0_49 = arith.constant 0 : index
    %c32_50 = arith.constant 32 : index
    %194 = vector.load %arg19[%193, %c0_49, %c32_50] : memref<8x8x64xf32, #tpu.memory_space<vmem>>, vector<1x8x32xf32>
    %195 = vector.shape_cast %194 : vector<1x8x32xf32> to vector<8x32xf32>
    %196 = vector.shape_cast %192 : vector<8x32xf32> to vector<1x8x32xf32>
    tpu.vector_store %arg19[%193, %c0_49, %c32_50], %196 {strides = array<i32>} : memref<8x8x64xf32, #tpu.memory_space<vmem>>, vector<1x8x32xf32>,
    %197 = vector.shape_cast %114 : vector<8x1xi1> to vector<8x1xi1>
    %198 = vector.broadcast %197 : vector<8x1xi1> to vector<8x32xi1>
    %199 = arith.select %198, %175, %102 : vector<8x32xi1>, vector<8x32xf32>
    %200 = vector.shape_cast %114 : vector<8x1xi1> to vector<8x1xi1>
    %201 = vector.broadcast %200 : vector<8x1xi1> to vector<8x32xi1>
    %202 = arith.select %201, %173, %105 : vector<8x32xi1>, vector<8x32xf32>
    %203 = vector.shape_cast %116 : vector<8x1xi1> to vector<8x1xi1>
    %204 = vector.broadcast %203 : vector<8x1xi1> to vector<8x32xi1>
    %205 = arith.select %204, %180, %108 : vector<8x32xi1>, vector<8x32xf32>
    %206 = vector.shape_cast %116 : vector<8x1xi1> to vector<8x1xi1>
    %207 = vector.broadcast %206 : vector<8x1xi1> to vector<8x32xi1>
    %208 = arith.select %207, %178, %111 : vector<8x32xi1>, vector<8x32xf32>
    %c2_i32 = arith.constant 2 : i32
    %c7_i32_51 = arith.constant 7 : i32
    %209 = arith.subi %c7_i32_51, %c2_i32 : i32
    %210 = vector.broadcast %c2_i32 : i32 to vector<8x1xi32>
    %211 = arith.cmpi slt, %210, %0 : vector<8x1xi32>
    %212 = vector.broadcast %209 : i32 to vector<8x1xi32>
    %213 = arith.cmpi slt, %212, %0 : vector<8x1xi32>
    %214 = arith.index_cast %c2_i32 : i32 to index
    %c0_52 = arith.constant 0 : index
    %c0_53 = arith.constant 0 : index
    %215 = vector.load %arg18[%214, %c0_52, %c0_53] : memref<8x8x256xbf16, #tpu.memory_space<vmem>>, vector<1x8x128xbf16>
    %216 = vector.shape_cast %215 : vector<1x8x128xbf16> to vector<8x128xbf16>
    %217 = arith.extf %216 : vector<8x128xbf16> to vector<8x128xf32>
    %218 = arith.truncf %199 : vector<8x32xf32> to vector<8x32xbf16>
    %cst_54 = arith.constant dense<0.000000e+00> : vector<8x128xf32>
    %219 = tpu.matmul %218, %2, %cst_54 {dimension_numbers = #tpu.dot_dimension_numbers<[1], [0], [0], [1], [0, 0, 1, 1], [], []>} : vector<8x32xbf16>, vector<32x128xbf16>, vector<8x128xf32> -> vector<8x128xf32>
    %220 = arith.addf %217, %219 : vector<8x128xf32>
    %221 = arith.index_cast %209 : i32 to index
    %c0_55 = arith.constant 0 : index
    %c128_56 = arith.constant 128 : index
    %222 = vector.load %arg18[%221, %c0_55, %c128_56] : memref<8x8x256xbf16, #tpu.memory_space<vmem>>, vector<1x8x128xbf16>
    %223 = vector.shape_cast %222 : vector<1x8x128xbf16> to vector<8x128xbf16>
    %224 = arith.extf %223 : vector<8x128xbf16> to vector<8x128xf32>
    %225 = arith.truncf %205 : vector<8x32xf32> to vector<8x32xbf16>
    %cst_57 = arith.constant dense<0.000000e+00> : vector<8x128xf32>
    %226 = tpu.matmul %225, %3, %cst_57 {dimension_numbers = #tpu.dot_dimension_numbers<[1], [0], [0], [1], [0, 0, 1, 1], [], []>} : vector<8x32xbf16>, vector<32x128xbf16>, vector<8x128xf32> -> vector<8x128xf32>
    %227 = arith.addf %224, %226 : vector<8x128xf32>
    %228 = vector.extract_strided_slice %220 {offsets = [0, 0], sizes = [8, 32], strides = [1, 1]} : vector<8x128xf32> to vector<8x32xf32>
    %229 = arith.negf %228 : vector<8x32xf32>
    %230 = math.exp %229 : vector<8x32xf32>
    %cst_58 = arith.constant 1.000000e+00 : f32
    %231 = vector.broadcast %cst_58 : f32 to vector<8x32xf32>
    %232 = arith.addf %231, %230 : vector<8x32xf32>
    %233 = arith.divf %231, %232 : vector<8x32xf32>
    %234 = vector.extract_strided_slice %220 {offsets = [0, 32], sizes = [8, 32], strides = [1, 1]} : vector<8x128xf32> to vector<8x32xf32>
    %235 = arith.negf %234 : vector<8x32xf32>
    %236 = math.exp %235 : vector<8x32xf32>
    %cst_59 = arith.constant 1.000000e+00 : f32
    %237 = vector.broadcast %cst_59 : f32 to vector<8x32xf32>
    %238 = arith.addf %237, %236 : vector<8x32xf32>
    %239 = arith.divf %237, %238 : vector<8x32xf32>
    %240 = vector.extract_strided_slice %220 {offsets = [0, 64], sizes = [8, 32], strides = [1, 1]} : vector<8x128xf32> to vector<8x32xf32>
    %241 = math.tanh %240 : vector<8x32xf32>
    %242 = vector.extract_strided_slice %220 {offsets = [0, 96], sizes = [8, 32], strides = [1, 1]} : vector<8x128xf32> to vector<8x32xf32>
    %243 = arith.negf %242 : vector<8x32xf32>
    %244 = math.exp %243 : vector<8x32xf32>
    %cst_60 = arith.constant 1.000000e+00 : f32
    %245 = vector.broadcast %cst_60 : f32 to vector<8x32xf32>
    %246 = arith.addf %245, %244 : vector<8x32xf32>
    %247 = arith.divf %245, %246 : vector<8x32xf32>
    %248 = vector.extract_strided_slice %227 {offsets = [0, 0], sizes = [8, 32], strides = [1, 1]} : vector<8x128xf32> to vector<8x32xf32>
    %249 = arith.negf %248 : vector<8x32xf32>
    %250 = math.exp %249 : vector<8x32xf32>
    %cst_61 = arith.constant 1.000000e+00 : f32
    %251 = vector.broadcast %cst_61 : f32 to vector<8x32xf32>
    %252 = arith.addf %251, %250 : vector<8x32xf32>
    %253 = arith.divf %251, %252 : vector<8x32xf32>
    %254 = vector.extract_strided_slice %227 {offsets = [0, 32], sizes = [8, 32], strides = [1, 1]} : vector<8x128xf32> to vector<8x32xf32>
    %255 = arith.negf %254 : vector<8x32xf32>
    %256 = math.exp %255 : vector<8x32xf32>
    %cst_62 = arith.constant 1.000000e+00 : f32
    %257 = vector.broadcast %cst_62 : f32 to vector<8x32xf32>
    %258 = arith.addf %257, %256 : vector<8x32xf32>
    %259 = arith.divf %257, %258 : vector<8x32xf32>
    %260 = vector.extract_strided_slice %227 {offsets = [0, 64], sizes = [8, 32], strides = [1, 1]} : vector<8x128xf32> to vector<8x32xf32>
    %261 = math.tanh %260 : vector<8x32xf32>
    %262 = vector.extract_strided_slice %227 {offsets = [0, 96], sizes = [8, 32], strides = [1, 1]} : vector<8x128xf32> to vector<8x32xf32>
    %263 = arith.negf %262 : vector<8x32xf32>
    %264 = math.exp %263 : vector<8x32xf32>
    %cst_63 = arith.constant 1.000000e+00 : f32
    %265 = vector.broadcast %cst_63 : f32 to vector<8x32xf32>
    %266 = arith.addf %265, %264 : vector<8x32xf32>
    %267 = arith.divf %265, %266 : vector<8x32xf32>
    %268 = arith.mulf %239, %202 : vector<8x32xf32>
    %269 = arith.mulf %233, %241 : vector<8x32xf32>
    %270 = arith.addf %268, %269 : vector<8x32xf32>
    %271 = math.tanh %270 : vector<8x32xf32>
    %272 = arith.mulf %247, %271 : vector<8x32xf32>
    %273 = arith.mulf %259, %208 : vector<8x32xf32>
    %274 = arith.mulf %253, %261 : vector<8x32xf32>
    %275 = arith.addf %273, %274 : vector<8x32xf32>
    %276 = math.tanh %275 : vector<8x32xf32>
    %277 = arith.mulf %267, %276 : vector<8x32xf32>
    %cst_64 = arith.constant 0.000000e+00 : f32
    %278 = vector.shape_cast %211 : vector<8x1xi1> to vector<8x1xi1>
    %279 = vector.broadcast %278 : vector<8x1xi1> to vector<8x32xi1>
    %280 = vector.broadcast %cst_64 : f32 to vector<8x32xf32>
    %281 = arith.select %279, %272, %280 : vector<8x32xi1>, vector<8x32xf32>
    %282 = arith.index_cast %c2_i32 : i32 to index
    %c0_65 = arith.constant 0 : index
    %c0_66 = arith.constant 0 : index
    %283 = vector.load %arg19[%282, %c0_65, %c0_66] : memref<8x8x64xf32, #tpu.memory_space<vmem>>, vector<1x8x32xf32>
    %284 = vector.shape_cast %283 : vector<1x8x32xf32> to vector<8x32xf32>
    %285 = vector.shape_cast %281 : vector<8x32xf32> to vector<1x8x32xf32>
    tpu.vector_store %arg19[%282, %c0_65, %c0_66], %285 {strides = array<i32>} : memref<8x8x64xf32, #tpu.memory_space<vmem>>, vector<1x8x32xf32>,
    %cst_67 = arith.constant 0.000000e+00 : f32
    %286 = vector.shape_cast %213 : vector<8x1xi1> to vector<8x1xi1>
    %287 = vector.broadcast %286 : vector<8x1xi1> to vector<8x32xi1>
    %288 = vector.broadcast %cst_67 : f32 to vector<8x32xf32>
    %289 = arith.select %287, %277, %288 : vector<8x32xi1>, vector<8x32xf32>
    %290 = arith.index_cast %209 : i32 to index
    %c0_68 = arith.constant 0 : index
    %c32_69 = arith.constant 32 : index
    %291 = vector.load %arg19[%290, %c0_68, %c32_69] : memref<8x8x64xf32, #tpu.memory_space<vmem>>, vector<1x8x32xf32>
    %292 = vector.shape_cast %291 : vector<1x8x32xf32> to vector<8x32xf32>
    %293 = vector.shape_cast %289 : vector<8x32xf32> to vector<1x8x32xf32>
    tpu.vector_store %arg19[%290, %c0_68, %c32_69], %293 {strides = array<i32>} : memref<8x8x64xf32, #tpu.memory_space<vmem>>, vector<1x8x32xf32>,
    %294 = vector.shape_cast %211 : vector<8x1xi1> to vector<8x1xi1>
    %295 = vector.broadcast %294 : vector<8x1xi1> to vector<8x32xi1>
    %296 = arith.select %295, %272, %199 : vector<8x32xi1>, vector<8x32xf32>
    %297 = vector.shape_cast %211 : vector<8x1xi1> to vector<8x1xi1>
    %298 = vector.broadcast %297 : vector<8x1xi1> to vector<8x32xi1>
    %299 = arith.select %298, %270, %202 : vector<8x32xi1>, vector<8x32xf32>
    %300 = vector.shape_cast %213 : vector<8x1xi1> to vector<8x1xi1>
    %301 = vector.broadcast %300 : vector<8x1xi1> to vector<8x32xi1>
    %302 = arith.select %301, %277, %205 : vector<8x32xi1>, vector<8x32xf32>
    %303 = vector.shape_cast %213 : vector<8x1xi1> to vector<8x1xi1>
    %304 = vector.broadcast %303 : vector<8x1xi1> to vector<8x32xi1>
    %305 = arith.select %304, %275, %208 : vector<8x32xi1>, vector<8x32xf32>
    %c3_i32 = arith.constant 3 : i32
    %c7_i32_70 = arith.constant 7 : i32
    %306 = arith.subi %c7_i32_70, %c3_i32 : i32
    %307 = vector.broadcast %c3_i32 : i32 to vector<8x1xi32>
    %308 = arith.cmpi slt, %307, %0 : vector<8x1xi32>
    %309 = vector.broadcast %306 : i32 to vector<8x1xi32>
    %310 = arith.cmpi slt, %309, %0 : vector<8x1xi32>
    %311 = arith.index_cast %c3_i32 : i32 to index
    %c0_71 = arith.constant 0 : index
    %c0_72 = arith.constant 0 : index
    %312 = vector.load %arg18[%311, %c0_71, %c0_72] : memref<8x8x256xbf16, #tpu.memory_space<vmem>>, vector<1x8x128xbf16>
    %313 = vector.shape_cast %312 : vector<1x8x128xbf16> to vector<8x128xbf16>
    %314 = arith.extf %313 : vector<8x128xbf16> to vector<8x128xf32>
    %315 = arith.truncf %296 : vector<8x32xf32> to vector<8x32xbf16>
    %cst_73 = arith.constant dense<0.000000e+00> : vector<8x128xf32>
    %316 = tpu.matmul %315, %2, %cst_73 {dimension_numbers = #tpu.dot_dimension_numbers<[1], [0], [0], [1], [0, 0, 1, 1], [], []>} : vector<8x32xbf16>, vector<32x128xbf16>, vector<8x128xf32> -> vector<8x128xf32>
    %317 = arith.addf %314, %316 : vector<8x128xf32>
    %318 = arith.index_cast %306 : i32 to index
    %c0_74 = arith.constant 0 : index
    %c128_75 = arith.constant 128 : index
    %319 = vector.load %arg18[%318, %c0_74, %c128_75] : memref<8x8x256xbf16, #tpu.memory_space<vmem>>, vector<1x8x128xbf16>
    %320 = vector.shape_cast %319 : vector<1x8x128xbf16> to vector<8x128xbf16>
    %321 = arith.extf %320 : vector<8x128xbf16> to vector<8x128xf32>
    %322 = arith.truncf %302 : vector<8x32xf32> to vector<8x32xbf16>
    %cst_76 = arith.constant dense<0.000000e+00> : vector<8x128xf32>
    %323 = tpu.matmul %322, %3, %cst_76 {dimension_numbers = #tpu.dot_dimension_numbers<[1], [0], [0], [1], [0, 0, 1, 1], [], []>} : vector<8x32xbf16>, vector<32x128xbf16>, vector<8x128xf32> -> vector<8x128xf32>
    %324 = arith.addf %321, %323 : vector<8x128xf32>
    %325 = vector.extract_strided_slice %317 {offsets = [0, 0], sizes = [8, 32], strides = [1, 1]} : vector<8x128xf32> to vector<8x32xf32>
    %326 = arith.negf %325 : vector<8x32xf32>
    %327 = math.exp %326 : vector<8x32xf32>
    %cst_77 = arith.constant 1.000000e+00 : f32
    %328 = vector.broadcast %cst_77 : f32 to vector<8x32xf32>
    %329 = arith.addf %328, %327 : vector<8x32xf32>
    %330 = arith.divf %328, %329 : vector<8x32xf32>
    %331 = vector.extract_strided_slice %317 {offsets = [0, 32], sizes = [8, 32], strides = [1, 1]} : vector<8x128xf32> to vector<8x32xf32>
    %332 = arith.negf %331 : vector<8x32xf32>
    %333 = math.exp %332 : vector<8x32xf32>
    %cst_78 = arith.constant 1.000000e+00 : f32
    %334 = vector.broadcast %cst_78 : f32 to vector<8x32xf32>
    %335 = arith.addf %334, %333 : vector<8x32xf32>
    %336 = arith.divf %334, %335 : vector<8x32xf32>
    %337 = vector.extract_strided_slice %317 {offsets = [0, 64], sizes = [8, 32], strides = [1, 1]} : vector<8x128xf32> to vector<8x32xf32>
    %338 = math.tanh %337 : vector<8x32xf32>
    %339 = vector.extract_strided_slice %317 {offsets = [0, 96], sizes = [8, 32], strides = [1, 1]} : vector<8x128xf32> to vector<8x32xf32>
    %340 = arith.negf %339 : vector<8x32xf32>
    %341 = math.exp %340 : vector<8x32xf32>
    %cst_79 = arith.constant 1.000000e+00 : f32
    %342 = vector.broadcast %cst_79 : f32 to vector<8x32xf32>
    %343 = arith.addf %342, %341 : vector<8x32xf32>
    %344 = arith.divf %342, %343 : vector<8x32xf32>
    %345 = vector.extract_strided_slice %324 {offsets = [0, 0], sizes = [8, 32], strides = [1, 1]} : vector<8x128xf32> to vector<8x32xf32>
    %346 = arith.negf %345 : vector<8x32xf32>
    %347 = math.exp %346 : vector<8x32xf32>
    %cst_80 = arith.constant 1.000000e+00 : f32
    %348 = vector.broadcast %cst_80 : f32 to vector<8x32xf32>
    %349 = arith.addf %348, %347 : vector<8x32xf32>
    %350 = arith.divf %348, %349 : vector<8x32xf32>
    %351 = vector.extract_strided_slice %324 {offsets = [0, 32], sizes = [8, 32], strides = [1, 1]} : vector<8x128xf32> to vector<8x32xf32>
    %352 = arith.negf %351 : vector<8x32xf32>
    %353 = math.exp %352 : vector<8x32xf32>
    %cst_81 = arith.constant 1.000000e+00 : f32
    %354 = vector.broadcast %cst_81 : f32 to vector<8x32xf32>
    %355 = arith.addf %354, %353 : vector<8x32xf32>
    %356 = arith.divf %354, %355 : vector<8x32xf32>
    %357 = vector.extract_strided_slice %324 {offsets = [0, 64], sizes = [8, 32], strides = [1, 1]} : vector<8x128xf32> to vector<8x32xf32>
    %358 = math.tanh %357 : vector<8x32xf32>
    %359 = vector.extract_strided_slice %324 {offsets = [0, 96], sizes = [8, 32], strides = [1, 1]} : vector<8x128xf32> to vector<8x32xf32>
    %360 = arith.negf %359 : vector<8x32xf32>
    %361 = math.exp %360 : vector<8x32xf32>
    %cst_82 = arith.constant 1.000000e+00 : f32
    %362 = vector.broadcast %cst_82 : f32 to vector<8x32xf32>
    %363 = arith.addf %362, %361 : vector<8x32xf32>
    %364 = arith.divf %362, %363 : vector<8x32xf32>
    %365 = arith.mulf %336, %299 : vector<8x32xf32>
    %366 = arith.mulf %330, %338 : vector<8x32xf32>
    %367 = arith.addf %365, %366 : vector<8x32xf32>
    %368 = math.tanh %367 : vector<8x32xf32>
    %369 = arith.mulf %344, %368 : vector<8x32xf32>
    %370 = arith.mulf %356, %305 : vector<8x32xf32>
    %371 = arith.mulf %350, %358 : vector<8x32xf32>
    %372 = arith.addf %370, %371 : vector<8x32xf32>
    %373 = math.tanh %372 : vector<8x32xf32>
    %374 = arith.mulf %364, %373 : vector<8x32xf32>
    %cst_83 = arith.constant 0.000000e+00 : f32
    %375 = vector.shape_cast %308 : vector<8x1xi1> to vector<8x1xi1>
    %376 = vector.broadcast %375 : vector<8x1xi1> to vector<8x32xi1>
    %377 = vector.broadcast %cst_83 : f32 to vector<8x32xf32>
    %378 = arith.select %376, %369, %377 : vector<8x32xi1>, vector<8x32xf32>
    %379 = arith.index_cast %c3_i32 : i32 to index
    %c0_84 = arith.constant 0 : index
    %c0_85 = arith.constant 0 : index
    %380 = vector.load %arg19[%379, %c0_84, %c0_85] : memref<8x8x64xf32, #tpu.memory_space<vmem>>, vector<1x8x32xf32>
    %381 = vector.shape_cast %380 : vector<1x8x32xf32> to vector<8x32xf32>
    %382 = vector.shape_cast %378 : vector<8x32xf32> to vector<1x8x32xf32>
    tpu.vector_store %arg19[%379, %c0_84, %c0_85], %382 {strides = array<i32>} : memref<8x8x64xf32, #tpu.memory_space<vmem>>, vector<1x8x32xf32>,
    %cst_86 = arith.constant 0.000000e+00 : f32
    %383 = vector.shape_cast %310 : vector<8x1xi1> to vector<8x1xi1>
    %384 = vector.broadcast %383 : vector<8x1xi1> to vector<8x32xi1>
    %385 = vector.broadcast %cst_86 : f32 to vector<8x32xf32>
    %386 = arith.select %384, %374, %385 : vector<8x32xi1>, vector<8x32xf32>
    %387 = arith.index_cast %306 : i32 to index
    %c0_87 = arith.constant 0 : index
    %c32_88 = arith.constant 32 : index
    %388 = vector.load %arg19[%387, %c0_87, %c32_88] : memref<8x8x64xf32, #tpu.memory_space<vmem>>, vector<1x8x32xf32>
    %389 = vector.shape_cast %388 : vector<1x8x32xf32> to vector<8x32xf32>
    %390 = vector.shape_cast %386 : vector<8x32xf32> to vector<1x8x32xf32>
    tpu.vector_store %arg19[%387, %c0_87, %c32_88], %390 {strides = array<i32>} : memref<8x8x64xf32, #tpu.memory_space<vmem>>, vector<1x8x32xf32>,
    %391 = vector.shape_cast %308 : vector<8x1xi1> to vector<8x1xi1>
    %392 = vector.broadcast %391 : vector<8x1xi1> to vector<8x32xi1>
    %393 = arith.select %392, %369, %296 : vector<8x32xi1>, vector<8x32xf32>
    %394 = vector.shape_cast %308 : vector<8x1xi1> to vector<8x1xi1>
    %395 = vector.broadcast %394 : vector<8x1xi1> to vector<8x32xi1>
    %396 = arith.select %395, %367, %299 : vector<8x32xi1>, vector<8x32xf32>
    %397 = vector.shape_cast %310 : vector<8x1xi1> to vector<8x1xi1>
    %398 = vector.broadcast %397 : vector<8x1xi1> to vector<8x32xi1>
    %399 = arith.select %398, %374, %302 : vector<8x32xi1>, vector<8x32xf32>
    %400 = vector.shape_cast %310 : vector<8x1xi1> to vector<8x1xi1>
    %401 = vector.broadcast %400 : vector<8x1xi1> to vector<8x32xi1>
    %402 = arith.select %401, %372, %305 : vector<8x32xi1>, vector<8x32xf32>
    %c4_i32 = arith.constant 4 : i32
    %c7_i32_89 = arith.constant 7 : i32
    %403 = arith.subi %c7_i32_89, %c4_i32 : i32
    %404 = vector.broadcast %c4_i32 : i32 to vector<8x1xi32>
    %405 = arith.cmpi slt, %404, %0 : vector<8x1xi32>
    %406 = vector.broadcast %403 : i32 to vector<8x1xi32>
    %407 = arith.cmpi slt, %406, %0 : vector<8x1xi32>
    %408 = arith.index_cast %c4_i32 : i32 to index
    %c0_90 = arith.constant 0 : index
    %c0_91 = arith.constant 0 : index
    %409 = vector.load %arg18[%408, %c0_90, %c0_91] : memref<8x8x256xbf16, #tpu.memory_space<vmem>>, vector<1x8x128xbf16>
    %410 = vector.shape_cast %409 : vector<1x8x128xbf16> to vector<8x128xbf16>
    %411 = arith.extf %410 : vector<8x128xbf16> to vector<8x128xf32>
    %412 = arith.truncf %393 : vector<8x32xf32> to vector<8x32xbf16>
    %cst_92 = arith.constant dense<0.000000e+00> : vector<8x128xf32>
    %413 = tpu.matmul %412, %2, %cst_92 {dimension_numbers = #tpu.dot_dimension_numbers<[1], [0], [0], [1], [0, 0, 1, 1], [], []>} : vector<8x32xbf16>, vector<32x128xbf16>, vector<8x128xf32> -> vector<8x128xf32>
    %414 = arith.addf %411, %413 : vector<8x128xf32>
    %415 = arith.index_cast %403 : i32 to index
    %c0_93 = arith.constant 0 : index
    %c128_94 = arith.constant 128 : index
    %416 = vector.load %arg18[%415, %c0_93, %c128_94] : memref<8x8x256xbf16, #tpu.memory_space<vmem>>, vector<1x8x128xbf16>
    %417 = vector.shape_cast %416 : vector<1x8x128xbf16> to vector<8x128xbf16>
    %418 = arith.extf %417 : vector<8x128xbf16> to vector<8x128xf32>
    %419 = arith.truncf %399 : vector<8x32xf32> to vector<8x32xbf16>
    %cst_95 = arith.constant dense<0.000000e+00> : vector<8x128xf32>
    %420 = tpu.matmul %419, %3, %cst_95 {dimension_numbers = #tpu.dot_dimension_numbers<[1], [0], [0], [1], [0, 0, 1, 1], [], []>} : vector<8x32xbf16>, vector<32x128xbf16>, vector<8x128xf32> -> vector<8x128xf32>
    %421 = arith.addf %418, %420 : vector<8x128xf32>
    %422 = vector.extract_strided_slice %414 {offsets = [0, 0], sizes = [8, 32], strides = [1, 1]} : vector<8x128xf32> to vector<8x32xf32>
    %423 = arith.negf %422 : vector<8x32xf32>
    %424 = math.exp %423 : vector<8x32xf32>
    %cst_96 = arith.constant 1.000000e+00 : f32
    %425 = vector.broadcast %cst_96 : f32 to vector<8x32xf32>
    %426 = arith.addf %425, %424 : vector<8x32xf32>
    %427 = arith.divf %425, %426 : vector<8x32xf32>
    %428 = vector.extract_strided_slice %414 {offsets = [0, 32], sizes = [8, 32], strides = [1, 1]} : vector<8x128xf32> to vector<8x32xf32>
    %429 = arith.negf %428 : vector<8x32xf32>
    %430 = math.exp %429 : vector<8x32xf32>
    %cst_97 = arith.constant 1.000000e+00 : f32
    %431 = vector.broadcast %cst_97 : f32 to vector<8x32xf32>
    %432 = arith.addf %431, %430 : vector<8x32xf32>
    %433 = arith.divf %431, %432 : vector<8x32xf32>
    %434 = vector.extract_strided_slice %414 {offsets = [0, 64], sizes = [8, 32], strides = [1, 1]} : vector<8x128xf32> to vector<8x32xf32>
    %435 = math.tanh %434 : vector<8x32xf32>
    %436 = vector.extract_strided_slice %414 {offsets = [0, 96], sizes = [8, 32], strides = [1, 1]} : vector<8x128xf32> to vector<8x32xf32>
    %437 = arith.negf %436 : vector<8x32xf32>
    %438 = math.exp %437 : vector<8x32xf32>
    %cst_98 = arith.constant 1.000000e+00 : f32
    %439 = vector.broadcast %cst_98 : f32 to vector<8x32xf32>
    %440 = arith.addf %439, %438 : vector<8x32xf32>
    %441 = arith.divf %439, %440 : vector<8x32xf32>
    %442 = vector.extract_strided_slice %421 {offsets = [0, 0], sizes = [8, 32], strides = [1, 1]} : vector<8x128xf32> to vector<8x32xf32>
    %443 = arith.negf %442 : vector<8x32xf32>
    %444 = math.exp %443 : vector<8x32xf32>
    %cst_99 = arith.constant 1.000000e+00 : f32
    %445 = vector.broadcast %cst_99 : f32 to vector<8x32xf32>
    %446 = arith.addf %445, %444 : vector<8x32xf32>
    %447 = arith.divf %445, %446 : vector<8x32xf32>
    %448 = vector.extract_strided_slice %421 {offsets = [0, 32], sizes = [8, 32], strides = [1, 1]} : vector<8x128xf32> to vector<8x32xf32>
    %449 = arith.negf %448 : vector<8x32xf32>
    %450 = math.exp %449 : vector<8x32xf32>
    %cst_100 = arith.constant 1.000000e+00 : f32
    %451 = vector.broadcast %cst_100 : f32 to vector<8x32xf32>
    %452 = arith.addf %451, %450 : vector<8x32xf32>
    %453 = arith.divf %451, %452 : vector<8x32xf32>
    %454 = vector.extract_strided_slice %421 {offsets = [0, 64], sizes = [8, 32], strides = [1, 1]} : vector<8x128xf32> to vector<8x32xf32>
    %455 = math.tanh %454 : vector<8x32xf32>
    %456 = vector.extract_strided_slice %421 {offsets = [0, 96], sizes = [8, 32], strides = [1, 1]} : vector<8x128xf32> to vector<8x32xf32>
    %457 = arith.negf %456 : vector<8x32xf32>
    %458 = math.exp %457 : vector<8x32xf32>
    %cst_101 = arith.constant 1.000000e+00 : f32
    %459 = vector.broadcast %cst_101 : f32 to vector<8x32xf32>
    %460 = arith.addf %459, %458 : vector<8x32xf32>
    %461 = arith.divf %459, %460 : vector<8x32xf32>
    %462 = arith.mulf %433, %396 : vector<8x32xf32>
    %463 = arith.mulf %427, %435 : vector<8x32xf32>
    %464 = arith.addf %462, %463 : vector<8x32xf32>
    %465 = math.tanh %464 : vector<8x32xf32>
    %466 = arith.mulf %441, %465 : vector<8x32xf32>
    %467 = arith.mulf %453, %402 : vector<8x32xf32>
    %468 = arith.mulf %447, %455 : vector<8x32xf32>
    %469 = arith.addf %467, %468 : vector<8x32xf32>
    %470 = math.tanh %469 : vector<8x32xf32>
    %471 = arith.mulf %461, %470 : vector<8x32xf32>
    %cst_102 = arith.constant 0.000000e+00 : f32
    %472 = vector.shape_cast %405 : vector<8x1xi1> to vector<8x1xi1>
    %473 = vector.broadcast %472 : vector<8x1xi1> to vector<8x32xi1>
    %474 = vector.broadcast %cst_102 : f32 to vector<8x32xf32>
    %475 = arith.select %473, %466, %474 : vector<8x32xi1>, vector<8x32xf32>
    %476 = arith.index_cast %c4_i32 : i32 to index
    %c0_103 = arith.constant 0 : index
    %c0_104 = arith.constant 0 : index
    %477 = vector.load %arg19[%476, %c0_103, %c0_104] : memref<8x8x64xf32, #tpu.memory_space<vmem>>, vector<1x8x32xf32>
    %478 = vector.shape_cast %477 : vector<1x8x32xf32> to vector<8x32xf32>
    %479 = vector.shape_cast %475 : vector<8x32xf32> to vector<1x8x32xf32>
    tpu.vector_store %arg19[%476, %c0_103, %c0_104], %479 {strides = array<i32>} : memref<8x8x64xf32, #tpu.memory_space<vmem>>, vector<1x8x32xf32>,
    %cst_105 = arith.constant 0.000000e+00 : f32
    %480 = vector.shape_cast %407 : vector<8x1xi1> to vector<8x1xi1>
    %481 = vector.broadcast %480 : vector<8x1xi1> to vector<8x32xi1>
    %482 = vector.broadcast %cst_105 : f32 to vector<8x32xf32>
    %483 = arith.select %481, %471, %482 : vector<8x32xi1>, vector<8x32xf32>
    %484 = arith.index_cast %403 : i32 to index
    %c0_106 = arith.constant 0 : index
    %c32_107 = arith.constant 32 : index
    %485 = vector.load %arg19[%484, %c0_106, %c32_107] : memref<8x8x64xf32, #tpu.memory_space<vmem>>, vector<1x8x32xf32>
    %486 = vector.shape_cast %485 : vector<1x8x32xf32> to vector<8x32xf32>
    %487 = vector.shape_cast %483 : vector<8x32xf32> to vector<1x8x32xf32>
    tpu.vector_store %arg19[%484, %c0_106, %c32_107], %487 {strides = array<i32>} : memref<8x8x64xf32, #tpu.memory_space<vmem>>, vector<1x8x32xf32>,
    %488 = vector.shape_cast %405 : vector<8x1xi1> to vector<8x1xi1>
    %489 = vector.broadcast %488 : vector<8x1xi1> to vector<8x32xi1>
    %490 = arith.select %489, %466, %393 : vector<8x32xi1>, vector<8x32xf32>
    %491 = vector.shape_cast %405 : vector<8x1xi1> to vector<8x1xi1>
    %492 = vector.broadcast %491 : vector<8x1xi1> to vector<8x32xi1>
    %493 = arith.select %492, %464, %396 : vector<8x32xi1>, vector<8x32xf32>
    %494 = vector.shape_cast %407 : vector<8x1xi1> to vector<8x1xi1>
    %495 = vector.broadcast %494 : vector<8x1xi1> to vector<8x32xi1>
    %496 = arith.select %495, %471, %399 : vector<8x32xi1>, vector<8x32xf32>
    %497 = vector.shape_cast %407 : vector<8x1xi1> to vector<8x1xi1>
    %498 = vector.broadcast %497 : vector<8x1xi1> to vector<8x32xi1>
    %499 = arith.select %498, %469, %402 : vector<8x32xi1>, vector<8x32xf32>
    %c5_i32 = arith.constant 5 : i32
    %c7_i32_108 = arith.constant 7 : i32
    %500 = arith.subi %c7_i32_108, %c5_i32 : i32
    %501 = vector.broadcast %c5_i32 : i32 to vector<8x1xi32>
    %502 = arith.cmpi slt, %501, %0 : vector<8x1xi32>
    %503 = vector.broadcast %500 : i32 to vector<8x1xi32>
    %504 = arith.cmpi slt, %503, %0 : vector<8x1xi32>
    %505 = arith.index_cast %c5_i32 : i32 to index
    %c0_109 = arith.constant 0 : index
    %c0_110 = arith.constant 0 : index
    %506 = vector.load %arg18[%505, %c0_109, %c0_110] : memref<8x8x256xbf16, #tpu.memory_space<vmem>>, vector<1x8x128xbf16>
    %507 = vector.shape_cast %506 : vector<1x8x128xbf16> to vector<8x128xbf16>
    %508 = arith.extf %507 : vector<8x128xbf16> to vector<8x128xf32>
    %509 = arith.truncf %490 : vector<8x32xf32> to vector<8x32xbf16>
    %cst_111 = arith.constant dense<0.000000e+00> : vector<8x128xf32>
    %510 = tpu.matmul %509, %2, %cst_111 {dimension_numbers = #tpu.dot_dimension_numbers<[1], [0], [0], [1], [0, 0, 1, 1], [], []>} : vector<8x32xbf16>, vector<32x128xbf16>, vector<8x128xf32> -> vector<8x128xf32>
    %511 = arith.addf %508, %510 : vector<8x128xf32>
    %512 = arith.index_cast %500 : i32 to index
    %c0_112 = arith.constant 0 : index
    %c128_113 = arith.constant 128 : index
    %513 = vector.load %arg18[%512, %c0_112, %c128_113] : memref<8x8x256xbf16, #tpu.memory_space<vmem>>, vector<1x8x128xbf16>
    %514 = vector.shape_cast %513 : vector<1x8x128xbf16> to vector<8x128xbf16>
    %515 = arith.extf %514 : vector<8x128xbf16> to vector<8x128xf32>
    %516 = arith.truncf %496 : vector<8x32xf32> to vector<8x32xbf16>
    %cst_114 = arith.constant dense<0.000000e+00> : vector<8x128xf32>
    %517 = tpu.matmul %516, %3, %cst_114 {dimension_numbers = #tpu.dot_dimension_numbers<[1], [0], [0], [1], [0, 0, 1, 1], [], []>} : vector<8x32xbf16>, vector<32x128xbf16>, vector<8x128xf32> -> vector<8x128xf32>
    %518 = arith.addf %515, %517 : vector<8x128xf32>
    %519 = vector.extract_strided_slice %511 {offsets = [0, 0], sizes = [8, 32], strides = [1, 1]} : vector<8x128xf32> to vector<8x32xf32>
    %520 = arith.negf %519 : vector<8x32xf32>
    %521 = math.exp %520 : vector<8x32xf32>
    %cst_115 = arith.constant 1.000000e+00 : f32
    %522 = vector.broadcast %cst_115 : f32 to vector<8x32xf32>
    %523 = arith.addf %522, %521 : vector<8x32xf32>
    %524 = arith.divf %522, %523 : vector<8x32xf32>
    %525 = vector.extract_strided_slice %511 {offsets = [0, 32], sizes = [8, 32], strides = [1, 1]} : vector<8x128xf32> to vector<8x32xf32>
    %526 = arith.negf %525 : vector<8x32xf32>
    %527 = math.exp %526 : vector<8x32xf32>
    %cst_116 = arith.constant 1.000000e+00 : f32
    %528 = vector.broadcast %cst_116 : f32 to vector<8x32xf32>
    %529 = arith.addf %528, %527 : vector<8x32xf32>
    %530 = arith.divf %528, %529 : vector<8x32xf32>
    %531 = vector.extract_strided_slice %511 {offsets = [0, 64], sizes = [8, 32], strides = [1, 1]} : vector<8x128xf32> to vector<8x32xf32>
    %532 = math.tanh %531 : vector<8x32xf32>
    %533 = vector.extract_strided_slice %511 {offsets = [0, 96], sizes = [8, 32], strides = [1, 1]} : vector<8x128xf32> to vector<8x32xf32>
    %534 = arith.negf %533 : vector<8x32xf32>
    %535 = math.exp %534 : vector<8x32xf32>
    %cst_117 = arith.constant 1.000000e+00 : f32
    %536 = vector.broadcast %cst_117 : f32 to vector<8x32xf32>
    %537 = arith.addf %536, %535 : vector<8x32xf32>
    %538 = arith.divf %536, %537 : vector<8x32xf32>
    %539 = vector.extract_strided_slice %518 {offsets = [0, 0], sizes = [8, 32], strides = [1, 1]} : vector<8x128xf32> to vector<8x32xf32>
    %540 = arith.negf %539 : vector<8x32xf32>
    %541 = math.exp %540 : vector<8x32xf32>
    %cst_118 = arith.constant 1.000000e+00 : f32
    %542 = vector.broadcast %cst_118 : f32 to vector<8x32xf32>
    %543 = arith.addf %542, %541 : vector<8x32xf32>
    %544 = arith.divf %542, %543 : vector<8x32xf32>
    %545 = vector.extract_strided_slice %518 {offsets = [0, 32], sizes = [8, 32], strides = [1, 1]} : vector<8x128xf32> to vector<8x32xf32>
    %546 = arith.negf %545 : vector<8x32xf32>
    %547 = math.exp %546 : vector<8x32xf32>
    %cst_119 = arith.constant 1.000000e+00 : f32
    %548 = vector.broadcast %cst_119 : f32 to vector<8x32xf32>
    %549 = arith.addf %548, %547 : vector<8x32xf32>
    %550 = arith.divf %548, %549 : vector<8x32xf32>
    %551 = vector.extract_strided_slice %518 {offsets = [0, 64], sizes = [8, 32], strides = [1, 1]} : vector<8x128xf32> to vector<8x32xf32>
    %552 = math.tanh %551 : vector<8x32xf32>
    %553 = vector.extract_strided_slice %518 {offsets = [0, 96], sizes = [8, 32], strides = [1, 1]} : vector<8x128xf32> to vector<8x32xf32>
    %554 = arith.negf %553 : vector<8x32xf32>
    %555 = math.exp %554 : vector<8x32xf32>
    %cst_120 = arith.constant 1.000000e+00 : f32
    %556 = vector.broadcast %cst_120 : f32 to vector<8x32xf32>
    %557 = arith.addf %556, %555 : vector<8x32xf32>
    %558 = arith.divf %556, %557 : vector<8x32xf32>
    %559 = arith.mulf %530, %493 : vector<8x32xf32>
    %560 = arith.mulf %524, %532 : vector<8x32xf32>
    %561 = arith.addf %559, %560 : vector<8x32xf32>
    %562 = math.tanh %561 : vector<8x32xf32>
    %563 = arith.mulf %538, %562 : vector<8x32xf32>
    %564 = arith.mulf %550, %499 : vector<8x32xf32>
    %565 = arith.mulf %544, %552 : vector<8x32xf32>
    %566 = arith.addf %564, %565 : vector<8x32xf32>
    %567 = math.tanh %566 : vector<8x32xf32>
    %568 = arith.mulf %558, %567 : vector<8x32xf32>
    %cst_121 = arith.constant 0.000000e+00 : f32
    %569 = vector.shape_cast %502 : vector<8x1xi1> to vector<8x1xi1>
    %570 = vector.broadcast %569 : vector<8x1xi1> to vector<8x32xi1>
    %571 = vector.broadcast %cst_121 : f32 to vector<8x32xf32>
    %572 = arith.select %570, %563, %571 : vector<8x32xi1>, vector<8x32xf32>
    %573 = arith.index_cast %c5_i32 : i32 to index
    %c0_122 = arith.constant 0 : index
    %c0_123 = arith.constant 0 : index
    %574 = vector.load %arg19[%573, %c0_122, %c0_123] : memref<8x8x64xf32, #tpu.memory_space<vmem>>, vector<1x8x32xf32>
    %575 = vector.shape_cast %574 : vector<1x8x32xf32> to vector<8x32xf32>
    %576 = vector.shape_cast %572 : vector<8x32xf32> to vector<1x8x32xf32>
    tpu.vector_store %arg19[%573, %c0_122, %c0_123], %576 {strides = array<i32>} : memref<8x8x64xf32, #tpu.memory_space<vmem>>, vector<1x8x32xf32>,
    %cst_124 = arith.constant 0.000000e+00 : f32
    %577 = vector.shape_cast %504 : vector<8x1xi1> to vector<8x1xi1>
    %578 = vector.broadcast %577 : vector<8x1xi1> to vector<8x32xi1>
    %579 = vector.broadcast %cst_124 : f32 to vector<8x32xf32>
    %580 = arith.select %578, %568, %579 : vector<8x32xi1>, vector<8x32xf32>
    %581 = arith.index_cast %500 : i32 to index
    %c0_125 = arith.constant 0 : index
    %c32_126 = arith.constant 32 : index
    %582 = vector.load %arg19[%581, %c0_125, %c32_126] : memref<8x8x64xf32, #tpu.memory_space<vmem>>, vector<1x8x32xf32>
    %583 = vector.shape_cast %582 : vector<1x8x32xf32> to vector<8x32xf32>
    %584 = vector.shape_cast %580 : vector<8x32xf32> to vector<1x8x32xf32>
    tpu.vector_store %arg19[%581, %c0_125, %c32_126], %584 {strides = array<i32>} : memref<8x8x64xf32, #tpu.memory_space<vmem>>, vector<1x8x32xf32>,
    %585 = vector.shape_cast %502 : vector<8x1xi1> to vector<8x1xi1>
    %586 = vector.broadcast %585 : vector<8x1xi1> to vector<8x32xi1>
    %587 = arith.select %586, %563, %490 : vector<8x32xi1>, vector<8x32xf32>
    %588 = vector.shape_cast %502 : vector<8x1xi1> to vector<8x1xi1>
    %589 = vector.broadcast %588 : vector<8x1xi1> to vector<8x32xi1>
    %590 = arith.select %589, %561, %493 : vector<8x32xi1>, vector<8x32xf32>
    %591 = vector.shape_cast %504 : vector<8x1xi1> to vector<8x1xi1>
    %592 = vector.broadcast %591 : vector<8x1xi1> to vector<8x32xi1>
    %593 = arith.select %592, %568, %496 : vector<8x32xi1>, vector<8x32xf32>
    %594 = vector.shape_cast %504 : vector<8x1xi1> to vector<8x1xi1>
    %595 = vector.broadcast %594 : vector<8x1xi1> to vector<8x32xi1>
    %596 = arith.select %595, %566, %499 : vector<8x32xi1>, vector<8x32xf32>
    %c6_i32 = arith.constant 6 : i32
    %c7_i32_127 = arith.constant 7 : i32
    %597 = arith.subi %c7_i32_127, %c6_i32 : i32
    %598 = vector.broadcast %c6_i32 : i32 to vector<8x1xi32>
    %599 = arith.cmpi slt, %598, %0 : vector<8x1xi32>
    %600 = vector.broadcast %597 : i32 to vector<8x1xi32>
    %601 = arith.cmpi slt, %600, %0 : vector<8x1xi32>
    %602 = arith.index_cast %c6_i32 : i32 to index
    %c0_128 = arith.constant 0 : index
    %c0_129 = arith.constant 0 : index
    %603 = vector.load %arg18[%602, %c0_128, %c0_129] : memref<8x8x256xbf16, #tpu.memory_space<vmem>>, vector<1x8x128xbf16>
    %604 = vector.shape_cast %603 : vector<1x8x128xbf16> to vector<8x128xbf16>
    %605 = arith.extf %604 : vector<8x128xbf16> to vector<8x128xf32>
    %606 = arith.truncf %587 : vector<8x32xf32> to vector<8x32xbf16>
    %cst_130 = arith.constant dense<0.000000e+00> : vector<8x128xf32>
    %607 = tpu.matmul %606, %2, %cst_130 {dimension_numbers = #tpu.dot_dimension_numbers<[1], [0], [0], [1], [0, 0, 1, 1], [], []>} : vector<8x32xbf16>, vector<32x128xbf16>, vector<8x128xf32> -> vector<8x128xf32>
    %608 = arith.addf %605, %607 : vector<8x128xf32>
    %609 = arith.index_cast %597 : i32 to index
    %c0_131 = arith.constant 0 : index
    %c128_132 = arith.constant 128 : index
    %610 = vector.load %arg18[%609, %c0_131, %c128_132] : memref<8x8x256xbf16, #tpu.memory_space<vmem>>, vector<1x8x128xbf16>
    %611 = vector.shape_cast %610 : vector<1x8x128xbf16> to vector<8x128xbf16>
    %612 = arith.extf %611 : vector<8x128xbf16> to vector<8x128xf32>
    %613 = arith.truncf %593 : vector<8x32xf32> to vector<8x32xbf16>
    %cst_133 = arith.constant dense<0.000000e+00> : vector<8x128xf32>
    %614 = tpu.matmul %613, %3, %cst_133 {dimension_numbers = #tpu.dot_dimension_numbers<[1], [0], [0], [1], [0, 0, 1, 1], [], []>} : vector<8x32xbf16>, vector<32x128xbf16>, vector<8x128xf32> -> vector<8x128xf32>
    %615 = arith.addf %612, %614 : vector<8x128xf32>
    %616 = vector.extract_strided_slice %608 {offsets = [0, 0], sizes = [8, 32], strides = [1, 1]} : vector<8x128xf32> to vector<8x32xf32>
    %617 = arith.negf %616 : vector<8x32xf32>
    %618 = math.exp %617 : vector<8x32xf32>
    %cst_134 = arith.constant 1.000000e+00 : f32
    %619 = vector.broadcast %cst_134 : f32 to vector<8x32xf32>
    %620 = arith.addf %619, %618 : vector<8x32xf32>
    %621 = arith.divf %619, %620 : vector<8x32xf32>
    %622 = vector.extract_strided_slice %608 {offsets = [0, 32], sizes = [8, 32], strides = [1, 1]} : vector<8x128xf32> to vector<8x32xf32>
    %623 = arith.negf %622 : vector<8x32xf32>
    %624 = math.exp %623 : vector<8x32xf32>
    %cst_135 = arith.constant 1.000000e+00 : f32
    %625 = vector.broadcast %cst_135 : f32 to vector<8x32xf32>
    %626 = arith.addf %625, %624 : vector<8x32xf32>
    %627 = arith.divf %625, %626 : vector<8x32xf32>
    %628 = vector.extract_strided_slice %608 {offsets = [0, 64], sizes = [8, 32], strides = [1, 1]} : vector<8x128xf32> to vector<8x32xf32>
    %629 = math.tanh %628 : vector<8x32xf32>
    %630 = vector.extract_strided_slice %608 {offsets = [0, 96], sizes = [8, 32], strides = [1, 1]} : vector<8x128xf32> to vector<8x32xf32>
    %631 = arith.negf %630 : vector<8x32xf32>
    %632 = math.exp %631 : vector<8x32xf32>
    %cst_136 = arith.constant 1.000000e+00 : f32
    %633 = vector.broadcast %cst_136 : f32 to vector<8x32xf32>
    %634 = arith.addf %633, %632 : vector<8x32xf32>
    %635 = arith.divf %633, %634 : vector<8x32xf32>
    %636 = vector.extract_strided_slice %615 {offsets = [0, 0], sizes = [8, 32], strides = [1, 1]} : vector<8x128xf32> to vector<8x32xf32>
    %637 = arith.negf %636 : vector<8x32xf32>
    %638 = math.exp %637 : vector<8x32xf32>
    %cst_137 = arith.constant 1.000000e+00 : f32
    %639 = vector.broadcast %cst_137 : f32 to vector<8x32xf32>
    %640 = arith.addf %639, %638 : vector<8x32xf32>
    %641 = arith.divf %639, %640 : vector<8x32xf32>
    %642 = vector.extract_strided_slice %615 {offsets = [0, 32], sizes = [8, 32], strides = [1, 1]} : vector<8x128xf32> to vector<8x32xf32>
    %643 = arith.negf %642 : vector<8x32xf32>
    %644 = math.exp %643 : vector<8x32xf32>
    %cst_138 = arith.constant 1.000000e+00 : f32
    %645 = vector.broadcast %cst_138 : f32 to vector<8x32xf32>
    %646 = arith.addf %645, %644 : vector<8x32xf32>
    %647 = arith.divf %645, %646 : vector<8x32xf32>
    %648 = vector.extract_strided_slice %615 {offsets = [0, 64], sizes = [8, 32], strides = [1, 1]} : vector<8x128xf32> to vector<8x32xf32>
    %649 = math.tanh %648 : vector<8x32xf32>
    %650 = vector.extract_strided_slice %615 {offsets = [0, 96], sizes = [8, 32], strides = [1, 1]} : vector<8x128xf32> to vector<8x32xf32>
    %651 = arith.negf %650 : vector<8x32xf32>
    %652 = math.exp %651 : vector<8x32xf32>
    %cst_139 = arith.constant 1.000000e+00 : f32
    %653 = vector.broadcast %cst_139 : f32 to vector<8x32xf32>
    %654 = arith.addf %653, %652 : vector<8x32xf32>
    %655 = arith.divf %653, %654 : vector<8x32xf32>
    %656 = arith.mulf %627, %590 : vector<8x32xf32>
    %657 = arith.mulf %621, %629 : vector<8x32xf32>
    %658 = arith.addf %656, %657 : vector<8x32xf32>
    %659 = math.tanh %658 : vector<8x32xf32>
    %660 = arith.mulf %635, %659 : vector<8x32xf32>
    %661 = arith.mulf %647, %596 : vector<8x32xf32>
    %662 = arith.mulf %641, %649 : vector<8x32xf32>
    %663 = arith.addf %661, %662 : vector<8x32xf32>
    %664 = math.tanh %663 : vector<8x32xf32>
    %665 = arith.mulf %655, %664 : vector<8x32xf32>
    %cst_140 = arith.constant 0.000000e+00 : f32
    %666 = vector.shape_cast %599 : vector<8x1xi1> to vector<8x1xi1>
    %667 = vector.broadcast %666 : vector<8x1xi1> to vector<8x32xi1>
    %668 = vector.broadcast %cst_140 : f32 to vector<8x32xf32>
    %669 = arith.select %667, %660, %668 : vector<8x32xi1>, vector<8x32xf32>
    %670 = arith.index_cast %c6_i32 : i32 to index
    %c0_141 = arith.constant 0 : index
    %c0_142 = arith.constant 0 : index
    %671 = vector.load %arg19[%670, %c0_141, %c0_142] : memref<8x8x64xf32, #tpu.memory_space<vmem>>, vector<1x8x32xf32>
    %672 = vector.shape_cast %671 : vector<1x8x32xf32> to vector<8x32xf32>
    %673 = vector.shape_cast %669 : vector<8x32xf32> to vector<1x8x32xf32>
    tpu.vector_store %arg19[%670, %c0_141, %c0_142], %673 {strides = array<i32>} : memref<8x8x64xf32, #tpu.memory_space<vmem>>, vector<1x8x32xf32>,
    %cst_143 = arith.constant 0.000000e+00 : f32
    %674 = vector.shape_cast %601 : vector<8x1xi1> to vector<8x1xi1>
    %675 = vector.broadcast %674 : vector<8x1xi1> to vector<8x32xi1>
    %676 = vector.broadcast %cst_143 : f32 to vector<8x32xf32>
    %677 = arith.select %675, %665, %676 : vector<8x32xi1>, vector<8x32xf32>
    %678 = arith.index_cast %597 : i32 to index
    %c0_144 = arith.constant 0 : index
    %c32_145 = arith.constant 32 : index
    %679 = vector.load %arg19[%678, %c0_144, %c32_145] : memref<8x8x64xf32, #tpu.memory_space<vmem>>, vector<1x8x32xf32>
    %680 = vector.shape_cast %679 : vector<1x8x32xf32> to vector<8x32xf32>
    %681 = vector.shape_cast %677 : vector<8x32xf32> to vector<1x8x32xf32>
    tpu.vector_store %arg19[%678, %c0_144, %c32_145], %681 {strides = array<i32>} : memref<8x8x64xf32, #tpu.memory_space<vmem>>, vector<1x8x32xf32>,
    %682 = vector.shape_cast %599 : vector<8x1xi1> to vector<8x1xi1>
    %683 = vector.broadcast %682 : vector<8x1xi1> to vector<8x32xi1>
    %684 = arith.select %683, %660, %587 : vector<8x32xi1>, vector<8x32xf32>
    %685 = vector.shape_cast %599 : vector<8x1xi1> to vector<8x1xi1>
    %686 = vector.broadcast %685 : vector<8x1xi1> to vector<8x32xi1>
    %687 = arith.select %686, %658, %590 : vector<8x32xi1>, vector<8x32xf32>
    %688 = vector.shape_cast %601 : vector<8x1xi1> to vector<8x1xi1>
    %689 = vector.broadcast %688 : vector<8x1xi1> to vector<8x32xi1>
    %690 = arith.select %689, %665, %593 : vector<8x32xi1>, vector<8x32xf32>
    %691 = vector.shape_cast %601 : vector<8x1xi1> to vector<8x1xi1>
    %692 = vector.broadcast %691 : vector<8x1xi1> to vector<8x32xi1>
    %693 = arith.select %692, %663, %596 : vector<8x32xi1>, vector<8x32xf32>
    %c7_i32_146 = arith.constant 7 : i32
    %c7_i32_147 = arith.constant 7 : i32
    %694 = arith.subi %c7_i32_147, %c7_i32_146 : i32
    %695 = vector.broadcast %c7_i32_146 : i32 to vector<8x1xi32>
    %696 = arith.cmpi slt, %695, %0 : vector<8x1xi32>
    %697 = vector.broadcast %694 : i32 to vector<8x1xi32>
    %698 = arith.cmpi slt, %697, %0 : vector<8x1xi32>
    %699 = arith.index_cast %c7_i32_146 : i32 to index
    %c0_148 = arith.constant 0 : index
    %c0_149 = arith.constant 0 : index
    %700 = vector.load %arg18[%699, %c0_148, %c0_149] : memref<8x8x256xbf16, #tpu.memory_space<vmem>>, vector<1x8x128xbf16>
    %701 = vector.shape_cast %700 : vector<1x8x128xbf16> to vector<8x128xbf16>
    %702 = arith.extf %701 : vector<8x128xbf16> to vector<8x128xf32>
    %703 = arith.truncf %684 : vector<8x32xf32> to vector<8x32xbf16>
    %cst_150 = arith.constant dense<0.000000e+00> : vector<8x128xf32>
    %704 = tpu.matmul %703, %2, %cst_150 {dimension_numbers = #tpu.dot_dimension_numbers<[1], [0], [0], [1], [0, 0, 1, 1], [], []>} : vector<8x32xbf16>, vector<32x128xbf16>, vector<8x128xf32> -> vector<8x128xf32>
    %705 = arith.addf %702, %704 : vector<8x128xf32>
    %706 = arith.index_cast %694 : i32 to index
    %c0_151 = arith.constant 0 : index
    %c128_152 = arith.constant 128 : index
    %707 = vector.load %arg18[%706, %c0_151, %c128_152] : memref<8x8x256xbf16, #tpu.memory_space<vmem>>, vector<1x8x128xbf16>
    %708 = vector.shape_cast %707 : vector<1x8x128xbf16> to vector<8x128xbf16>
    %709 = arith.extf %708 : vector<8x128xbf16> to vector<8x128xf32>
    %710 = arith.truncf %690 : vector<8x32xf32> to vector<8x32xbf16>
    %cst_153 = arith.constant dense<0.000000e+00> : vector<8x128xf32>
    %711 = tpu.matmul %710, %3, %cst_153 {dimension_numbers = #tpu.dot_dimension_numbers<[1], [0], [0], [1], [0, 0, 1, 1], [], []>} : vector<8x32xbf16>, vector<32x128xbf16>, vector<8x128xf32> -> vector<8x128xf32>
    %712 = arith.addf %709, %711 : vector<8x128xf32>
    %713 = vector.extract_strided_slice %705 {offsets = [0, 0], sizes = [8, 32], strides = [1, 1]} : vector<8x128xf32> to vector<8x32xf32>
    %714 = arith.negf %713 : vector<8x32xf32>
    %715 = math.exp %714 : vector<8x32xf32>
    %cst_154 = arith.constant 1.000000e+00 : f32
    %716 = vector.broadcast %cst_154 : f32 to vector<8x32xf32>
    %717 = arith.addf %716, %715 : vector<8x32xf32>
    %718 = arith.divf %716, %717 : vector<8x32xf32>
    %719 = vector.extract_strided_slice %705 {offsets = [0, 32], sizes = [8, 32], strides = [1, 1]} : vector<8x128xf32> to vector<8x32xf32>
    %720 = arith.negf %719 : vector<8x32xf32>
    %721 = math.exp %720 : vector<8x32xf32>
    %cst_155 = arith.constant 1.000000e+00 : f32
    %722 = vector.broadcast %cst_155 : f32 to vector<8x32xf32>
    %723 = arith.addf %722, %721 : vector<8x32xf32>
    %724 = arith.divf %722, %723 : vector<8x32xf32>
    %725 = vector.extract_strided_slice %705 {offsets = [0, 64], sizes = [8, 32], strides = [1, 1]} : vector<8x128xf32> to vector<8x32xf32>
    %726 = math.tanh %725 : vector<8x32xf32>
    %727 = vector.extract_strided_slice %705 {offsets = [0, 96], sizes = [8, 32], strides = [1, 1]} : vector<8x128xf32> to vector<8x32xf32>
    %728 = arith.negf %727 : vector<8x32xf32>
    %729 = math.exp %728 : vector<8x32xf32>
    %cst_156 = arith.constant 1.000000e+00 : f32
    %730 = vector.broadcast %cst_156 : f32 to vector<8x32xf32>
    %731 = arith.addf %730, %729 : vector<8x32xf32>
    %732 = arith.divf %730, %731 : vector<8x32xf32>
    %733 = vector.extract_strided_slice %712 {offsets = [0, 0], sizes = [8, 32], strides = [1, 1]} : vector<8x128xf32> to vector<8x32xf32>
    %734 = arith.negf %733 : vector<8x32xf32>
    %735 = math.exp %734 : vector<8x32xf32>
    %cst_157 = arith.constant 1.000000e+00 : f32
    %736 = vector.broadcast %cst_157 : f32 to vector<8x32xf32>
    %737 = arith.addf %736, %735 : vector<8x32xf32>
    %738 = arith.divf %736, %737 : vector<8x32xf32>
    %739 = vector.extract_strided_slice %712 {offsets = [0, 32], sizes = [8, 32], strides = [1, 1]} : vector<8x128xf32> to vector<8x32xf32>
    %740 = arith.negf %739 : vector<8x32xf32>
    %741 = math.exp %740 : vector<8x32xf32>
    %cst_158 = arith.constant 1.000000e+00 : f32
    %742 = vector.broadcast %cst_158 : f32 to vector<8x32xf32>
    %743 = arith.addf %742, %741 : vector<8x32xf32>
    %744 = arith.divf %742, %743 : vector<8x32xf32>
    %745 = vector.extract_strided_slice %712 {offsets = [0, 64], sizes = [8, 32], strides = [1, 1]} : vector<8x128xf32> to vector<8x32xf32>
    %746 = math.tanh %745 : vector<8x32xf32>
    %747 = vector.extract_strided_slice %712 {offsets = [0, 96], sizes = [8, 32], strides = [1, 1]} : vector<8x128xf32> to vector<8x32xf32>
    %748 = arith.negf %747 : vector<8x32xf32>
    %749 = math.exp %748 : vector<8x32xf32>
    %cst_159 = arith.constant 1.000000e+00 : f32
    %750 = vector.broadcast %cst_159 : f32 to vector<8x32xf32>
    %751 = arith.addf %750, %749 : vector<8x32xf32>
    %752 = arith.divf %750, %751 : vector<8x32xf32>
    %753 = arith.mulf %724, %687 : vector<8x32xf32>
    %754 = arith.mulf %718, %726 : vector<8x32xf32>
    %755 = arith.addf %753, %754 : vector<8x32xf32>
    %756 = math.tanh %755 : vector<8x32xf32>
    %757 = arith.mulf %732, %756 : vector<8x32xf32>
    %758 = arith.mulf %744, %693 : vector<8x32xf32>
    %759 = arith.mulf %738, %746 : vector<8x32xf32>
    %760 = arith.addf %758, %759 : vector<8x32xf32>
    %761 = math.tanh %760 : vector<8x32xf32>
    %762 = arith.mulf %752, %761 : vector<8x32xf32>
    %cst_160 = arith.constant 0.000000e+00 : f32
    %763 = vector.shape_cast %696 : vector<8x1xi1> to vector<8x1xi1>
    %764 = vector.broadcast %763 : vector<8x1xi1> to vector<8x32xi1>
    %765 = vector.broadcast %cst_160 : f32 to vector<8x32xf32>
    %766 = arith.select %764, %757, %765 : vector<8x32xi1>, vector<8x32xf32>
    %767 = arith.index_cast %c7_i32_146 : i32 to index
    %c0_161 = arith.constant 0 : index
    %c0_162 = arith.constant 0 : index
    %768 = vector.load %arg19[%767, %c0_161, %c0_162] : memref<8x8x64xf32, #tpu.memory_space<vmem>>, vector<1x8x32xf32>
    %769 = vector.shape_cast %768 : vector<1x8x32xf32> to vector<8x32xf32>
    %770 = vector.shape_cast %766 : vector<8x32xf32> to vector<1x8x32xf32>
    tpu.vector_store %arg19[%767, %c0_161, %c0_162], %770 {strides = array<i32>} : memref<8x8x64xf32, #tpu.memory_space<vmem>>, vector<1x8x32xf32>,
    %cst_163 = arith.constant 0.000000e+00 : f32
    %771 = vector.shape_cast %698 : vector<8x1xi1> to vector<8x1xi1>
    %772 = vector.broadcast %771 : vector<8x1xi1> to vector<8x32xi1>
    %773 = vector.broadcast %cst_163 : f32 to vector<8x32xf32>
    %774 = arith.select %772, %762, %773 : vector<8x32xi1>, vector<8x32xf32>
    %775 = arith.index_cast %694 : i32 to index
    %c0_164 = arith.constant 0 : index
    %c32_165 = arith.constant 32 : index
    %776 = vector.load %arg19[%775, %c0_164, %c32_165] : memref<8x8x64xf32, #tpu.memory_space<vmem>>, vector<1x8x32xf32>
    %777 = vector.shape_cast %776 : vector<1x8x32xf32> to vector<8x32xf32>
    %778 = vector.shape_cast %774 : vector<8x32xf32> to vector<1x8x32xf32>
    tpu.vector_store %arg19[%775, %c0_164, %c32_165], %778 {strides = array<i32>} : memref<8x8x64xf32, #tpu.memory_space<vmem>>, vector<1x8x32xf32>,
    %779 = vector.shape_cast %696 : vector<8x1xi1> to vector<8x1xi1>
    %780 = vector.broadcast %779 : vector<8x1xi1> to vector<8x32xi1>
    %781 = arith.select %780, %757, %684 : vector<8x32xi1>, vector<8x32xf32>
    %782 = vector.shape_cast %696 : vector<8x1xi1> to vector<8x1xi1>
    %783 = vector.broadcast %782 : vector<8x1xi1> to vector<8x32xi1>
    %784 = arith.select %783, %755, %687 : vector<8x32xi1>, vector<8x32xf32>
    %785 = vector.shape_cast %698 : vector<8x1xi1> to vector<8x1xi1>
    %786 = vector.broadcast %785 : vector<8x1xi1> to vector<8x32xi1>
    %787 = arith.select %786, %762, %690 : vector<8x32xi1>, vector<8x32xf32>
    %788 = vector.shape_cast %698 : vector<8x1xi1> to vector<8x1xi1>
    %789 = vector.broadcast %788 : vector<8x1xi1> to vector<8x32xi1>
    %790 = arith.select %789, %760, %693 : vector<8x32xi1>, vector<8x32xf32>
    %c8_i32 = arith.constant 8 : i32
    %c0_166 = arith.constant 0 : index
    %c0_167 = arith.constant 0 : index
    %791 = vector.load %arg7[%c0_166, %c0_167] : memref<64x256xbf16, #tpu.memory_space<vmem>>, vector<64x256xbf16>
    %c0_168 = arith.constant 0 : index
    %c0_169 = arith.constant 0 : index
    %792 = vector.load %arg8[%c0_168, %c0_169] : memref<32x128xbf16, #tpu.memory_space<vmem>>, vector<32x128xbf16>
    %c0_170 = arith.constant 0 : index
    %c0_171 = arith.constant 0 : index
    %793 = vector.load %arg9[%c0_170, %c0_171] : memref<32x128xbf16, #tpu.memory_space<vmem>>, vector<32x128xbf16>
    %c0_172 = arith.constant 0 : index
    %c0_173 = arith.constant 0 : index
    %794 = vector.load %arg10[%c0_172, %c0_173] : memref<1x256xf32, #tpu.memory_space<vmem>>, vector<1x256xf32>
    %c0_174 = arith.constant 0 : index
    %c0_175 = arith.constant 0 : index
    %c0_176 = arith.constant 0 : index
    %795 = vector.load %arg19[%c0_174, %c0_175, %c0_176] : memref<8x8x64xf32, #tpu.memory_space<vmem>>, vector<8x8x64xf32>
    %796 = vector.shape_cast %795 : vector<8x8x64xf32> to vector<64x64xf32>
    %797 = arith.truncf %796 : vector<64x64xf32> to vector<64x64xbf16>
    %cst_177 = arith.constant dense<0.000000e+00> : vector<64x256xf32>
    %798 = tpu.matmul %797, %791, %cst_177 {dimension_numbers = #tpu.dot_dimension_numbers<[1], [0], [0], [1], [0, 0, 1, 1], [], []>} : vector<64x64xbf16>, vector<64x256xbf16>, vector<64x256xf32> -> vector<64x256xf32>
    %799 = vector.broadcast %794 : vector<1x256xf32> to vector<64x256xf32>
    %800 = arith.addf %798, %799 : vector<64x256xf32>
    %801 = arith.truncf %800 : vector<64x256xf32> to vector<64x256xbf16>
    %802 = vector.shape_cast %801 : vector<64x256xbf16> to vector<8x8x256xbf16>
    %c0_178 = arith.constant 0 : index
    %c0_179 = arith.constant 0 : index
    %c0_180 = arith.constant 0 : index
    %803 = vector.load %arg18[%c0_178, %c0_179, %c0_180] : memref<8x8x256xbf16, #tpu.memory_space<vmem>>, vector<8x8x256xbf16>
    tpu.vector_store %arg18[%c0_178, %c0_179, %c0_180], %802 {strides = array<i32>} : memref<8x8x256xbf16, #tpu.memory_space<vmem>>, vector<8x8x256xbf16>,
    %cst_181 = arith.constant 0.000000e+00 : f32
    %804 = vector.broadcast %cst_181 : f32 to vector<8x32xf32>
    %c0_i32_182 = arith.constant 0 : i32
    %c7_i32_183 = arith.constant 7 : i32
    %805 = arith.subi %c7_i32_183, %c0_i32_182 : i32
    %806 = vector.broadcast %c0_i32_182 : i32 to vector<8x1xi32>
    %807 = arith.cmpi slt, %806, %0 : vector<8x1xi32>
    %808 = vector.broadcast %805 : i32 to vector<8x1xi32>
    %809 = arith.cmpi slt, %808, %0 : vector<8x1xi32>
    %810 = arith.index_cast %c0_i32_182 : i32 to index
    %c0_184 = arith.constant 0 : index
    %c0_185 = arith.constant 0 : index
    %811 = vector.load %arg18[%810, %c0_184, %c0_185] : memref<8x8x256xbf16, #tpu.memory_space<vmem>>, vector<1x8x128xbf16>
    %812 = vector.shape_cast %811 : vector<1x8x128xbf16> to vector<8x128xbf16>
    %813 = arith.extf %812 : vector<8x128xbf16> to vector<8x128xf32>
    %814 = arith.truncf %804 : vector<8x32xf32> to vector<8x32xbf16>
    %cst_186 = arith.constant dense<0.000000e+00> : vector<8x128xf32>
    %815 = tpu.matmul %814, %792, %cst_186 {dimension_numbers = #tpu.dot_dimension_numbers<[1], [0], [0], [1], [0, 0, 1, 1], [], []>} : vector<8x32xbf16>, vector<32x128xbf16>, vector<8x128xf32> -> vector<8x128xf32>
    %816 = arith.addf %813, %815 : vector<8x128xf32>
    %817 = arith.index_cast %805 : i32 to index
    %c0_187 = arith.constant 0 : index
    %c128_188 = arith.constant 128 : index
    %818 = vector.load %arg18[%817, %c0_187, %c128_188] : memref<8x8x256xbf16, #tpu.memory_space<vmem>>, vector<1x8x128xbf16>
    %819 = vector.shape_cast %818 : vector<1x8x128xbf16> to vector<8x128xbf16>
    %820 = arith.extf %819 : vector<8x128xbf16> to vector<8x128xf32>
    %821 = arith.truncf %804 : vector<8x32xf32> to vector<8x32xbf16>
    %cst_189 = arith.constant dense<0.000000e+00> : vector<8x128xf32>
    %822 = tpu.matmul %821, %793, %cst_189 {dimension_numbers = #tpu.dot_dimension_numbers<[1], [0], [0], [1], [0, 0, 1, 1], [], []>} : vector<8x32xbf16>, vector<32x128xbf16>, vector<8x128xf32> -> vector<8x128xf32>
    %823 = arith.addf %820, %822 : vector<8x128xf32>
    %824 = vector.extract_strided_slice %816 {offsets = [0, 0], sizes = [8, 32], strides = [1, 1]} : vector<8x128xf32> to vector<8x32xf32>
    %825 = arith.negf %824 : vector<8x32xf32>
    %826 = math.exp %825 : vector<8x32xf32>
    %cst_190 = arith.constant 1.000000e+00 : f32
    %827 = vector.broadcast %cst_190 : f32 to vector<8x32xf32>
    %828 = arith.addf %827, %826 : vector<8x32xf32>
    %829 = arith.divf %827, %828 : vector<8x32xf32>
    %830 = vector.extract_strided_slice %816 {offsets = [0, 32], sizes = [8, 32], strides = [1, 1]} : vector<8x128xf32> to vector<8x32xf32>
    %831 = arith.negf %830 : vector<8x32xf32>
    %832 = math.exp %831 : vector<8x32xf32>
    %cst_191 = arith.constant 1.000000e+00 : f32
    %833 = vector.broadcast %cst_191 : f32 to vector<8x32xf32>
    %834 = arith.addf %833, %832 : vector<8x32xf32>
    %835 = arith.divf %833, %834 : vector<8x32xf32>
    %836 = vector.extract_strided_slice %816 {offsets = [0, 64], sizes = [8, 32], strides = [1, 1]} : vector<8x128xf32> to vector<8x32xf32>
    %837 = math.tanh %836 : vector<8x32xf32>
    %838 = vector.extract_strided_slice %816 {offsets = [0, 96], sizes = [8, 32], strides = [1, 1]} : vector<8x128xf32> to vector<8x32xf32>
    %839 = arith.negf %838 : vector<8x32xf32>
    %840 = math.exp %839 : vector<8x32xf32>
    %cst_192 = arith.constant 1.000000e+00 : f32
    %841 = vector.broadcast %cst_192 : f32 to vector<8x32xf32>
    %842 = arith.addf %841, %840 : vector<8x32xf32>
    %843 = arith.divf %841, %842 : vector<8x32xf32>
    %844 = vector.extract_strided_slice %823 {offsets = [0, 0], sizes = [8, 32], strides = [1, 1]} : vector<8x128xf32> to vector<8x32xf32>
    %845 = arith.negf %844 : vector<8x32xf32>
    %846 = math.exp %845 : vector<8x32xf32>
    %cst_193 = arith.constant 1.000000e+00 : f32
    %847 = vector.broadcast %cst_193 : f32 to vector<8x32xf32>
    %848 = arith.addf %847, %846 : vector<8x32xf32>
    %849 = arith.divf %847, %848 : vector<8x32xf32>
    %850 = vector.extract_strided_slice %823 {offsets = [0, 32], sizes = [8, 32], strides = [1, 1]} : vector<8x128xf32> to vector<8x32xf32>
    %851 = arith.negf %850 : vector<8x32xf32>
    %852 = math.exp %851 : vector<8x32xf32>
    %cst_194 = arith.constant 1.000000e+00 : f32
    %853 = vector.broadcast %cst_194 : f32 to vector<8x32xf32>
    %854 = arith.addf %853, %852 : vector<8x32xf32>
    %855 = arith.divf %853, %854 : vector<8x32xf32>
    %856 = vector.extract_strided_slice %823 {offsets = [0, 64], sizes = [8, 32], strides = [1, 1]} : vector<8x128xf32> to vector<8x32xf32>
    %857 = math.tanh %856 : vector<8x32xf32>
    %858 = vector.extract_strided_slice %823 {offsets = [0, 96], sizes = [8, 32], strides = [1, 1]} : vector<8x128xf32> to vector<8x32xf32>
    %859 = arith.negf %858 : vector<8x32xf32>
    %860 = math.exp %859 : vector<8x32xf32>
    %cst_195 = arith.constant 1.000000e+00 : f32
    %861 = vector.broadcast %cst_195 : f32 to vector<8x32xf32>
    %862 = arith.addf %861, %860 : vector<8x32xf32>
    %863 = arith.divf %861, %862 : vector<8x32xf32>
    %864 = arith.mulf %835, %804 : vector<8x32xf32>
    %865 = arith.mulf %829, %837 : vector<8x32xf32>
    %866 = arith.addf %864, %865 : vector<8x32xf32>
    %867 = math.tanh %866 : vector<8x32xf32>
    %868 = arith.mulf %843, %867 : vector<8x32xf32>
    %869 = arith.mulf %855, %804 : vector<8x32xf32>
    %870 = arith.mulf %849, %857 : vector<8x32xf32>
    %871 = arith.addf %869, %870 : vector<8x32xf32>
    %872 = math.tanh %871 : vector<8x32xf32>
    %873 = arith.mulf %863, %872 : vector<8x32xf32>
    %874 = vector.shape_cast %807 : vector<8x1xi1> to vector<8x1xi1>
    %875 = vector.broadcast %874 : vector<8x1xi1> to vector<8x32xi1>
    %876 = arith.select %875, %868, %804 : vector<8x32xi1>, vector<8x32xf32>
    %877 = vector.shape_cast %807 : vector<8x1xi1> to vector<8x1xi1>
    %878 = vector.broadcast %877 : vector<8x1xi1> to vector<8x32xi1>
    %879 = arith.select %878, %866, %804 : vector<8x32xi1>, vector<8x32xf32>
    %880 = vector.shape_cast %809 : vector<8x1xi1> to vector<8x1xi1>
    %881 = vector.broadcast %880 : vector<8x1xi1> to vector<8x32xi1>
    %882 = arith.select %881, %873, %804 : vector<8x32xi1>, vector<8x32xf32>
    %883 = vector.shape_cast %809 : vector<8x1xi1> to vector<8x1xi1>
    %884 = vector.broadcast %883 : vector<8x1xi1> to vector<8x32xi1>
    %885 = arith.select %884, %871, %804 : vector<8x32xi1>, vector<8x32xf32>
    %c1_i32_196 = arith.constant 1 : i32
    %c7_i32_197 = arith.constant 7 : i32
    %886 = arith.subi %c7_i32_197, %c1_i32_196 : i32
    %887 = vector.broadcast %c1_i32_196 : i32 to vector<8x1xi32>
    %888 = arith.cmpi slt, %887, %0 : vector<8x1xi32>
    %889 = vector.broadcast %886 : i32 to vector<8x1xi32>
    %890 = arith.cmpi slt, %889, %0 : vector<8x1xi32>
    %891 = arith.index_cast %c1_i32_196 : i32 to index
    %c0_198 = arith.constant 0 : index
    %c0_199 = arith.constant 0 : index
    %892 = vector.load %arg18[%891, %c0_198, %c0_199] : memref<8x8x256xbf16, #tpu.memory_space<vmem>>, vector<1x8x128xbf16>
    %893 = vector.shape_cast %892 : vector<1x8x128xbf16> to vector<8x128xbf16>
    %894 = arith.extf %893 : vector<8x128xbf16> to vector<8x128xf32>
    %895 = arith.truncf %876 : vector<8x32xf32> to vector<8x32xbf16>
    %cst_200 = arith.constant dense<0.000000e+00> : vector<8x128xf32>
    %896 = tpu.matmul %895, %792, %cst_200 {dimension_numbers = #tpu.dot_dimension_numbers<[1], [0], [0], [1], [0, 0, 1, 1], [], []>} : vector<8x32xbf16>, vector<32x128xbf16>, vector<8x128xf32> -> vector<8x128xf32>
    %897 = arith.addf %894, %896 : vector<8x128xf32>
    %898 = arith.index_cast %886 : i32 to index
    %c0_201 = arith.constant 0 : index
    %c128_202 = arith.constant 128 : index
    %899 = vector.load %arg18[%898, %c0_201, %c128_202] : memref<8x8x256xbf16, #tpu.memory_space<vmem>>, vector<1x8x128xbf16>
    %900 = vector.shape_cast %899 : vector<1x8x128xbf16> to vector<8x128xbf16>
    %901 = arith.extf %900 : vector<8x128xbf16> to vector<8x128xf32>
    %902 = arith.truncf %882 : vector<8x32xf32> to vector<8x32xbf16>
    %cst_203 = arith.constant dense<0.000000e+00> : vector<8x128xf32>
    %903 = tpu.matmul %902, %793, %cst_203 {dimension_numbers = #tpu.dot_dimension_numbers<[1], [0], [0], [1], [0, 0, 1, 1], [], []>} : vector<8x32xbf16>, vector<32x128xbf16>, vector<8x128xf32> -> vector<8x128xf32>
    %904 = arith.addf %901, %903 : vector<8x128xf32>
    %905 = vector.extract_strided_slice %897 {offsets = [0, 0], sizes = [8, 32], strides = [1, 1]} : vector<8x128xf32> to vector<8x32xf32>
    %906 = arith.negf %905 : vector<8x32xf32>
    %907 = math.exp %906 : vector<8x32xf32>
    %cst_204 = arith.constant 1.000000e+00 : f32
    %908 = vector.broadcast %cst_204 : f32 to vector<8x32xf32>
    %909 = arith.addf %908, %907 : vector<8x32xf32>
    %910 = arith.divf %908, %909 : vector<8x32xf32>
    %911 = vector.extract_strided_slice %897 {offsets = [0, 32], sizes = [8, 32], strides = [1, 1]} : vector<8x128xf32> to vector<8x32xf32>
    %912 = arith.negf %911 : vector<8x32xf32>
    %913 = math.exp %912 : vector<8x32xf32>
    %cst_205 = arith.constant 1.000000e+00 : f32
    %914 = vector.broadcast %cst_205 : f32 to vector<8x32xf32>
    %915 = arith.addf %914, %913 : vector<8x32xf32>
    %916 = arith.divf %914, %915 : vector<8x32xf32>
    %917 = vector.extract_strided_slice %897 {offsets = [0, 64], sizes = [8, 32], strides = [1, 1]} : vector<8x128xf32> to vector<8x32xf32>
    %918 = math.tanh %917 : vector<8x32xf32>
    %919 = vector.extract_strided_slice %897 {offsets = [0, 96], sizes = [8, 32], strides = [1, 1]} : vector<8x128xf32> to vector<8x32xf32>
    %920 = arith.negf %919 : vector<8x32xf32>
    %921 = math.exp %920 : vector<8x32xf32>
    %cst_206 = arith.constant 1.000000e+00 : f32
    %922 = vector.broadcast %cst_206 : f32 to vector<8x32xf32>
    %923 = arith.addf %922, %921 : vector<8x32xf32>
    %924 = arith.divf %922, %923 : vector<8x32xf32>
    %925 = vector.extract_strided_slice %904 {offsets = [0, 0], sizes = [8, 32], strides = [1, 1]} : vector<8x128xf32> to vector<8x32xf32>
    %926 = arith.negf %925 : vector<8x32xf32>
    %927 = math.exp %926 : vector<8x32xf32>
    %cst_207 = arith.constant 1.000000e+00 : f32
    %928 = vector.broadcast %cst_207 : f32 to vector<8x32xf32>
    %929 = arith.addf %928, %927 : vector<8x32xf32>
    %930 = arith.divf %928, %929 : vector<8x32xf32>
    %931 = vector.extract_strided_slice %904 {offsets = [0, 32], sizes = [8, 32], strides = [1, 1]} : vector<8x128xf32> to vector<8x32xf32>
    %932 = arith.negf %931 : vector<8x32xf32>
    %933 = math.exp %932 : vector<8x32xf32>
    %cst_208 = arith.constant 1.000000e+00 : f32
    %934 = vector.broadcast %cst_208 : f32 to vector<8x32xf32>
    %935 = arith.addf %934, %933 : vector<8x32xf32>
    %936 = arith.divf %934, %935 : vector<8x32xf32>
    %937 = vector.extract_strided_slice %904 {offsets = [0, 64], sizes = [8, 32], strides = [1, 1]} : vector<8x128xf32> to vector<8x32xf32>
    %938 = math.tanh %937 : vector<8x32xf32>
    %939 = vector.extract_strided_slice %904 {offsets = [0, 96], sizes = [8, 32], strides = [1, 1]} : vector<8x128xf32> to vector<8x32xf32>
    %940 = arith.negf %939 : vector<8x32xf32>
    %941 = math.exp %940 : vector<8x32xf32>
    %cst_209 = arith.constant 1.000000e+00 : f32
    %942 = vector.broadcast %cst_209 : f32 to vector<8x32xf32>
    %943 = arith.addf %942, %941 : vector<8x32xf32>
    %944 = arith.divf %942, %943 : vector<8x32xf32>
    %945 = arith.mulf %916, %879 : vector<8x32xf32>
    %946 = arith.mulf %910, %918 : vector<8x32xf32>
    %947 = arith.addf %945, %946 : vector<8x32xf32>
    %948 = math.tanh %947 : vector<8x32xf32>
    %949 = arith.mulf %924, %948 : vector<8x32xf32>
    %950 = arith.mulf %936, %885 : vector<8x32xf32>
    %951 = arith.mulf %930, %938 : vector<8x32xf32>
    %952 = arith.addf %950, %951 : vector<8x32xf32>
    %953 = math.tanh %952 : vector<8x32xf32>
    %954 = arith.mulf %944, %953 : vector<8x32xf32>
    %955 = vector.shape_cast %888 : vector<8x1xi1> to vector<8x1xi1>
    %956 = vector.broadcast %955 : vector<8x1xi1> to vector<8x32xi1>
    %957 = arith.select %956, %949, %876 : vector<8x32xi1>, vector<8x32xf32>
    %958 = vector.shape_cast %888 : vector<8x1xi1> to vector<8x1xi1>
    %959 = vector.broadcast %958 : vector<8x1xi1> to vector<8x32xi1>
    %960 = arith.select %959, %947, %879 : vector<8x32xi1>, vector<8x32xf32>
    %961 = vector.shape_cast %890 : vector<8x1xi1> to vector<8x1xi1>
    %962 = vector.broadcast %961 : vector<8x1xi1> to vector<8x32xi1>
    %963 = arith.select %962, %954, %882 : vector<8x32xi1>, vector<8x32xf32>
    %964 = vector.shape_cast %890 : vector<8x1xi1> to vector<8x1xi1>
    %965 = vector.broadcast %964 : vector<8x1xi1> to vector<8x32xi1>
    %966 = arith.select %965, %952, %885 : vector<8x32xi1>, vector<8x32xf32>
    %c2_i32_210 = arith.constant 2 : i32
    %c7_i32_211 = arith.constant 7 : i32
    %967 = arith.subi %c7_i32_211, %c2_i32_210 : i32
    %968 = vector.broadcast %c2_i32_210 : i32 to vector<8x1xi32>
    %969 = arith.cmpi slt, %968, %0 : vector<8x1xi32>
    %970 = vector.broadcast %967 : i32 to vector<8x1xi32>
    %971 = arith.cmpi slt, %970, %0 : vector<8x1xi32>
    %972 = arith.index_cast %c2_i32_210 : i32 to index
    %c0_212 = arith.constant 0 : index
    %c0_213 = arith.constant 0 : index
    %973 = vector.load %arg18[%972, %c0_212, %c0_213] : memref<8x8x256xbf16, #tpu.memory_space<vmem>>, vector<1x8x128xbf16>
    %974 = vector.shape_cast %973 : vector<1x8x128xbf16> to vector<8x128xbf16>
    %975 = arith.extf %974 : vector<8x128xbf16> to vector<8x128xf32>
    %976 = arith.truncf %957 : vector<8x32xf32> to vector<8x32xbf16>
    %cst_214 = arith.constant dense<0.000000e+00> : vector<8x128xf32>
    %977 = tpu.matmul %976, %792, %cst_214 {dimension_numbers = #tpu.dot_dimension_numbers<[1], [0], [0], [1], [0, 0, 1, 1], [], []>} : vector<8x32xbf16>, vector<32x128xbf16>, vector<8x128xf32> -> vector<8x128xf32>
    %978 = arith.addf %975, %977 : vector<8x128xf32>
    %979 = arith.index_cast %967 : i32 to index
    %c0_215 = arith.constant 0 : index
    %c128_216 = arith.constant 128 : index
    %980 = vector.load %arg18[%979, %c0_215, %c128_216] : memref<8x8x256xbf16, #tpu.memory_space<vmem>>, vector<1x8x128xbf16>
    %981 = vector.shape_cast %980 : vector<1x8x128xbf16> to vector<8x128xbf16>
    %982 = arith.extf %981 : vector<8x128xbf16> to vector<8x128xf32>
    %983 = arith.truncf %963 : vector<8x32xf32> to vector<8x32xbf16>
    %cst_217 = arith.constant dense<0.000000e+00> : vector<8x128xf32>
    %984 = tpu.matmul %983, %793, %cst_217 {dimension_numbers = #tpu.dot_dimension_numbers<[1], [0], [0], [1], [0, 0, 1, 1], [], []>} : vector<8x32xbf16>, vector<32x128xbf16>, vector<8x128xf32> -> vector<8x128xf32>
    %985 = arith.addf %982, %984 : vector<8x128xf32>
    %986 = vector.extract_strided_slice %978 {offsets = [0, 0], sizes = [8, 32], strides = [1, 1]} : vector<8x128xf32> to vector<8x32xf32>
    %987 = arith.negf %986 : vector<8x32xf32>
    %988 = math.exp %987 : vector<8x32xf32>
    %cst_218 = arith.constant 1.000000e+00 : f32
    %989 = vector.broadcast %cst_218 : f32 to vector<8x32xf32>
    %990 = arith.addf %989, %988 : vector<8x32xf32>
    %991 = arith.divf %989, %990 : vector<8x32xf32>
    %992 = vector.extract_strided_slice %978 {offsets = [0, 32], sizes = [8, 32], strides = [1, 1]} : vector<8x128xf32> to vector<8x32xf32>
    %993 = arith.negf %992 : vector<8x32xf32>
    %994 = math.exp %993 : vector<8x32xf32>
    %cst_219 = arith.constant 1.000000e+00 : f32
    %995 = vector.broadcast %cst_219 : f32 to vector<8x32xf32>
    %996 = arith.addf %995, %994 : vector<8x32xf32>
    %997 = arith.divf %995, %996 : vector<8x32xf32>
    %998 = vector.extract_strided_slice %978 {offsets = [0, 64], sizes = [8, 32], strides = [1, 1]} : vector<8x128xf32> to vector<8x32xf32>
    %999 = math.tanh %998 : vector<8x32xf32>
    %1000 = vector.extract_strided_slice %978 {offsets = [0, 96], sizes = [8, 32], strides = [1, 1]} : vector<8x128xf32> to vector<8x32xf32>
    %1001 = arith.negf %1000 : vector<8x32xf32>
    %1002 = math.exp %1001 : vector<8x32xf32>
    %cst_220 = arith.constant 1.000000e+00 : f32
    %1003 = vector.broadcast %cst_220 : f32 to vector<8x32xf32>
    %1004 = arith.addf %1003, %1002 : vector<8x32xf32>
    %1005 = arith.divf %1003, %1004 : vector<8x32xf32>
    %1006 = vector.extract_strided_slice %985 {offsets = [0, 0], sizes = [8, 32], strides = [1, 1]} : vector<8x128xf32> to vector<8x32xf32>
    %1007 = arith.negf %1006 : vector<8x32xf32>
    %1008 = math.exp %1007 : vector<8x32xf32>
    %cst_221 = arith.constant 1.000000e+00 : f32
    %1009 = vector.broadcast %cst_221 : f32 to vector<8x32xf32>
    %1010 = arith.addf %1009, %1008 : vector<8x32xf32>
    %1011 = arith.divf %1009, %1010 : vector<8x32xf32>
    %1012 = vector.extract_strided_slice %985 {offsets = [0, 32], sizes = [8, 32], strides = [1, 1]} : vector<8x128xf32> to vector<8x32xf32>
    %1013 = arith.negf %1012 : vector<8x32xf32>
    %1014 = math.exp %1013 : vector<8x32xf32>
    %cst_222 = arith.constant 1.000000e+00 : f32
    %1015 = vector.broadcast %cst_222 : f32 to vector<8x32xf32>
    %1016 = arith.addf %1015, %1014 : vector<8x32xf32>
    %1017 = arith.divf %1015, %1016 : vector<8x32xf32>
    %1018 = vector.extract_strided_slice %985 {offsets = [0, 64], sizes = [8, 32], strides = [1, 1]} : vector<8x128xf32> to vector<8x32xf32>
    %1019 = math.tanh %1018 : vector<8x32xf32>
    %1020 = vector.extract_strided_slice %985 {offsets = [0, 96], sizes = [8, 32], strides = [1, 1]} : vector<8x128xf32> to vector<8x32xf32>
    %1021 = arith.negf %1020 : vector<8x32xf32>
    %1022 = math.exp %1021 : vector<8x32xf32>
    %cst_223 = arith.constant 1.000000e+00 : f32
    %1023 = vector.broadcast %cst_223 : f32 to vector<8x32xf32>
    %1024 = arith.addf %1023, %1022 : vector<8x32xf32>
    %1025 = arith.divf %1023, %1024 : vector<8x32xf32>
    %1026 = arith.mulf %997, %960 : vector<8x32xf32>
    %1027 = arith.mulf %991, %999 : vector<8x32xf32>
    %1028 = arith.addf %1026, %1027 : vector<8x32xf32>
    %1029 = math.tanh %1028 : vector<8x32xf32>
    %1030 = arith.mulf %1005, %1029 : vector<8x32xf32>
    %1031 = arith.mulf %1017, %966 : vector<8x32xf32>
    %1032 = arith.mulf %1011, %1019 : vector<8x32xf32>
    %1033 = arith.addf %1031, %1032 : vector<8x32xf32>
    %1034 = math.tanh %1033 : vector<8x32xf32>
    %1035 = arith.mulf %1025, %1034 : vector<8x32xf32>
    %1036 = vector.shape_cast %969 : vector<8x1xi1> to vector<8x1xi1>
    %1037 = vector.broadcast %1036 : vector<8x1xi1> to vector<8x32xi1>
    %1038 = arith.select %1037, %1030, %957 : vector<8x32xi1>, vector<8x32xf32>
    %1039 = vector.shape_cast %969 : vector<8x1xi1> to vector<8x1xi1>
    %1040 = vector.broadcast %1039 : vector<8x1xi1> to vector<8x32xi1>
    %1041 = arith.select %1040, %1028, %960 : vector<8x32xi1>, vector<8x32xf32>
    %1042 = vector.shape_cast %971 : vector<8x1xi1> to vector<8x1xi1>
    %1043 = vector.broadcast %1042 : vector<8x1xi1> to vector<8x32xi1>
    %1044 = arith.select %1043, %1035, %963 : vector<8x32xi1>, vector<8x32xf32>
    %1045 = vector.shape_cast %971 : vector<8x1xi1> to vector<8x1xi1>
    %1046 = vector.broadcast %1045 : vector<8x1xi1> to vector<8x32xi1>
    %1047 = arith.select %1046, %1033, %966 : vector<8x32xi1>, vector<8x32xf32>
    %c3_i32_224 = arith.constant 3 : i32
    %c7_i32_225 = arith.constant 7 : i32
    %1048 = arith.subi %c7_i32_225, %c3_i32_224 : i32
    %1049 = vector.broadcast %c3_i32_224 : i32 to vector<8x1xi32>
    %1050 = arith.cmpi slt, %1049, %0 : vector<8x1xi32>
    %1051 = vector.broadcast %1048 : i32 to vector<8x1xi32>
    %1052 = arith.cmpi slt, %1051, %0 : vector<8x1xi32>
    %1053 = arith.index_cast %c3_i32_224 : i32 to index
    %c0_226 = arith.constant 0 : index
    %c0_227 = arith.constant 0 : index
    %1054 = vector.load %arg18[%1053, %c0_226, %c0_227] : memref<8x8x256xbf16, #tpu.memory_space<vmem>>, vector<1x8x128xbf16>
    %1055 = vector.shape_cast %1054 : vector<1x8x128xbf16> to vector<8x128xbf16>
    %1056 = arith.extf %1055 : vector<8x128xbf16> to vector<8x128xf32>
    %1057 = arith.truncf %1038 : vector<8x32xf32> to vector<8x32xbf16>
    %cst_228 = arith.constant dense<0.000000e+00> : vector<8x128xf32>
    %1058 = tpu.matmul %1057, %792, %cst_228 {dimension_numbers = #tpu.dot_dimension_numbers<[1], [0], [0], [1], [0, 0, 1, 1], [], []>} : vector<8x32xbf16>, vector<32x128xbf16>, vector<8x128xf32> -> vector<8x128xf32>
    %1059 = arith.addf %1056, %1058 : vector<8x128xf32>
    %1060 = arith.index_cast %1048 : i32 to index
    %c0_229 = arith.constant 0 : index
    %c128_230 = arith.constant 128 : index
    %1061 = vector.load %arg18[%1060, %c0_229, %c128_230] : memref<8x8x256xbf16, #tpu.memory_space<vmem>>, vector<1x8x128xbf16>
    %1062 = vector.shape_cast %1061 : vector<1x8x128xbf16> to vector<8x128xbf16>
    %1063 = arith.extf %1062 : vector<8x128xbf16> to vector<8x128xf32>
    %1064 = arith.truncf %1044 : vector<8x32xf32> to vector<8x32xbf16>
    %cst_231 = arith.constant dense<0.000000e+00> : vector<8x128xf32>
    %1065 = tpu.matmul %1064, %793, %cst_231 {dimension_numbers = #tpu.dot_dimension_numbers<[1], [0], [0], [1], [0, 0, 1, 1], [], []>} : vector<8x32xbf16>, vector<32x128xbf16>, vector<8x128xf32> -> vector<8x128xf32>
    %1066 = arith.addf %1063, %1065 : vector<8x128xf32>
    %1067 = vector.extract_strided_slice %1059 {offsets = [0, 0], sizes = [8, 32], strides = [1, 1]} : vector<8x128xf32> to vector<8x32xf32>
    %1068 = arith.negf %1067 : vector<8x32xf32>
    %1069 = math.exp %1068 : vector<8x32xf32>
    %cst_232 = arith.constant 1.000000e+00 : f32
    %1070 = vector.broadcast %cst_232 : f32 to vector<8x32xf32>
    %1071 = arith.addf %1070, %1069 : vector<8x32xf32>
    %1072 = arith.divf %1070, %1071 : vector<8x32xf32>
    %1073 = vector.extract_strided_slice %1059 {offsets = [0, 32], sizes = [8, 32], strides = [1, 1]} : vector<8x128xf32> to vector<8x32xf32>
    %1074 = arith.negf %1073 : vector<8x32xf32>
    %1075 = math.exp %1074 : vector<8x32xf32>
    %cst_233 = arith.constant 1.000000e+00 : f32
    %1076 = vector.broadcast %cst_233 : f32 to vector<8x32xf32>
    %1077 = arith.addf %1076, %1075 : vector<8x32xf32>
    %1078 = arith.divf %1076, %1077 : vector<8x32xf32>
    %1079 = vector.extract_strided_slice %1059 {offsets = [0, 64], sizes = [8, 32], strides = [1, 1]} : vector<8x128xf32> to vector<8x32xf32>
    %1080 = math.tanh %1079 : vector<8x32xf32>
    %1081 = vector.extract_strided_slice %1059 {offsets = [0, 96], sizes = [8, 32], strides = [1, 1]} : vector<8x128xf32> to vector<8x32xf32>
    %1082 = arith.negf %1081 : vector<8x32xf32>
    %1083 = math.exp %1082 : vector<8x32xf32>
    %cst_234 = arith.constant 1.000000e+00 : f32
    %1084 = vector.broadcast %cst_234 : f32 to vector<8x32xf32>
    %1085 = arith.addf %1084, %1083 : vector<8x32xf32>
    %1086 = arith.divf %1084, %1085 : vector<8x32xf32>
    %1087 = vector.extract_strided_slice %1066 {offsets = [0, 0], sizes = [8, 32], strides = [1, 1]} : vector<8x128xf32> to vector<8x32xf32>
    %1088 = arith.negf %1087 : vector<8x32xf32>
    %1089 = math.exp %1088 : vector<8x32xf32>
    %cst_235 = arith.constant 1.000000e+00 : f32
    %1090 = vector.broadcast %cst_235 : f32 to vector<8x32xf32>
    %1091 = arith.addf %1090, %1089 : vector<8x32xf32>
    %1092 = arith.divf %1090, %1091 : vector<8x32xf32>
    %1093 = vector.extract_strided_slice %1066 {offsets = [0, 32], sizes = [8, 32], strides = [1, 1]} : vector<8x128xf32> to vector<8x32xf32>
    %1094 = arith.negf %1093 : vector<8x32xf32>
    %1095 = math.exp %1094 : vector<8x32xf32>
    %cst_236 = arith.constant 1.000000e+00 : f32
    %1096 = vector.broadcast %cst_236 : f32 to vector<8x32xf32>
    %1097 = arith.addf %1096, %1095 : vector<8x32xf32>
    %1098 = arith.divf %1096, %1097 : vector<8x32xf32>
    %1099 = vector.extract_strided_slice %1066 {offsets = [0, 64], sizes = [8, 32], strides = [1, 1]} : vector<8x128xf32> to vector<8x32xf32>
    %1100 = math.tanh %1099 : vector<8x32xf32>
    %1101 = vector.extract_strided_slice %1066 {offsets = [0, 96], sizes = [8, 32], strides = [1, 1]} : vector<8x128xf32> to vector<8x32xf32>
    %1102 = arith.negf %1101 : vector<8x32xf32>
    %1103 = math.exp %1102 : vector<8x32xf32>
    %cst_237 = arith.constant 1.000000e+00 : f32
    %1104 = vector.broadcast %cst_237 : f32 to vector<8x32xf32>
    %1105 = arith.addf %1104, %1103 : vector<8x32xf32>
    %1106 = arith.divf %1104, %1105 : vector<8x32xf32>
    %1107 = arith.mulf %1078, %1041 : vector<8x32xf32>
    %1108 = arith.mulf %1072, %1080 : vector<8x32xf32>
    %1109 = arith.addf %1107, %1108 : vector<8x32xf32>
    %1110 = math.tanh %1109 : vector<8x32xf32>
    %1111 = arith.mulf %1086, %1110 : vector<8x32xf32>
    %1112 = arith.mulf %1098, %1047 : vector<8x32xf32>
    %1113 = arith.mulf %1092, %1100 : vector<8x32xf32>
    %1114 = arith.addf %1112, %1113 : vector<8x32xf32>
    %1115 = math.tanh %1114 : vector<8x32xf32>
    %1116 = arith.mulf %1106, %1115 : vector<8x32xf32>
    %1117 = vector.shape_cast %1050 : vector<8x1xi1> to vector<8x1xi1>
    %1118 = vector.broadcast %1117 : vector<8x1xi1> to vector<8x32xi1>
    %1119 = arith.select %1118, %1111, %1038 : vector<8x32xi1>, vector<8x32xf32>
    %1120 = vector.shape_cast %1050 : vector<8x1xi1> to vector<8x1xi1>
    %1121 = vector.broadcast %1120 : vector<8x1xi1> to vector<8x32xi1>
    %1122 = arith.select %1121, %1109, %1041 : vector<8x32xi1>, vector<8x32xf32>
    %1123 = vector.shape_cast %1052 : vector<8x1xi1> to vector<8x1xi1>
    %1124 = vector.broadcast %1123 : vector<8x1xi1> to vector<8x32xi1>
    %1125 = arith.select %1124, %1116, %1044 : vector<8x32xi1>, vector<8x32xf32>
    %1126 = vector.shape_cast %1052 : vector<8x1xi1> to vector<8x1xi1>
    %1127 = vector.broadcast %1126 : vector<8x1xi1> to vector<8x32xi1>
    %1128 = arith.select %1127, %1114, %1047 : vector<8x32xi1>, vector<8x32xf32>
    %c4_i32_238 = arith.constant 4 : i32
    %c7_i32_239 = arith.constant 7 : i32
    %1129 = arith.subi %c7_i32_239, %c4_i32_238 : i32
    %1130 = vector.broadcast %c4_i32_238 : i32 to vector<8x1xi32>
    %1131 = arith.cmpi slt, %1130, %0 : vector<8x1xi32>
    %1132 = vector.broadcast %1129 : i32 to vector<8x1xi32>
    %1133 = arith.cmpi slt, %1132, %0 : vector<8x1xi32>
    %1134 = arith.index_cast %c4_i32_238 : i32 to index
    %c0_240 = arith.constant 0 : index
    %c0_241 = arith.constant 0 : index
    %1135 = vector.load %arg18[%1134, %c0_240, %c0_241] : memref<8x8x256xbf16, #tpu.memory_space<vmem>>, vector<1x8x128xbf16>
    %1136 = vector.shape_cast %1135 : vector<1x8x128xbf16> to vector<8x128xbf16>
    %1137 = arith.extf %1136 : vector<8x128xbf16> to vector<8x128xf32>
    %1138 = arith.truncf %1119 : vector<8x32xf32> to vector<8x32xbf16>
    %cst_242 = arith.constant dense<0.000000e+00> : vector<8x128xf32>
    %1139 = tpu.matmul %1138, %792, %cst_242 {dimension_numbers = #tpu.dot_dimension_numbers<[1], [0], [0], [1], [0, 0, 1, 1], [], []>} : vector<8x32xbf16>, vector<32x128xbf16>, vector<8x128xf32> -> vector<8x128xf32>
    %1140 = arith.addf %1137, %1139 : vector<8x128xf32>
    %1141 = arith.index_cast %1129 : i32 to index
    %c0_243 = arith.constant 0 : index
    %c128_244 = arith.constant 128 : index
    %1142 = vector.load %arg18[%1141, %c0_243, %c128_244] : memref<8x8x256xbf16, #tpu.memory_space<vmem>>, vector<1x8x128xbf16>
    %1143 = vector.shape_cast %1142 : vector<1x8x128xbf16> to vector<8x128xbf16>
    %1144 = arith.extf %1143 : vector<8x128xbf16> to vector<8x128xf32>
    %1145 = arith.truncf %1125 : vector<8x32xf32> to vector<8x32xbf16>
    %cst_245 = arith.constant dense<0.000000e+00> : vector<8x128xf32>
    %1146 = tpu.matmul %1145, %793, %cst_245 {dimension_numbers = #tpu.dot_dimension_numbers<[1], [0], [0], [1], [0, 0, 1, 1], [], []>} : vector<8x32xbf16>, vector<32x128xbf16>, vector<8x128xf32> -> vector<8x128xf32>
    %1147 = arith.addf %1144, %1146 : vector<8x128xf32>
    %1148 = vector.extract_strided_slice %1140 {offsets = [0, 0], sizes = [8, 32], strides = [1, 1]} : vector<8x128xf32> to vector<8x32xf32>
    %1149 = arith.negf %1148 : vector<8x32xf32>
    %1150 = math.exp %1149 : vector<8x32xf32>
    %cst_246 = arith.constant 1.000000e+00 : f32
    %1151 = vector.broadcast %cst_246 : f32 to vector<8x32xf32>
    %1152 = arith.addf %1151, %1150 : vector<8x32xf32>
    %1153 = arith.divf %1151, %1152 : vector<8x32xf32>
    %1154 = vector.extract_strided_slice %1140 {offsets = [0, 32], sizes = [8, 32], strides = [1, 1]} : vector<8x128xf32> to vector<8x32xf32>
    %1155 = arith.negf %1154 : vector<8x32xf32>
    %1156 = math.exp %1155 : vector<8x32xf32>
    %cst_247 = arith.constant 1.000000e+00 : f32
    %1157 = vector.broadcast %cst_247 : f32 to vector<8x32xf32>
    %1158 = arith.addf %1157, %1156 : vector<8x32xf32>
    %1159 = arith.divf %1157, %1158 : vector<8x32xf32>
    %1160 = vector.extract_strided_slice %1140 {offsets = [0, 64], sizes = [8, 32], strides = [1, 1]} : vector<8x128xf32> to vector<8x32xf32>
    %1161 = math.tanh %1160 : vector<8x32xf32>
    %1162 = vector.extract_strided_slice %1140 {offsets = [0, 96], sizes = [8, 32], strides = [1, 1]} : vector<8x128xf32> to vector<8x32xf32>
    %1163 = arith.negf %1162 : vector<8x32xf32>
    %1164 = math.exp %1163 : vector<8x32xf32>
    %cst_248 = arith.constant 1.000000e+00 : f32
    %1165 = vector.broadcast %cst_248 : f32 to vector<8x32xf32>
    %1166 = arith.addf %1165, %1164 : vector<8x32xf32>
    %1167 = arith.divf %1165, %1166 : vector<8x32xf32>
    %1168 = vector.extract_strided_slice %1147 {offsets = [0, 0], sizes = [8, 32], strides = [1, 1]} : vector<8x128xf32> to vector<8x32xf32>
    %1169 = arith.negf %1168 : vector<8x32xf32>
    %1170 = math.exp %1169 : vector<8x32xf32>
    %cst_249 = arith.constant 1.000000e+00 : f32
    %1171 = vector.broadcast %cst_249 : f32 to vector<8x32xf32>
    %1172 = arith.addf %1171, %1170 : vector<8x32xf32>
    %1173 = arith.divf %1171, %1172 : vector<8x32xf32>
    %1174 = vector.extract_strided_slice %1147 {offsets = [0, 32], sizes = [8, 32], strides = [1, 1]} : vector<8x128xf32> to vector<8x32xf32>
    %1175 = arith.negf %1174 : vector<8x32xf32>
    %1176 = math.exp %1175 : vector<8x32xf32>
    %cst_250 = arith.constant 1.000000e+00 : f32
    %1177 = vector.broadcast %cst_250 : f32 to vector<8x32xf32>
    %1178 = arith.addf %1177, %1176 : vector<8x32xf32>
    %1179 = arith.divf %1177, %1178 : vector<8x32xf32>
    %1180 = vector.extract_strided_slice %1147 {offsets = [0, 64], sizes = [8, 32], strides = [1, 1]} : vector<8x128xf32> to vector<8x32xf32>
    %1181 = math.tanh %1180 : vector<8x32xf32>
    %1182 = vector.extract_strided_slice %1147 {offsets = [0, 96], sizes = [8, 32], strides = [1, 1]} : vector<8x128xf32> to vector<8x32xf32>
    %1183 = arith.negf %1182 : vector<8x32xf32>
    %1184 = math.exp %1183 : vector<8x32xf32>
    %cst_251 = arith.constant 1.000000e+00 : f32
    %1185 = vector.broadcast %cst_251 : f32 to vector<8x32xf32>
    %1186 = arith.addf %1185, %1184 : vector<8x32xf32>
    %1187 = arith.divf %1185, %1186 : vector<8x32xf32>
    %1188 = arith.mulf %1159, %1122 : vector<8x32xf32>
    %1189 = arith.mulf %1153, %1161 : vector<8x32xf32>
    %1190 = arith.addf %1188, %1189 : vector<8x32xf32>
    %1191 = math.tanh %1190 : vector<8x32xf32>
    %1192 = arith.mulf %1167, %1191 : vector<8x32xf32>
    %1193 = arith.mulf %1179, %1128 : vector<8x32xf32>
    %1194 = arith.mulf %1173, %1181 : vector<8x32xf32>
    %1195 = arith.addf %1193, %1194 : vector<8x32xf32>
    %1196 = math.tanh %1195 : vector<8x32xf32>
    %1197 = arith.mulf %1187, %1196 : vector<8x32xf32>
    %1198 = vector.shape_cast %1131 : vector<8x1xi1> to vector<8x1xi1>
    %1199 = vector.broadcast %1198 : vector<8x1xi1> to vector<8x32xi1>
    %1200 = arith.select %1199, %1192, %1119 : vector<8x32xi1>, vector<8x32xf32>
    %1201 = vector.shape_cast %1131 : vector<8x1xi1> to vector<8x1xi1>
    %1202 = vector.broadcast %1201 : vector<8x1xi1> to vector<8x32xi1>
    %1203 = arith.select %1202, %1190, %1122 : vector<8x32xi1>, vector<8x32xf32>
    %1204 = vector.shape_cast %1133 : vector<8x1xi1> to vector<8x1xi1>
    %1205 = vector.broadcast %1204 : vector<8x1xi1> to vector<8x32xi1>
    %1206 = arith.select %1205, %1197, %1125 : vector<8x32xi1>, vector<8x32xf32>
    %1207 = vector.shape_cast %1133 : vector<8x1xi1> to vector<8x1xi1>
    %1208 = vector.broadcast %1207 : vector<8x1xi1> to vector<8x32xi1>
    %1209 = arith.select %1208, %1195, %1128 : vector<8x32xi1>, vector<8x32xf32>
    %c5_i32_252 = arith.constant 5 : i32
    %c7_i32_253 = arith.constant 7 : i32
    %1210 = arith.subi %c7_i32_253, %c5_i32_252 : i32
    %1211 = vector.broadcast %c5_i32_252 : i32 to vector<8x1xi32>
    %1212 = arith.cmpi slt, %1211, %0 : vector<8x1xi32>
    %1213 = vector.broadcast %1210 : i32 to vector<8x1xi32>
    %1214 = arith.cmpi slt, %1213, %0 : vector<8x1xi32>
    %1215 = arith.index_cast %c5_i32_252 : i32 to index
    %c0_254 = arith.constant 0 : index
    %c0_255 = arith.constant 0 : index
    %1216 = vector.load %arg18[%1215, %c0_254, %c0_255] : memref<8x8x256xbf16, #tpu.memory_space<vmem>>, vector<1x8x128xbf16>
    %1217 = vector.shape_cast %1216 : vector<1x8x128xbf16> to vector<8x128xbf16>
    %1218 = arith.extf %1217 : vector<8x128xbf16> to vector<8x128xf32>
    %1219 = arith.truncf %1200 : vector<8x32xf32> to vector<8x32xbf16>
    %cst_256 = arith.constant dense<0.000000e+00> : vector<8x128xf32>
    %1220 = tpu.matmul %1219, %792, %cst_256 {dimension_numbers = #tpu.dot_dimension_numbers<[1], [0], [0], [1], [0, 0, 1, 1], [], []>} : vector<8x32xbf16>, vector<32x128xbf16>, vector<8x128xf32> -> vector<8x128xf32>
    %1221 = arith.addf %1218, %1220 : vector<8x128xf32>
    %1222 = arith.index_cast %1210 : i32 to index
    %c0_257 = arith.constant 0 : index
    %c128_258 = arith.constant 128 : index
    %1223 = vector.load %arg18[%1222, %c0_257, %c128_258] : memref<8x8x256xbf16, #tpu.memory_space<vmem>>, vector<1x8x128xbf16>
    %1224 = vector.shape_cast %1223 : vector<1x8x128xbf16> to vector<8x128xbf16>
    %1225 = arith.extf %1224 : vector<8x128xbf16> to vector<8x128xf32>
    %1226 = arith.truncf %1206 : vector<8x32xf32> to vector<8x32xbf16>
    %cst_259 = arith.constant dense<0.000000e+00> : vector<8x128xf32>
    %1227 = tpu.matmul %1226, %793, %cst_259 {dimension_numbers = #tpu.dot_dimension_numbers<[1], [0], [0], [1], [0, 0, 1, 1], [], []>} : vector<8x32xbf16>, vector<32x128xbf16>, vector<8x128xf32> -> vector<8x128xf32>
    %1228 = arith.addf %1225, %1227 : vector<8x128xf32>
    %1229 = vector.extract_strided_slice %1221 {offsets = [0, 0], sizes = [8, 32], strides = [1, 1]} : vector<8x128xf32> to vector<8x32xf32>
    %1230 = arith.negf %1229 : vector<8x32xf32>
    %1231 = math.exp %1230 : vector<8x32xf32>
    %cst_260 = arith.constant 1.000000e+00 : f32
    %1232 = vector.broadcast %cst_260 : f32 to vector<8x32xf32>
    %1233 = arith.addf %1232, %1231 : vector<8x32xf32>
    %1234 = arith.divf %1232, %1233 : vector<8x32xf32>
    %1235 = vector.extract_strided_slice %1221 {offsets = [0, 32], sizes = [8, 32], strides = [1, 1]} : vector<8x128xf32> to vector<8x32xf32>
    %1236 = arith.negf %1235 : vector<8x32xf32>
    %1237 = math.exp %1236 : vector<8x32xf32>
    %cst_261 = arith.constant 1.000000e+00 : f32
    %1238 = vector.broadcast %cst_261 : f32 to vector<8x32xf32>
    %1239 = arith.addf %1238, %1237 : vector<8x32xf32>
    %1240 = arith.divf %1238, %1239 : vector<8x32xf32>
    %1241 = vector.extract_strided_slice %1221 {offsets = [0, 64], sizes = [8, 32], strides = [1, 1]} : vector<8x128xf32> to vector<8x32xf32>
    %1242 = math.tanh %1241 : vector<8x32xf32>
    %1243 = vector.extract_strided_slice %1221 {offsets = [0, 96], sizes = [8, 32], strides = [1, 1]} : vector<8x128xf32> to vector<8x32xf32>
    %1244 = arith.negf %1243 : vector<8x32xf32>
    %1245 = math.exp %1244 : vector<8x32xf32>
    %cst_262 = arith.constant 1.000000e+00 : f32
    %1246 = vector.broadcast %cst_262 : f32 to vector<8x32xf32>
    %1247 = arith.addf %1246, %1245 : vector<8x32xf32>
    %1248 = arith.divf %1246, %1247 : vector<8x32xf32>
    %1249 = vector.extract_strided_slice %1228 {offsets = [0, 0], sizes = [8, 32], strides = [1, 1]} : vector<8x128xf32> to vector<8x32xf32>
    %1250 = arith.negf %1249 : vector<8x32xf32>
    %1251 = math.exp %1250 : vector<8x32xf32>
    %cst_263 = arith.constant 1.000000e+00 : f32
    %1252 = vector.broadcast %cst_263 : f32 to vector<8x32xf32>
    %1253 = arith.addf %1252, %1251 : vector<8x32xf32>
    %1254 = arith.divf %1252, %1253 : vector<8x32xf32>
    %1255 = vector.extract_strided_slice %1228 {offsets = [0, 32], sizes = [8, 32], strides = [1, 1]} : vector<8x128xf32> to vector<8x32xf32>
    %1256 = arith.negf %1255 : vector<8x32xf32>
    %1257 = math.exp %1256 : vector<8x32xf32>
    %cst_264 = arith.constant 1.000000e+00 : f32
    %1258 = vector.broadcast %cst_264 : f32 to vector<8x32xf32>
    %1259 = arith.addf %1258, %1257 : vector<8x32xf32>
    %1260 = arith.divf %1258, %1259 : vector<8x32xf32>
    %1261 = vector.extract_strided_slice %1228 {offsets = [0, 64], sizes = [8, 32], strides = [1, 1]} : vector<8x128xf32> to vector<8x32xf32>
    %1262 = math.tanh %1261 : vector<8x32xf32>
    %1263 = vector.extract_strided_slice %1228 {offsets = [0, 96], sizes = [8, 32], strides = [1, 1]} : vector<8x128xf32> to vector<8x32xf32>
    %1264 = arith.negf %1263 : vector<8x32xf32>
    %1265 = math.exp %1264 : vector<8x32xf32>
    %cst_265 = arith.constant 1.000000e+00 : f32
    %1266 = vector.broadcast %cst_265 : f32 to vector<8x32xf32>
    %1267 = arith.addf %1266, %1265 : vector<8x32xf32>
    %1268 = arith.divf %1266, %1267 : vector<8x32xf32>
    %1269 = arith.mulf %1240, %1203 : vector<8x32xf32>
    %1270 = arith.mulf %1234, %1242 : vector<8x32xf32>
    %1271 = arith.addf %1269, %1270 : vector<8x32xf32>
    %1272 = math.tanh %1271 : vector<8x32xf32>
    %1273 = arith.mulf %1248, %1272 : vector<8x32xf32>
    %1274 = arith.mulf %1260, %1209 : vector<8x32xf32>
    %1275 = arith.mulf %1254, %1262 : vector<8x32xf32>
    %1276 = arith.addf %1274, %1275 : vector<8x32xf32>
    %1277 = math.tanh %1276 : vector<8x32xf32>
    %1278 = arith.mulf %1268, %1277 : vector<8x32xf32>
    %1279 = vector.shape_cast %1212 : vector<8x1xi1> to vector<8x1xi1>
    %1280 = vector.broadcast %1279 : vector<8x1xi1> to vector<8x32xi1>
    %1281 = arith.select %1280, %1273, %1200 : vector<8x32xi1>, vector<8x32xf32>
    %1282 = vector.shape_cast %1212 : vector<8x1xi1> to vector<8x1xi1>
    %1283 = vector.broadcast %1282 : vector<8x1xi1> to vector<8x32xi1>
    %1284 = arith.select %1283, %1271, %1203 : vector<8x32xi1>, vector<8x32xf32>
    %1285 = vector.shape_cast %1214 : vector<8x1xi1> to vector<8x1xi1>
    %1286 = vector.broadcast %1285 : vector<8x1xi1> to vector<8x32xi1>
    %1287 = arith.select %1286, %1278, %1206 : vector<8x32xi1>, vector<8x32xf32>
    %1288 = vector.shape_cast %1214 : vector<8x1xi1> to vector<8x1xi1>
    %1289 = vector.broadcast %1288 : vector<8x1xi1> to vector<8x32xi1>
    %1290 = arith.select %1289, %1276, %1209 : vector<8x32xi1>, vector<8x32xf32>
    %c6_i32_266 = arith.constant 6 : i32
    %c7_i32_267 = arith.constant 7 : i32
    %1291 = arith.subi %c7_i32_267, %c6_i32_266 : i32
    %1292 = vector.broadcast %c6_i32_266 : i32 to vector<8x1xi32>
    %1293 = arith.cmpi slt, %1292, %0 : vector<8x1xi32>
    %1294 = vector.broadcast %1291 : i32 to vector<8x1xi32>
    %1295 = arith.cmpi slt, %1294, %0 : vector<8x1xi32>
    %1296 = arith.index_cast %c6_i32_266 : i32 to index
    %c0_268 = arith.constant 0 : index
    %c0_269 = arith.constant 0 : index
    %1297 = vector.load %arg18[%1296, %c0_268, %c0_269] : memref<8x8x256xbf16, #tpu.memory_space<vmem>>, vector<1x8x128xbf16>
    %1298 = vector.shape_cast %1297 : vector<1x8x128xbf16> to vector<8x128xbf16>
    %1299 = arith.extf %1298 : vector<8x128xbf16> to vector<8x128xf32>
    %1300 = arith.truncf %1281 : vector<8x32xf32> to vector<8x32xbf16>
    %cst_270 = arith.constant dense<0.000000e+00> : vector<8x128xf32>
    %1301 = tpu.matmul %1300, %792, %cst_270 {dimension_numbers = #tpu.dot_dimension_numbers<[1], [0], [0], [1], [0, 0, 1, 1], [], []>} : vector<8x32xbf16>, vector<32x128xbf16>, vector<8x128xf32> -> vector<8x128xf32>
    %1302 = arith.addf %1299, %1301 : vector<8x128xf32>
    %1303 = arith.index_cast %1291 : i32 to index
    %c0_271 = arith.constant 0 : index
    %c128_272 = arith.constant 128 : index
    %1304 = vector.load %arg18[%1303, %c0_271, %c128_272] : memref<8x8x256xbf16, #tpu.memory_space<vmem>>, vector<1x8x128xbf16>
    %1305 = vector.shape_cast %1304 : vector<1x8x128xbf16> to vector<8x128xbf16>
    %1306 = arith.extf %1305 : vector<8x128xbf16> to vector<8x128xf32>
    %1307 = arith.truncf %1287 : vector<8x32xf32> to vector<8x32xbf16>
    %cst_273 = arith.constant dense<0.000000e+00> : vector<8x128xf32>
    %1308 = tpu.matmul %1307, %793, %cst_273 {dimension_numbers = #tpu.dot_dimension_numbers<[1], [0], [0], [1], [0, 0, 1, 1], [], []>} : vector<8x32xbf16>, vector<32x128xbf16>, vector<8x128xf32> -> vector<8x128xf32>
    %1309 = arith.addf %1306, %1308 : vector<8x128xf32>
    %1310 = vector.extract_strided_slice %1302 {offsets = [0, 0], sizes = [8, 32], strides = [1, 1]} : vector<8x128xf32> to vector<8x32xf32>
    %1311 = arith.negf %1310 : vector<8x32xf32>
    %1312 = math.exp %1311 : vector<8x32xf32>
    %cst_274 = arith.constant 1.000000e+00 : f32
    %1313 = vector.broadcast %cst_274 : f32 to vector<8x32xf32>
    %1314 = arith.addf %1313, %1312 : vector<8x32xf32>
    %1315 = arith.divf %1313, %1314 : vector<8x32xf32>
    %1316 = vector.extract_strided_slice %1302 {offsets = [0, 32], sizes = [8, 32], strides = [1, 1]} : vector<8x128xf32> to vector<8x32xf32>
    %1317 = arith.negf %1316 : vector<8x32xf32>
    %1318 = math.exp %1317 : vector<8x32xf32>
    %cst_275 = arith.constant 1.000000e+00 : f32
    %1319 = vector.broadcast %cst_275 : f32 to vector<8x32xf32>
    %1320 = arith.addf %1319, %1318 : vector<8x32xf32>
    %1321 = arith.divf %1319, %1320 : vector<8x32xf32>
    %1322 = vector.extract_strided_slice %1302 {offsets = [0, 64], sizes = [8, 32], strides = [1, 1]} : vector<8x128xf32> to vector<8x32xf32>
    %1323 = math.tanh %1322 : vector<8x32xf32>
    %1324 = vector.extract_strided_slice %1302 {offsets = [0, 96], sizes = [8, 32], strides = [1, 1]} : vector<8x128xf32> to vector<8x32xf32>
    %1325 = arith.negf %1324 : vector<8x32xf32>
    %1326 = math.exp %1325 : vector<8x32xf32>
    %cst_276 = arith.constant 1.000000e+00 : f32
    %1327 = vector.broadcast %cst_276 : f32 to vector<8x32xf32>
    %1328 = arith.addf %1327, %1326 : vector<8x32xf32>
    %1329 = arith.divf %1327, %1328 : vector<8x32xf32>
    %1330 = vector.extract_strided_slice %1309 {offsets = [0, 0], sizes = [8, 32], strides = [1, 1]} : vector<8x128xf32> to vector<8x32xf32>
    %1331 = arith.negf %1330 : vector<8x32xf32>
    %1332 = math.exp %1331 : vector<8x32xf32>
    %cst_277 = arith.constant 1.000000e+00 : f32
    %1333 = vector.broadcast %cst_277 : f32 to vector<8x32xf32>
    %1334 = arith.addf %1333, %1332 : vector<8x32xf32>
    %1335 = arith.divf %1333, %1334 : vector<8x32xf32>
    %1336 = vector.extract_strided_slice %1309 {offsets = [0, 32], sizes = [8, 32], strides = [1, 1]} : vector<8x128xf32> to vector<8x32xf32>
    %1337 = arith.negf %1336 : vector<8x32xf32>
    %1338 = math.exp %1337 : vector<8x32xf32>
    %cst_278 = arith.constant 1.000000e+00 : f32
    %1339 = vector.broadcast %cst_278 : f32 to vector<8x32xf32>
    %1340 = arith.addf %1339, %1338 : vector<8x32xf32>
    %1341 = arith.divf %1339, %1340 : vector<8x32xf32>
    %1342 = vector.extract_strided_slice %1309 {offsets = [0, 64], sizes = [8, 32], strides = [1, 1]} : vector<8x128xf32> to vector<8x32xf32>
    %1343 = math.tanh %1342 : vector<8x32xf32>
    %1344 = vector.extract_strided_slice %1309 {offsets = [0, 96], sizes = [8, 32], strides = [1, 1]} : vector<8x128xf32> to vector<8x32xf32>
    %1345 = arith.negf %1344 : vector<8x32xf32>
    %1346 = math.exp %1345 : vector<8x32xf32>
    %cst_279 = arith.constant 1.000000e+00 : f32
    %1347 = vector.broadcast %cst_279 : f32 to vector<8x32xf32>
    %1348 = arith.addf %1347, %1346 : vector<8x32xf32>
    %1349 = arith.divf %1347, %1348 : vector<8x32xf32>
    %1350 = arith.mulf %1321, %1284 : vector<8x32xf32>
    %1351 = arith.mulf %1315, %1323 : vector<8x32xf32>
    %1352 = arith.addf %1350, %1351 : vector<8x32xf32>
    %1353 = math.tanh %1352 : vector<8x32xf32>
    %1354 = arith.mulf %1329, %1353 : vector<8x32xf32>
    %1355 = arith.mulf %1341, %1290 : vector<8x32xf32>
    %1356 = arith.mulf %1335, %1343 : vector<8x32xf32>
    %1357 = arith.addf %1355, %1356 : vector<8x32xf32>
    %1358 = math.tanh %1357 : vector<8x32xf32>
    %1359 = arith.mulf %1349, %1358 : vector<8x32xf32>
    %1360 = vector.shape_cast %1293 : vector<8x1xi1> to vector<8x1xi1>
    %1361 = vector.broadcast %1360 : vector<8x1xi1> to vector<8x32xi1>
    %1362 = arith.select %1361, %1354, %1281 : vector<8x32xi1>, vector<8x32xf32>
    %1363 = vector.shape_cast %1293 : vector<8x1xi1> to vector<8x1xi1>
    %1364 = vector.broadcast %1363 : vector<8x1xi1> to vector<8x32xi1>
    %1365 = arith.select %1364, %1352, %1284 : vector<8x32xi1>, vector<8x32xf32>
    %1366 = vector.shape_cast %1295 : vector<8x1xi1> to vector<8x1xi1>
    %1367 = vector.broadcast %1366 : vector<8x1xi1> to vector<8x32xi1>
    %1368 = arith.select %1367, %1359, %1287 : vector<8x32xi1>, vector<8x32xf32>
    %1369 = vector.shape_cast %1295 : vector<8x1xi1> to vector<8x1xi1>
    %1370 = vector.broadcast %1369 : vector<8x1xi1> to vector<8x32xi1>
    %1371 = arith.select %1370, %1357, %1290 : vector<8x32xi1>, vector<8x32xf32>
    %c7_i32_280 = arith.constant 7 : i32
    %c7_i32_281 = arith.constant 7 : i32
    %1372 = arith.subi %c7_i32_281, %c7_i32_280 : i32
    %1373 = vector.broadcast %c7_i32_280 : i32 to vector<8x1xi32>
    %1374 = arith.cmpi slt, %1373, %0 : vector<8x1xi32>
    %1375 = vector.broadcast %1372 : i32 to vector<8x1xi32>
    %1376 = arith.cmpi slt, %1375, %0 : vector<8x1xi32>
    %1377 = arith.index_cast %c7_i32_280 : i32 to index
    %c0_282 = arith.constant 0 : index
    %c0_283 = arith.constant 0 : index
    %1378 = vector.load %arg18[%1377, %c0_282, %c0_283] : memref<8x8x256xbf16, #tpu.memory_space<vmem>>, vector<1x8x128xbf16>
    %1379 = vector.shape_cast %1378 : vector<1x8x128xbf16> to vector<8x128xbf16>
    %1380 = arith.extf %1379 : vector<8x128xbf16> to vector<8x128xf32>
    %1381 = arith.truncf %1362 : vector<8x32xf32> to vector<8x32xbf16>
    %cst_284 = arith.constant dense<0.000000e+00> : vector<8x128xf32>
    %1382 = tpu.matmul %1381, %792, %cst_284 {dimension_numbers = #tpu.dot_dimension_numbers<[1], [0], [0], [1], [0, 0, 1, 1], [], []>} : vector<8x32xbf16>, vector<32x128xbf16>, vector<8x128xf32> -> vector<8x128xf32>
    %1383 = arith.addf %1380, %1382 : vector<8x128xf32>
    %1384 = arith.index_cast %1372 : i32 to index
    %c0_285 = arith.constant 0 : index
    %c128_286 = arith.constant 128 : index
    %1385 = vector.load %arg18[%1384, %c0_285, %c128_286] : memref<8x8x256xbf16, #tpu.memory_space<vmem>>, vector<1x8x128xbf16>
    %1386 = vector.shape_cast %1385 : vector<1x8x128xbf16> to vector<8x128xbf16>
    %1387 = arith.extf %1386 : vector<8x128xbf16> to vector<8x128xf32>
    %1388 = arith.truncf %1368 : vector<8x32xf32> to vector<8x32xbf16>
    %cst_287 = arith.constant dense<0.000000e+00> : vector<8x128xf32>
    %1389 = tpu.matmul %1388, %793, %cst_287 {dimension_numbers = #tpu.dot_dimension_numbers<[1], [0], [0], [1], [0, 0, 1, 1], [], []>} : vector<8x32xbf16>, vector<32x128xbf16>, vector<8x128xf32> -> vector<8x128xf32>
    %1390 = arith.addf %1387, %1389 : vector<8x128xf32>
    %1391 = vector.extract_strided_slice %1383 {offsets = [0, 0], sizes = [8, 32], strides = [1, 1]} : vector<8x128xf32> to vector<8x32xf32>
    %1392 = arith.negf %1391 : vector<8x32xf32>
    %1393 = math.exp %1392 : vector<8x32xf32>
    %cst_288 = arith.constant 1.000000e+00 : f32
    %1394 = vector.broadcast %cst_288 : f32 to vector<8x32xf32>
    %1395 = arith.addf %1394, %1393 : vector<8x32xf32>
    %1396 = arith.divf %1394, %1395 : vector<8x32xf32>
    %1397 = vector.extract_strided_slice %1383 {offsets = [0, 32], sizes = [8, 32], strides = [1, 1]} : vector<8x128xf32> to vector<8x32xf32>
    %1398 = arith.negf %1397 : vector<8x32xf32>
    %1399 = math.exp %1398 : vector<8x32xf32>
    %cst_289 = arith.constant 1.000000e+00 : f32
    %1400 = vector.broadcast %cst_289 : f32 to vector<8x32xf32>
    %1401 = arith.addf %1400, %1399 : vector<8x32xf32>
    %1402 = arith.divf %1400, %1401 : vector<8x32xf32>
    %1403 = vector.extract_strided_slice %1383 {offsets = [0, 64], sizes = [8, 32], strides = [1, 1]} : vector<8x128xf32> to vector<8x32xf32>
    %1404 = math.tanh %1403 : vector<8x32xf32>
    %1405 = vector.extract_strided_slice %1383 {offsets = [0, 96], sizes = [8, 32], strides = [1, 1]} : vector<8x128xf32> to vector<8x32xf32>
    %1406 = arith.negf %1405 : vector<8x32xf32>
    %1407 = math.exp %1406 : vector<8x32xf32>
    %cst_290 = arith.constant 1.000000e+00 : f32
    %1408 = vector.broadcast %cst_290 : f32 to vector<8x32xf32>
    %1409 = arith.addf %1408, %1407 : vector<8x32xf32>
    %1410 = arith.divf %1408, %1409 : vector<8x32xf32>
    %1411 = vector.extract_strided_slice %1390 {offsets = [0, 0], sizes = [8, 32], strides = [1, 1]} : vector<8x128xf32> to vector<8x32xf32>
    %1412 = arith.negf %1411 : vector<8x32xf32>
    %1413 = math.exp %1412 : vector<8x32xf32>
    %cst_291 = arith.constant 1.000000e+00 : f32
    %1414 = vector.broadcast %cst_291 : f32 to vector<8x32xf32>
    %1415 = arith.addf %1414, %1413 : vector<8x32xf32>
    %1416 = arith.divf %1414, %1415 : vector<8x32xf32>
    %1417 = vector.extract_strided_slice %1390 {offsets = [0, 32], sizes = [8, 32], strides = [1, 1]} : vector<8x128xf32> to vector<8x32xf32>
    %1418 = arith.negf %1417 : vector<8x32xf32>
    %1419 = math.exp %1418 : vector<8x32xf32>
    %cst_292 = arith.constant 1.000000e+00 : f32
    %1420 = vector.broadcast %cst_292 : f32 to vector<8x32xf32>
    %1421 = arith.addf %1420, %1419 : vector<8x32xf32>
    %1422 = arith.divf %1420, %1421 : vector<8x32xf32>
    %1423 = vector.extract_strided_slice %1390 {offsets = [0, 64], sizes = [8, 32], strides = [1, 1]} : vector<8x128xf32> to vector<8x32xf32>
    %1424 = math.tanh %1423 : vector<8x32xf32>
    %1425 = vector.extract_strided_slice %1390 {offsets = [0, 96], sizes = [8, 32], strides = [1, 1]} : vector<8x128xf32> to vector<8x32xf32>
    %1426 = arith.negf %1425 : vector<8x32xf32>
    %1427 = math.exp %1426 : vector<8x32xf32>
    %cst_293 = arith.constant 1.000000e+00 : f32
    %1428 = vector.broadcast %cst_293 : f32 to vector<8x32xf32>
    %1429 = arith.addf %1428, %1427 : vector<8x32xf32>
    %1430 = arith.divf %1428, %1429 : vector<8x32xf32>
    %1431 = arith.mulf %1402, %1365 : vector<8x32xf32>
    %1432 = arith.mulf %1396, %1404 : vector<8x32xf32>
    %1433 = arith.addf %1431, %1432 : vector<8x32xf32>
    %1434 = math.tanh %1433 : vector<8x32xf32>
    %1435 = arith.mulf %1410, %1434 : vector<8x32xf32>
    %1436 = arith.mulf %1422, %1371 : vector<8x32xf32>
    %1437 = arith.mulf %1416, %1424 : vector<8x32xf32>
    %1438 = arith.addf %1436, %1437 : vector<8x32xf32>
    %1439 = math.tanh %1438 : vector<8x32xf32>
    %1440 = arith.mulf %1430, %1439 : vector<8x32xf32>
    %1441 = vector.shape_cast %1374 : vector<8x1xi1> to vector<8x1xi1>
    %1442 = vector.broadcast %1441 : vector<8x1xi1> to vector<8x32xi1>
    %1443 = arith.select %1442, %1435, %1362 : vector<8x32xi1>, vector<8x32xf32>
    %1444 = vector.shape_cast %1374 : vector<8x1xi1> to vector<8x1xi1>
    %1445 = vector.broadcast %1444 : vector<8x1xi1> to vector<8x32xi1>
    %1446 = arith.select %1445, %1433, %1365 : vector<8x32xi1>, vector<8x32xf32>
    %1447 = vector.shape_cast %1376 : vector<8x1xi1> to vector<8x1xi1>
    %1448 = vector.broadcast %1447 : vector<8x1xi1> to vector<8x32xi1>
    %1449 = arith.select %1448, %1440, %1368 : vector<8x32xi1>, vector<8x32xf32>
    %1450 = vector.shape_cast %1376 : vector<8x1xi1> to vector<8x1xi1>
    %1451 = vector.broadcast %1450 : vector<8x1xi1> to vector<8x32xi1>
    %1452 = arith.select %1451, %1438, %1371 : vector<8x32xi1>, vector<8x32xf32>
    %c8_i32_294 = arith.constant 8 : i32
    %1453 = tpu.concatenate %1443, %1449 in 1 : vector<8x32xf32>, vector<8x32xf32> -> vector<8x64xf32>
    %cst_295 = arith.constant dense<0.000000e+00> : vector<8xf32>
    %1454 = vector.multi_reduction <add>, %1453, %cst_295 [1] : vector<8x64xf32> to vector<8xf32>
    %1455 = vector.shape_cast %1454 : vector<8xf32> to vector<8x1xf32>
    %cst_296 = arith.constant 6.400000e+01 : f32
    %1456 = vector.broadcast %cst_296 : f32 to vector<8x1xf32>
    %1457 = arith.divf %1455, %1456 : vector<8x1xf32>
    %1458 = vector.broadcast %1457 : vector<8x1xf32> to vector<8x64xf32>
    %1459 = arith.subf %1453, %1458 : vector<8x64xf32>
    %1460 = arith.mulf %1459, %1459 : vector<8x64xf32>
    %cst_297 = arith.constant dense<0.000000e+00> : vector<8xf32>
    %1461 = vector.multi_reduction <add>, %1460, %cst_297 [1] : vector<8x64xf32> to vector<8xf32>
    %1462 = vector.shape_cast %1461 : vector<8xf32> to vector<8x1xf32>
    %cst_298 = arith.constant 6.400000e+01 : f32
    %1463 = vector.broadcast %cst_298 : f32 to vector<8x1xf32>
    %1464 = arith.divf %1462, %1463 : vector<8x1xf32>
    %1465 = vector.broadcast %1457 : vector<8x1xf32> to vector<8x64xf32>
    %1466 = arith.subf %1453, %1465 : vector<8x64xf32>
    %cst_299 = arith.constant 9.99999974E-6 : f32
    %1467 = vector.broadcast %cst_299 : f32 to vector<8x1xf32>
    %1468 = arith.addf %1464, %1467 : vector<8x1xf32>
    %1469 = math.rsqrt %1468 : vector<8x1xf32>
    %1470 = vector.broadcast %1469 : vector<8x1xf32> to vector<8x64xf32>
    %1471 = arith.mulf %1466, %1470 : vector<8x64xf32>
    %c0_300 = arith.constant 0 : index
    %c0_301 = arith.constant 0 : index
    %1472 = vector.load %arg11[%c0_300, %c0_301] : memref<1x64xf32, #tpu.memory_space<vmem>>, vector<1x64xf32>
    %1473 = vector.broadcast %1472 : vector<1x64xf32> to vector<8x64xf32>
    %1474 = arith.mulf %1471, %1473 : vector<8x64xf32>
    %c0_302 = arith.constant 0 : index
    %c0_303 = arith.constant 0 : index
    %1475 = vector.load %arg12[%c0_302, %c0_303] : memref<1x64xf32, #tpu.memory_space<vmem>>, vector<1x64xf32>
    %1476 = vector.broadcast %1475 : vector<1x64xf32> to vector<8x64xf32>
    %1477 = arith.addf %1474, %1476 : vector<8x64xf32>
    %c0_304 = arith.constant 0 : index
    %c0_305 = arith.constant 0 : index
    %1478 = vector.load %arg13[%c0_304, %c0_305] : memref<64x32xf32, #tpu.memory_space<vmem>>, vector<64x32xf32>
    %cst_306 = arith.constant dense<0.000000e+00> : vector<8x32xf32>
    %1479 = tpu.matmul %1477, %1478, %cst_306 {dimension_numbers = #tpu.dot_dimension_numbers<[1], [0], [0], [1], [0, 0, 1, 1], [], []>} : vector<8x64xf32>, vector<64x32xf32>, vector<8x32xf32> -> vector<8x32xf32>
    %c0_307 = arith.constant 0 : index
    %c0_308 = arith.constant 0 : index
    %1480 = vector.load %arg14[%c0_307, %c0_308] : memref<1x32xf32, #tpu.memory_space<vmem>>, vector<1x32xf32>
    %1481 = vector.broadcast %1480 : vector<1x32xf32> to vector<8x32xf32>
    %1482 = arith.addf %1479, %1481 : vector<8x32xf32>
    %cst_309 = arith.constant 0.000000e+00 : f32
    %1483 = vector.broadcast %cst_309 : f32 to vector<8x32xf32>
    %1484 = arith.maximumf %1482, %1483 : vector<8x32xf32>
    %c0_310 = arith.constant 0 : index
    %c0_311 = arith.constant 0 : index
    %1485 = vector.load %arg15[%c0_310, %c0_311] : memref<32x4xf32, #tpu.memory_space<vmem>>, vector<32x4xf32>
    %cst_312 = arith.constant dense<0.000000e+00> : vector<8x4xf32>
    %1486 = tpu.matmul %1484, %1485, %cst_312 {dimension_numbers = #tpu.dot_dimension_numbers<[1], [0], [0], [1], [0, 0, 1, 1], [], []>} : vector<8x32xf32>, vector<32x4xf32>, vector<8x4xf32> -> vector<8x4xf32>
    %c0_313 = arith.constant 0 : index
    %c0_314 = arith.constant 0 : index
    %1487 = vector.load %arg16[%c0_313, %c0_314] : memref<1x4xf32, #tpu.memory_space<vmem>>, vector<1x4xf32>
    %1488 = vector.broadcast %1487 : vector<1x4xf32> to vector<8x4xf32>
    %1489 = arith.addf %1486, %1488 : vector<8x4xf32>
    %c0_315 = arith.constant 0 : index
    %c0_316 = arith.constant 0 : index
    %1490 = vector.load %arg17[%c0_315, %c0_316] : memref<8x4xf32, #tpu.memory_space<vmem>>, vector<8x4xf32>
    tpu.vector_store %arg17[%c0_315, %c0_316], %1489 {strides = array<i32>} : memref<8x4xf32, #tpu.memory_space<vmem>>, vector<8x4xf32>,
    return
  }
  func.func @transform_0(%arg0: i32) -> (i32, i32, i32) {
    %c0_i32 = arith.constant 0 : i32
    %c0_i32_0 = arith.constant 0 : i32
    %c0_i32_1 = arith.constant 0 : i32
    return %c0_i32, %arg0, %c0_i32_0 : i32, i32, i32
  }
  func.func @transform_1(%arg0: i32) -> (i32, i32) {
    %c0_i32 = arith.constant 0 : i32
    %c0_i32_0 = arith.constant 0 : i32
    return %arg0, %c0_i32 : i32, i32
  }
  func.func @transform_2(%arg0: i32) -> (i32, i32) {
    %c0_i32 = arith.constant 0 : i32
    %c0_i32_0 = arith.constant 0 : i32
    %c0_i32_1 = arith.constant 0 : i32
    return %c0_i32, %c0_i32_0 : i32, i32
  }
  func.func @transform_3(%arg0: i32) -> (i32, i32) {
    %c0_i32 = arith.constant 0 : i32
    %c0_i32_0 = arith.constant 0 : i32
    %c0_i32_1 = arith.constant 0 : i32
    return %c0_i32, %c0_i32_0 : i32, i32
  }
  func.func @transform_4(%arg0: i32) -> (i32, i32) {
    %c0_i32 = arith.constant 0 : i32
    %c0_i32_0 = arith.constant 0 : i32
    %c0_i32_1 = arith.constant 0 : i32
    return %c0_i32, %c0_i32_0 : i32, i32
  }
  func.func @transform_5(%arg0: i32) -> (i32, i32) {
    %c0_i32 = arith.constant 0 : i32
    %c0_i32_0 = arith.constant 0 : i32
    %c0_i32_1 = arith.constant 0 : i32
    return %c0_i32, %c0_i32_0 : i32, i32
  }
  func.func @transform_6(%arg0: i32) -> (i32, i32) {
    %c0_i32 = arith.constant 0 : i32
    %c0_i32_0 = arith.constant 0 : i32
    %c0_i32_1 = arith.constant 0 : i32
    return %c0_i32, %c0_i32_0 : i32, i32
  }
  func.func @transform_7(%arg0: i32) -> (i32, i32) {
    %c0_i32 = arith.constant 0 : i32
    %c0_i32_0 = arith.constant 0 : i32
    %c0_i32_1 = arith.constant 0 : i32
    return %c0_i32, %c0_i32_0 : i32, i32
  }
  func.func @transform_8(%arg0: i32) -> (i32, i32) {
    %c0_i32 = arith.constant 0 : i32
    %c0_i32_0 = arith.constant 0 : i32
    %c0_i32_1 = arith.constant 0 : i32
    return %c0_i32, %c0_i32_0 : i32, i32
  }
  func.func @transform_9(%arg0: i32) -> (i32, i32) {
    %c0_i32 = arith.constant 0 : i32
    %c0_i32_0 = arith.constant 0 : i32
    %c0_i32_1 = arith.constant 0 : i32
    return %c0_i32, %c0_i32_0 : i32, i32
  }
  func.func @transform_10(%arg0: i32) -> (i32, i32) {
    %c0_i32 = arith.constant 0 : i32
    %c0_i32_0 = arith.constant 0 : i32
    %c0_i32_1 = arith.constant 0 : i32
    return %c0_i32, %c0_i32_0 : i32, i32
  }
  func.func @transform_11(%arg0: i32) -> (i32, i32) {
    %c0_i32 = arith.constant 0 : i32
    %c0_i32_0 = arith.constant 0 : i32
    %c0_i32_1 = arith.constant 0 : i32
    return %c0_i32, %c0_i32_0 : i32, i32
  }
  func.func @transform_12(%arg0: i32) -> (i32, i32) {
    %c0_i32 = arith.constant 0 : i32
    %c0_i32_0 = arith.constant 0 : i32
    %c0_i32_1 = arith.constant 0 : i32
    return %c0_i32, %c0_i32_0 : i32, i32
  }
  func.func @transform_13(%arg0: i32) -> (i32, i32) {
    %c0_i32 = arith.constant 0 : i32
    %c0_i32_0 = arith.constant 0 : i32
    %c0_i32_1 = arith.constant 0 : i32
    return %c0_i32, %c0_i32_0 : i32, i32
  }
  func.func @transform_14(%arg0: i32) -> (i32, i32) {
    %c0_i32 = arith.constant 0 : i32
    %c0_i32_0 = arith.constant 0 : i32
    %c0_i32_1 = arith.constant 0 : i32
    return %c0_i32, %c0_i32_0 : i32, i32
  }
  func.func @transform_15(%arg0: i32) -> (i32, i32) {
    %c0_i32 = arith.constant 0 : i32
    %c0_i32_0 = arith.constant 0 : i32
    %c0_i32_1 = arith.constant 0 : i32
    return %c0_i32, %c0_i32_0 : i32, i32
  }
  func.func @transform_16(%arg0: i32) -> (i32, i32) {
    %c0_i32 = arith.constant 0 : i32
    %c0_i32_0 = arith.constant 0 : i32
    return %arg0, %c0_i32 : i32, i32
  }
}

</mosaic_0001>

<bundles_post_ra>
// kernel: bilstm_model_forward.1
= control target key start
LH: loop header
LB: loop body
LE: loop exit
PB: predicated region body
PF: predicated region fallthrough
CT: control target
= control target key end

     0   :  { %v3081_v3 = vmov 0   ;;  %vm105_vm0 = vcmask 261120   ;;  %s4244_s2 = inlined_call_operand.vmem [shape: bf16[32,256], index: 2, kind: input, shape index: {}]   ;;  %s4245_s0 = inlined_call_operand.vmem [shape: f32[8,8,32], index: 0, kind: input, shape index: {}]   ;;  %s4246_s3 = inlined_call_operand.vmem [shape: bf16[32,128], index: 3, kind: input, shape index: {}]   ;;  %s4247_s4 = inlined_call_operand.vmem [shape: bf16[32,128], index: 4, kind: input, shape index: {}]   ;;  %s4248_s5 = inlined_call_operand.vmem [shape: f32[1,256], index: 5, kind: input, shape index: {}]   ;;  %s4249_s1 = inlined_call_operand.vmem [shape: s32[8,1], index: 1, kind: input, shape index: {}]   ;;  %s4250_s6 = inlined_call_operand.vmem [shape: bf16[64,256], index: 6, kind: input, shape index: {}]   ;;  %s4251_s7 = inlined_call_operand.vmem [shape: bf16[32,128], index: 7, kind: input, shape index: {}]   ;;  %s4252_s8 = inlined_call_operand.vmem [shape: bf16[32,128], index: 8, kind: input, shape index: {}]   ;;  %s4253_s9 = inlined_call_operand.vmem [shape: f32[1,256], index: 9, kind: input, shape index: {}]   ;;  %s4254_s10 = inlined_call_operand.vmem [shape: f32[1,64], index: 10, kind: input, shape index: {}]   ;;  %s4255_s11 = inlined_call_operand.vmem [shape: f32[1,64], index: 11, kind: input, shape index: {}]   ;;  %s4256_s13 = inlined_call_operand.vmem [shape: f32[1,32], index: 13, kind: input, shape index: {}]   ;;  %s4257_s12 = inlined_call_operand.vmem [shape: f32[64,32], index: 12, kind: input, shape index: {}]   ;;  %s4258_s14 = inlined_call_operand.vmem [shape: f32[32,4], index: 14, kind: input, shape index: {}]   ;;  %s4259_s15 = inlined_call_operand.vmem [shape: f32[1,4], index: 15, kind: input, shape index: {}]   ;;  %s4260_s16 = inlined_call_operand.vmem [shape: f32[8,4], index: 16, kind: output, shape index: {}]  }
   0x1   :  { %4262 = sst [smem:[#allocation4_spill]] %s4244_s2  ;;  %2814 = vset.pattern.permute.xlu2 %v3081_v3  ;;  %2815 = vset.pattern.permute.xlu0 %v3081_v3  ;;  %v68_v12 = vld [vmem:[%s4245_s0] sm:$0xff]  ;;  %v69_v13 = vld [vmem:[%s4245_s0 + $0x8] sm:$0xff]  ;;  %v70_v18 = vld [vmem:[%s4245_s0 + $0x10] sm:$0xff] }
   0x2   :  { %s4263_s23 = sld [smem:[#allocation4_spill]]  ;;  %2816 = vset.pattern.permute.xlu1 %v3081_v3  ;;  %v3206_v14 = vld [vmem:[%s4246_s3 + $0x8] sm:$0xff]  ;;  %v3212_v16 = vld [vmem:[%s4246_s3] sm:$0xff]  ;;  %v76_v17 = vpack.c.bf16 %v69_v13, %v68_v12  ;;  %v71_v19 = vld [vmem:[%s4245_s0 + $0x18] sm:$0xff] }
   0x3   :  { %217 = vmatpush.bf16.msra.mxu2 %v3206_v14  ;;  %v77_v20 = vpack.c.bf16 %v71_v19, %v70_v18  ;;  %v3236_v21 = vld [vmem:[%s4247_s4 + $0x8] sm:$0xff]  ;;  %v3243_v22 = vld [vmem:[%s4247_s4] sm:$0xff]  ;;  %v74_v26 = vld [vmem:[%s4245_s0 + $0x30] sm:$0xff] }
   0x4   :  { %246 = vmatpush.bf16.msra.mxu3 %v3236_v21  ;;  %v72_v23 = vld [vmem:[%s4245_s0 + $0x20] sm:$0xff]  ;;  %v73_v24 = vld [vmem:[%s4245_s0 + $0x28] sm:$0xff]  ;;  %v75_v27 = vld [vmem:[%s4245_s0 + $0x38] sm:$0xff]  ;;  %s3082_s0 = smov 64  }
   0x5   :  { %v78_v25 = vpack.c.bf16 %v73_v24, %v72_v23  ;;  %v79_v28 = vpack.c.bf16 %v75_v27, %v74_v26  ;;  %v67_v29 = vld [vmem:[%s4248_s5] sm:$0x3]  ;;  %s3083_s5 = smov 32  }
   0x6   :  { %v81_v30 = vperm.slane %v67_v29, 0  ;;  %v82_v31 = vperm.slane %v67_v29, 1 }
   0x7   :  { %218 = vmatpush.bf16.msra.mxu2 %v3212_v16 }
   0x8   :  { %v2642_v0 = vld [vmem:[%s4263_s23 + $0x10] sm:$0xf]  ;;  %v2793_v1 = vld [vmem:[%s4263_s23 + $0x14] sm:$0xf0]  ;;  %v2792_v2 = vld [vmem:[%s4263_s23 + $0x14] sm:$0xf]  ;;  %247 = vmatpush.bf16.msra.mxu3 %v3243_v22 }
   0x9   :  { %v2643_v4 = vor.u32 %v2793_v1, %v2642_v0  ;;  %v2644_v5 = vld [vmem:[%s4263_s23 + $0x18] sm:$0xf0]  ;;  %v2634_v6 = vld [vmem:[%s4263_s23] sm:$0xf]  ;;  %v2791_v7 = vld [vmem:[%s4263_s23 + $0x4] sm:$0xf0] }
   0xa   :  { %v2647_v8 = vor.u32 %v2792_v2, %v2644_v5  ;;  %v2790_v9 = vld [vmem:[%s4263_s23 + $0x4] sm:$0xf]  ;;  %v2636_v10 = vld [vmem:[%s4263_s23 + $0x8] sm:$0xf0]  ;;  %v2635_v11 = vor.u32 %v2791_v7, %v2634_v6  ;;  %219 = vmatmul.bf16.vlgmr.msra.gmra.mxu2 %v3081_v3 }
   0xb   :  { %124 = vmatpush.bf16.msra.mxu0 %v2643_v4  ;;  %v2639_v15 = vor.u32 %v2790_v9, %v2636_v10  ;;  %372 = vmatpush.bf16.msrb.mxu2 %v3206_v14 }
   0xc   :  { %153 = vmatpush.bf16.msra.mxu1 %v2647_v8  ;;  %396 = vmatpush.bf16.msrb.mxu3 %v3236_v21 }
   0xd   :  { %248 = vmatmul.bf16.vlgmr.msra.gmra.mxu3 %v3081_v3 }
   0xf   :  { %125 = vmatpush.bf16.msra.mxu0 %v2635_v11  ;;  %373 = vmatpush.bf16.msrb.mxu2 %v3212_v16 }
  0x10   :  { %154 = vmatpush.bf16.msra.mxu1 %v2639_v15  ;;  %397 = vmatpush.bf16.msrb.mxu3 %v3243_v22 }
  0x12   :  { %2648 = vmatmul.msk.bf16.vlgmr.msra.gmra.mxu0 %vm105_vm0, %v76_v17 }
  0x13   :  { %825 = vmatpush.bf16.msrb.mxu0 %v3206_v14  ;;  %2652 = vmatmul.msk.bf16.vlgmr.msra.gmra.mxu1 %vm105_vm0, %v76_v17 }
  0x14   :  { %524 = vmatpush.bf16.msra.mxu2 %v3206_v14  ;;  %848 = vmatpush.bf16.msrb.mxu1 %v3236_v21 }
  0x15   :  { %548 = vmatpush.bf16.msra.mxu3 %v3236_v21 }
  0x17   :  { %826 = vmatpush.bf16.msrb.mxu0 %v3212_v16 }
  0x18   :  { %525 = vmatpush.bf16.msra.mxu2 %v3212_v16  ;;  %849 = vmatpush.bf16.msrb.mxu1 %v3243_v22 }
  0x19   :  { %549 = vmatpush.bf16.msra.mxu3 %v3243_v22 }
  0x1b   :  { %1097 = vmatpush.bf16.msra.mxu0 %v3206_v14 }
  0x1c   :  { %1120 = vmatpush.bf16.msra.mxu1 %v3236_v21 }
  0x1f   :  { %1098 = vmatpush.bf16.msra.mxu0 %v3212_v16 }
  0x20   :  { %1121 = vmatpush.bf16.msra.mxu1 %v3243_v22 }
  0x22   :  { %2649 = vmatmul.msk.bf16.gmra.mxu0 %vm105_vm0, %v77_v20 }
  0x23   :  { %2653 = vmatmul.msk.bf16.gmra.mxu1 %vm105_vm0, %v77_v20 }
  0x32   :  { %2650 = vmatmul.msk.bf16.gmra.mxu0 %vm105_vm0, %v78_v25 }
  0x33   :  { %2654 = vmatmul.msk.bf16.gmra.mxu1 %vm105_vm0, %v78_v25 }
  0x42   :  { %2651 = vmatmul.msk.bf16.gmra.mxu0 %vm105_vm0, %v79_v28 }
  0x43   :  { %2655 = vmatmul.msk.bf16.gmra.mxu1 %vm105_vm0, %v79_v28 }
  0x8d   :  { %v220_v38 = vpop.f32.mrf.mxu2 }
  0x8f   :  { %v127_v32 = vpop.f32.mrf.mxu0 }
  0x90   :  { %v128_v33 = vadd.f32 %v127_v32, %v81_v30  ;;  %v156_v34 = vpop.f32.mrf.mxu1  ;;  %v249_v58 = vpop.f32.mrf.mxu3 }
  0x91   :  { %v157_v35 = vadd.f32 %v156_v34, %v82_v31 }
  0x93   :  { %v176_v36 = vpack.c.bf16 %v157_v35, %v128_v33 }
  0x95   :  { %184 = vst [vmem:[#allocation2] sm:$0xff] %v176_v36  ;;  %v222_v47 = vpop.f32.mrf.mxu2 }
  0x97   :  { %v129_v37 = vpop.f32.mrf.mxu0 }
  0x98   :  { %v130_v39 = vadd.f32 %v129_v37, %v81_v30  ;;  %v158_v40 = vpop.f32.mrf.mxu1  ;;  %v251_v0 = vpop.f32.mrf.mxu3 }
  0x99   :  { %v159_v41 = vadd.f32 %v158_v40, %v82_v31 }
  0x9b   :  { %v177_v42 = vpack.c.bf16 %v159_v41, %v130_v39 }
  0x9c   :  { %v194_v43 = vld [vmem:[#allocation2] sm:$0xf] }
  0x9d   :  { %185 = vst [vmem:[#allocation2 + $0x8] sm:$0xff] %v177_v42  ;;  %v195_v44 = vunpack.c.l.bf16 %v194_v43 }
  0x9f   :  { %v224_v45 = vadd.f32 %v220_v38, %v195_v44  ;;  %v132_v46 = vpop.f32.mrf.mxu0 }
  0xa0   :  { %v133_v48 = vadd.f32 %v132_v46, %v81_v30  ;;  %v161_v49 = vpop.f32.mrf.mxu1 }
  0xa1   :  { %2821 = vtanh.f32 %v224_v45  ;;  %v162_v50 = vadd.f32 %v161_v49, %v82_v31  ;;  %v2672_v25 = vmul.f32 -1.442695, %v224_v45 }
  0xa3   :  { %v178_v51 = vpack.c.bf16 %v162_v50, %v133_v48 }
  0xa5   :  { %186 = vst [vmem:[#allocation2 + $0x10] sm:$0xff] %v178_v51 }
  0xa7   :  { %v2822_v52 = vpop.eup %2821  ;;  %v134_v53 = vpop.f32.mrf.mxu0 }
  0xa8   :  { %v135_v54 = vadd.f32 %v134_v53, %v81_v30  ;;  %v163_v55 = vpop.f32.mrf.mxu1  ;;  %296 = vrot.lane.b32.xlu1 %v2822_v52, %s3082_s0 }
  0xa9   :  { %v164_v56 = vadd.f32 %v163_v55, %v82_v31 }
  0xab   :  { %v179_v57 = vpack.c.bf16 %v164_v56, %v135_v54 }
  0xad   :  { %187 = vst [vmem:[#allocation2 + $0x18] sm:$0xff] %v179_v57 }
  0xaf   :  { %v137_v59 = vpop.f32.mrf.mxu0 }
  0xb0   :  { %v138_v60 = vadd.f32 %v137_v59, %v81_v30  ;;  %v166_v61 = vpop.f32.mrf.mxu1 }
  0xb1   :  { %v167_v62 = vadd.f32 %v166_v61, %v82_v31 }
  0xb3   :  { %v180_v63 = vpack.c.bf16 %v167_v62, %v138_v60 }
  0xb5   :  { %188 = vst [vmem:[#allocation2 + $0x20] sm:$0xff] %v180_v63  ;;  %v3288_v63 = vld [vmem:[%s4249_s1] sm:$0xff] }
  0xb6   :  { %vm193_vm9 = vcmp.gt.s32.totalorder %v3288_v63, 7  ;;  %vm192_vm10 = vcmp.gt.s32.totalorder %v3288_v63, 0  ;;  %vm355_vm13 = vcmp.gt.s32.totalorder %v3288_v63, 6 }
  0xb7   :  { %v139_v1 = vpop.f32.mrf.mxu0  ;;  %v339_v0 = vsel %vm193_vm9, 1, %v3081_v3 }
  0xb8   :  { %v140_v2 = vadd.f32 %v139_v1, %v81_v30  ;;  %v168_v4 = vpop.f32.mrf.mxu1  ;;  %v328_v1 = vsel %vm192_vm10, 1, %v3081_v3  ;;  %vm507_vm10 = vcmp.gt.s32.totalorder %v3288_v63, 5 }
  0xb9   :  { %v169_v5 = vadd.f32 %v168_v4, %v82_v31 }
  0xbb   :  { %v181_v6 = vpack.c.bf16 %v169_v5, %v140_v2 }
  0xbd   :  { %189 = vst [vmem:[#allocation2 + $0x28] sm:$0xff] %v181_v6 }
  0xbf   :  { %v142_v7 = vpop.f32.mrf.mxu0 }
  0xc0   :  { %v143_v8 = vadd.f32 %v142_v7, %v81_v30  ;;  %v171_v9 = vpop.f32.mrf.mxu1 }
  0xc1   :  { %v172_v10 = vadd.f32 %v171_v9, %v82_v31 }
  0xc3   :  { %v182_v11 = vpack.c.bf16 %v172_v10, %v143_v8 }
  0xc5   :  { %190 = vst [vmem:[#allocation2 + $0x30] sm:$0xff] %v182_v11 }
  0xc7   :  { %v144_v12 = vpop.f32.mrf.mxu0 }
  0xc8   :  { %v145_v13 = vadd.f32 %v144_v12, %v81_v30  ;;  %v173_v15 = vpop.f32.mrf.mxu1 }
  0xc9   :  { %v174_v17 = vadd.f32 %v173_v15, %v82_v31 }
  0xcb   :  { %v183_v18 = vpack.c.bf16 %v174_v17, %v145_v13 }
  0xcc   :  { %v381_v17 = vld [vmem:[#allocation2 + $0x34] sm:$0xf] }
  0xcd   :  { %191 = vst [vmem:[#allocation2 + $0x38] sm:$0xff] %v183_v18  ;;  %v382_v18 = vunpack.c.l.bf16 %v381_v17 }
  0xd4   :  { %v226_v19 = vld [vmem:[#allocation2 + $0x3c] sm:$0xf] }
  0xd5   :  { %v227_v20 = vunpack.c.l.bf16 %v226_v19 }
  0xd7   :  { %v253_v23 = vadd.f32 %v249_v58, %v227_v20 }
  0xd9   :  { %2823 = vtanh.f32 %v253_v23  ;;  %v2673_v40 = vmul.f32 -1.442695, %v253_v23  ;;  %v357_v23 = vld [vmem:[#allocation2 + $0x8] sm:$0xf] }
  0xda   :  { %2825 = vpow2.f32 %v2672_v25 }
  0xdf   :  { %v2824_v24 = vpop.eup %2823 }
  0xe0   :  { %313 = vrot.lane.b32.xlu0 %v2824_v24, %s3082_s0  ;;  %v2826_v26 = vpop.eup %2825  ;;  %v358_v24 = vunpack.c.l.bf16 %v357_v23 }
  0xe1   :  { %v257_v27 = vadd.f32 1.0, %v2826_v26 }
  0xe3   :  { %2827 = vrcp.f32 %v257_v27  ;;  %v269_v31 = vand.u32 2147483648, %v257_v27  ;;  %vm263_vm2 = vweird.f32 %v257_v27  ;;  %v267_v34 = vand.u32 2147483647, %v257_v27 }
  0xe4   :  { %2829 = vpow2.f32 %v2673_v40 }
  0xe5   :  { %v270_v36 = vor.u32 1.1754944e-38, %v269_v31  ;;  %vm268_vm4 = vcmp.eq.f32.partialorder %v267_v34, 8.507059e+37 }
  0xe9   :  { %v2828_v28 = vpop.eup %2827 }
  0xea   :  { %v259_v29 = vmul.f32 %v2828_v28, %v257_v27  ;;  %vm264_vm1 = vweird.f32 %v2828_v28  ;;  %v2830_v41 = vpop.eup %2829 }
  0xeb   :  { %vm265_vm3 = vmor %vm263_vm2, %vm264_vm1  ;;  %v277_v42 = vadd.f32 1.0, %v2830_v41 }
  0xec   :  { %v260_v32 = vsub.f32 1.0, %v259_v29 }
  0xed   :  { %2831 = vrcp.f32 %v277_v42  ;;  %v289_v48 = vand.u32 2147483648, %v277_v42  ;;  %vm283_vm6 = vweird.f32 %v277_v42  ;;  %v287_v49 = vand.u32 2147483647, %v277_v42 }
  0xee   :  { %v261_v30 = vmul.f32 %v2828_v28, %v260_v32 }
  0xef   :  { %v290_v51 = vor.u32 1.1754944e-38, %v289_v48  ;;  %vm288_vm8 = vcmp.eq.f32.partialorder %v287_v49, 8.507059e+37 }
  0xf0   :  { %v262_v33 = vadd.f32 %v2828_v28, %v261_v30  ;;  %v490_v30 = vsel %vm355_vm13, 1, %v3081_v3 }
  0xf2   :  { %v266_v35 = vsel %vm265_vm3, %v2828_v28, %v262_v33 }
  0xf3   :  { %v271_v38 = vsel %vm268_vm4, %v270_v36, %v266_v35  ;;  %v2832_v43 = vpop.eup %2831 }
  0xf4   :  { %v279_v44 = vmul.f32 %v2832_v43, %v277_v42  ;;  %vm284_vm5 = vweird.f32 %v2832_v43  ;;  %v294_v55 = vmul.f32 0.0, %v271_v38 }
  0xf5   :  { %vm285_vm7 = vmor %vm283_vm6, %vm284_vm5 }
  0xf6   :  { %v280_v45 = vsub.f32 1.0, %v279_v44 }
  0xf8   :  { %v281_v46 = vmul.f32 %v2832_v43, %v280_v45 }
  0xfa   :  { %v282_v47 = vadd.f32 %v2832_v43, %v281_v46 }
  0xfc   :  { %v286_v50 = vsel %vm285_vm7, %v2832_v43, %v282_v47 }
  0xfd   :  { %v291_v53 = vsel %vm288_vm8, %v290_v51, %v286_v50  ;;  %vm354_vm8 = vcmp.gt.s32.totalorder %v3288_v63, 1 }
  0xfe   :  { %v311_v59 = vmul.f32 0.0, %v291_v53  ;;  %v478_v23 = vsel %vm354_vm8, 1, %v3081_v3 }
 0x11a   :  { %v297_v37 = vpop.permute.xlu1 %296 }
 0x11b   :  { %v299_v39 = vmul.f32 %v297_v37, %v271_v38 }
 0x11d   :  { %301 = vrot.lane.b32.xlu1 %v299_v39, %s3083_s5 }
 0x152   :  { %v314_v52 = vpop.permute.xlu0 %313 }
 0x153   :  { %v316_v54 = vmul.f32 %v314_v52, %v291_v53 }
 0x155   :  { %318 = vrot.lane.b32.xlu0 %v316_v54, %s3083_s5 }
 0x18f   :  { %v302_v56 = vpop.permute.xlu1 %301 }
 0x190   :  { %v3278_v57 = vadd.f32 %v302_v56, %v294_v55 }
 0x192   :  { %2833 = vtanh.f32 %v3278_v57 }
 0x198   :  { %v2834_v58 = vpop.eup %2833 }
 0x199   :  { %307 = vrot.lane.b32.xlu1 %v2834_v58, %s3082_s0 }
 0x1c7   :  { %v319_v60 = vpop.permute.xlu0 %318 }
 0x1c8   :  { %v3282_v61 = vadd.f32 %v319_v60, %v311_v59 }
 0x1ca   :  { %2835 = vtanh.f32 %v3282_v61 }
 0x1d0   :  { %v2836_v62 = vpop.eup %2835 }
 0x1d1   :  { %324 = vrot.lane.b32.xlu2 %v2836_v62, %s3082_s0 }
 0x1d9   :  { %341 = vperm.xlu2 %2814, %v339_v0  }
 0x1e1   :  { %330 = vperm.xlu2 %2814, %v328_v1  }
 0x20b   :  { %v308_v8 = vpop.permute.xlu1 %307 }
 0x20c   :  { %v310_v9 = vmul.f32 %v308_v8, %v271_v38 }
 0x22b   :  { %v325_v2 = vpop.permute.xlu2 %324 }
 0x22c   :  { %v327_v4 = vmul.f32 %v325_v2, %v291_v53 }
 0x233   :  { %v3295_v5 = vpop.permute.xlu2 %341 }
 0x234   :  { %vm343_vm11 = vcmp.eq.s32.totalorder %v3295_v5, 1 }
 0x235   :  { %v3300_v6 = vsel %vm343_vm11, %v327_v4, 0.0  ;;  %v3330_v1 = vsel %vm343_vm11, %v3282_v61, 0.0 }
 0x236   :  { %v383_v7 = vpack.c.bf16 %v3300_v6, %v3300_v6 }
 0x238   :  { %385 = vrot.lane.b32.xlu0 %v383_v7, %s3083_s5 }
 0x23b   :  { %v3305_v10 = vpop.permute.xlu2 %330 }
 0x23c   :  { %vm332_vm12 = vcmp.eq.s32.totalorder %v3305_v10, 1 }
 0x23d   :  { %v3310_v11 = vsel %vm332_vm12, %v310_v9, 0.0  ;;  %v3340_v9 = vsel %vm332_vm12, %v3278_v57, 0.0 }
 0x23e   :  { %v359_v12 = vpack.c.bf16 %v3310_v11, %v3310_v11 }
 0x240   :  { %361 = vrot.lane.b32.xlu0 %v359_v12, %s3083_s5 }
 0x2aa   :  { %v386_v13 = vpop.permute.xlu0 %385 }
 0x2ab   :  { %2675 = vmatmul.msk.bf16.vlgmr.msrb.gmra.mxu3 %vm105_vm0, %v386_v13 }
 0x2ac   :  { %700 = vmatpush.bf16.msrb.mxu3 %v3236_v21 }
 0x2b0   :  { %701 = vmatpush.bf16.msrb.mxu3 %v3243_v22 }
 0x2b2   :  { %v362_v15 = vpop.permute.xlu0 %361 }
 0x2b3   :  { %2674 = vmatmul.msk.bf16.vlgmr.msrb.gmra.mxu2 %vm105_vm0, %v362_v15 }
 0x2b4   :  { %676 = vmatpush.bf16.msrb.mxu2 %v3206_v14 }
 0x2b8   :  { %677 = vmatpush.bf16.msrb.mxu2 %v3212_v16 }
 0x32e   :  { %v399_v19 = vpop.f32.mrf.mxu3 }
 0x32f   :  { %v403_v20 = vadd.f32 %v399_v19, %v382_v18 }
 0x331   :  { %2837 = vtanh.f32 %v403_v20  ;;  %v2677_v33 = vmul.f32 -1.442695, %v403_v20 }
 0x336   :  { %v375_v25 = vpop.f32.mrf.mxu2  ;;  %v401_v26 = vpop.f32.mrf.mxu3 }
 0x337   :  { %v2838_v27 = vpop.eup %2837  ;;  %v379_v28 = vadd.f32 %v375_v25, %v358_v24 }
 0x338   :  { %463 = vrot.lane.b32.xlu1 %v2838_v27, %s3082_s0 }
 0x339   :  { %2839 = vtanh.f32 %v379_v28  ;;  %v2676_v31 = vmul.f32 -1.442695, %v379_v28 }
 0x33a   :  { %2841 = vpow2.f32 %v2677_v33 }
 0x33b   :  { %2843 = vpow2.f32 %v2676_v31 }
 0x33e   :  { %v377_v29 = vpop.f32.mrf.mxu2 }
 0x33f   :  { %v2840_v32 = vpop.eup %2839 }
 0x340   :  { %446 = vrot.lane.b32.xlu0 %v2840_v32, %s3082_s0  ;;  %v2842_v34 = vpop.eup %2841 }
 0x341   :  { %v427_v35 = vadd.f32 1.0, %v2842_v34  ;;  %v2844_v36 = vpop.eup %2843 }
 0x342   :  { %v407_v37 = vadd.f32 1.0, %v2844_v36 }
 0x343   :  { %2845 = vrcp.f32 %v427_v35  ;;  %v439_v46 = vand.u32 2147483648, %v427_v35  ;;  %vm433_vm15 = vweird.f32 %v427_v35  ;;  %v437_v47 = vand.u32 2147483647, %v427_v35 }
 0x344   :  { %2847 = vrcp.f32 %v407_v37  ;;  %v419_v55 = vand.u32 2147483648, %v407_v37  ;;  %vm413_vm4 = vweird.f32 %v407_v37  ;;  %v417_v56 = vand.u32 2147483647, %v407_v37 }
 0x345   :  { %v440_v50 = vor.u32 1.1754944e-38, %v439_v46  ;;  %vm438_vm2 = vcmp.eq.f32.partialorder %v437_v47, 8.507059e+37 }
 0x346   :  { %v420_v59 = vor.u32 1.1754944e-38, %v419_v55  ;;  %vm418_vm6 = vcmp.eq.f32.partialorder %v417_v56, 8.507059e+37 }
 0x348   :  { %492 = vperm.xlu0 %2815, %v490_v30   ;;  %v533_v30 = vld [vmem:[#allocation2 + $0x2c] sm:$0xf] }
 0x349   :  { %v2846_v38 = vpop.eup %2845  ;;  %v534_v33 = vunpack.c.l.bf16 %v533_v30 }
 0x34a   :  { %v429_v39 = vmul.f32 %v2846_v38, %v427_v35  ;;  %v2848_v41 = vpop.eup %2847  ;;  %vm434_vm14 = vweird.f32 %v2846_v38 }
 0x34b   :  { %v409_v43 = vmul.f32 %v2848_v41, %v407_v37  ;;  %vm435_vm1 = vmor %vm433_vm15, %vm434_vm14  ;;  %vm414_vm3 = vweird.f32 %v2848_v41 }
 0x34c   :  { %v430_v40 = vsub.f32 1.0, %v429_v39  ;;  %vm415_vm5 = vmor %vm413_vm4, %vm414_vm3 }
 0x34d   :  { %v410_v45 = vsub.f32 1.0, %v409_v43 }
 0x34e   :  { %v431_v42 = vmul.f32 %v2846_v38, %v430_v40  ;;  %v509_v40 = vld [vmem:[#allocation2 + $0x10] sm:$0xf] }
 0x34f   :  { %v411_v49 = vmul.f32 %v2848_v41, %v410_v45 }
 0x350   :  { %v432_v44 = vadd.f32 %v2846_v38, %v431_v42  ;;  %v510_v42 = vunpack.c.l.bf16 %v509_v40 }
 0x351   :  { %v412_v54 = vadd.f32 %v2848_v41, %v411_v49 }
 0x352   :  { %v436_v48 = vsel %vm435_vm1, %v2846_v38, %v432_v44 }
 0x353   :  { %v441_v51 = vsel %vm438_vm2, %v440_v50, %v436_v48  ;;  %v416_v58 = vsel %vm415_vm5, %v2848_v41, %v412_v54  ;;  %vm506_vm2 = vcmp.gt.s32.totalorder %v3288_v63, 2 }
 0x354   :  { %v421_v62 = vsel %vm418_vm6, %v420_v59, %v416_v58  ;;  %v461_v2 = vmul.f32 %v441_v51, %v3330_v1 }
 0x355   :  { %v444_v12 = vmul.f32 %v421_v62, %v3340_v9 }
 0x3aa   :  { %v464_v52 = vpop.permute.xlu1 %463 }
 0x3ab   :  { %v466_v53 = vmul.f32 %v464_v52, %v441_v51 }
 0x3ad   :  { %468 = vrot.lane.b32.xlu2 %v466_v53, %s3083_s5 }
 0x3b2   :  { %v447_v60 = vpop.permute.xlu0 %446 }
 0x3b3   :  { %v449_v0 = vmul.f32 %v447_v60, %v421_v62  ;;  %v630_v60 = vsel %vm506_vm2, 1, %v3081_v3 }
 0x3b5   :  { %451 = vrot.lane.b32.xlu1 %v449_v0, %s3083_s5 }
 0x3ba   :  { %v3347_v17 = vpop.permute.xlu0 %492 }
 0x3bb   :  { %vm494_vm7 = vcmp.eq.s32.totalorder %v3347_v17, 1 }
 0x407   :  { %v469_v4 = vpop.permute.xlu2 %468 }
 0x408   :  { %v3333_v7 = vadd.f32 %v469_v4, %v461_v2 }
 0x40a   :  { %2849 = vtanh.f32 %v3333_v7  ;;  %v3395_v30 = vsel %vm494_vm7, %v3333_v7, %v3330_v1 }
 0x410   :  { %v2850_v8 = vpop.eup %2849 }
 0x411   :  { %474 = vrot.lane.b32.xlu2 %v2850_v8, %s3082_s0 }
 0x427   :  { %v452_v13 = vpop.permute.xlu1 %451 }
 0x428   :  { %v3343_v61 = vadd.f32 %v452_v13, %v444_v12 }
 0x42a   :  { %2851 = vtanh.f32 %v3343_v61 }
 0x430   :  { %v2852_v15 = vpop.eup %2851 }
 0x431   :  { %457 = vrot.lane.b32.xlu2 %v2852_v15, %s3082_s0 }
 0x46b   :  { %v475_v18 = vpop.permute.xlu2 %474 }
 0x46c   :  { %v3349_v19 = vmul.f32 %v475_v18, %v441_v51  ;;  %v642_v51 = vsel %vm507_vm10, 1, %v3081_v3 }
 0x46e   :  { %v3356_v57 = vsel %vm494_vm7, %v3349_v19, %v3300_v6 }
 0x46f   :  { %v535_v20 = vpack.c.bf16 %v3356_v57, %v3356_v57 }
 0x471   :  { %537 = vrot.lane.b32.xlu1 %v535_v20, %s3083_s5 }
 0x479   :  { %480 = vperm.xlu1 %2816, %v478_v23  }
 0x48b   :  { %v458_v25 = vpop.permute.xlu2 %457 }
 0x48c   :  { %v3366_v26 = vmul.f32 %v458_v25, %v421_v62 }
 0x4e3   :  { %v538_v24 = vpop.permute.xlu1 %537 }
 0x4e4   :  { %2679 = vmatmul.msk.bf16.vlgmr.msra.gmra.mxu3 %vm105_vm0, %v538_v24 }
 0x4e5   :  { %984 = vmatpush.bf16.msra.mxu3 %v3236_v21 }
 0x4e9   :  { %985 = vmatpush.bf16.msra.mxu3 %v3243_v22 }
 0x4eb   :  { %v3368_v27 = vpop.permute.xlu1 %480 }
 0x4ec   :  { %vm482_vm9 = vcmp.eq.s32.totalorder %v3368_v27, 1 }
 0x4ed   :  { %v3375_v28 = vsel %vm482_vm9, %v3366_v26, %v3310_v11 }
 0x4ee   :  { %v511_v29 = vpack.c.bf16 %v3375_v28, %v3375_v28 }
 0x4f0   :  { %513 = vrot.lane.b32.xlu2 %v511_v29, %s3083_s5 }
 0x54a   :  { %v514_v32 = vpop.permute.xlu2 %513 }
 0x54b   :  { %2678 = vmatmul.msk.bf16.vlgmr.msra.gmra.mxu2 %vm105_vm0, %v514_v32 }
 0x54c   :  { %961 = vmatpush.bf16.msra.mxu2 %v3206_v14 }
 0x550   :  { %962 = vmatpush.bf16.msra.mxu2 %v3212_v16 }
 0x567   :  { %v551_v31 = vpop.f32.mrf.mxu3 }
 0x568   :  { %v555_v34 = vadd.f32 %v551_v31, %v534_v33 }
 0x56a   :  { %2853 = vtanh.f32 %v555_v34  ;;  %v2681_v37 = vmul.f32 -1.442695, %v555_v34 }
 0x56c   :  { %2855 = vpow2.f32 %v2681_v37 }
 0x56f   :  { %v553_v35 = vpop.f32.mrf.mxu3 }
 0x570   :  { %v2854_v36 = vpop.eup %2853 }
 0x571   :  { %615 = vrot.lane.b32.xlu0 %v2854_v36, %s3082_s0  ;;  %v3406_v36 = vsel %vm482_vm9, %v3343_v61, %v3340_v9 }
 0x572   :  { %v2856_v38 = vpop.eup %2855 }
 0x573   :  { %v579_v39 = vadd.f32 1.0, %v2856_v38 }
 0x575   :  { %2857 = vrcp.f32 %v579_v39  ;;  %v591_v52 = vand.u32 2147483648, %v579_v39  ;;  %vm585_vm14 = vweird.f32 %v579_v39  ;;  %v589_v53 = vand.u32 2147483647, %v579_v39 }
 0x577   :  { %v592_v55 = vor.u32 1.1754944e-38, %v591_v52  ;;  %vm590_vm1 = vcmp.eq.f32.partialorder %v589_v53, 8.507059e+37 }
 0x57b   :  { %v2858_v41 = vpop.eup %2857 }
 0x57c   :  { %v581_v45 = vmul.f32 %v2858_v41, %v579_v39  ;;  %vm586_vm13 = vweird.f32 %v2858_v41 }
 0x57d   :  { %vm587_vm15 = vmor %vm585_vm14, %vm586_vm13  ;;  %vm659_vm13 = vcmp.gt.s32.totalorder %v3288_v63, 4  ;;  %vm658_vm14 = vcmp.gt.s32.totalorder %v3288_v63, 3 }
 0x57e   :  { %v582_v46 = vsub.f32 1.0, %v581_v45 }
 0x580   :  { %v583_v49 = vmul.f32 %v2858_v41, %v582_v46 }
 0x582   :  { %v584_v50 = vadd.f32 %v2858_v41, %v583_v49 }
 0x584   :  { %v588_v54 = vsel %vm587_vm15, %v2858_v41, %v584_v50 }
 0x585   :  { %v593_v58 = vsel %vm590_vm1, %v592_v55, %v588_v54 }
 0x586   :  { %v613_v33 = vmul.f32 %v593_v58, %v3395_v30 }
 0x5ce   :  { %v527_v43 = vpop.f32.mrf.mxu2 }
 0x5cf   :  { %v531_v44 = vadd.f32 %v527_v43, %v510_v42 }
 0x5d1   :  { %2859 = vtanh.f32 %v531_v44  ;;  %v2680_v62 = vmul.f32 -1.442695, %v531_v44 }
 0x5d3   :  { %2861 = vpow2.f32 %v2680_v62  ;;  %v782_v62 = vsel %vm658_vm14, 1, %v3081_v3 }
 0x5d6   :  { %v529_v47 = vpop.f32.mrf.mxu2 }
 0x5d7   :  { %v2860_v48 = vpop.eup %2859 }
 0x5d8   :  { %598 = vrot.lane.b32.xlu2 %v2860_v48, %s3082_s0 }
 0x5d9   :  { %v2862_v0 = vpop.eup %2861 }
 0x5da   :  { %v559_v2 = vadd.f32 1.0, %v2862_v0 }
 0x5dc   :  { %2863 = vrcp.f32 %v559_v2  ;;  %v571_v18 = vand.u32 2147483648, %v559_v2  ;;  %vm565_vm4 = vweird.f32 %v559_v2  ;;  %v569_v20 = vand.u32 2147483647, %v559_v2 }
 0x5de   :  { %v572_v24 = vor.u32 1.1754944e-38, %v571_v18  ;;  %vm570_vm6 = vcmp.eq.f32.partialorder %v569_v20, 8.507059e+37 }
 0x5e0   :  { %644 = vperm.xlu2 %2814, %v642_v51  }
 0x5e2   :  { %v2864_v4 = vpop.eup %2863 }
 0x5e3   :  { %v616_v56 = vpop.permute.xlu0 %615  ;;  %v561_v8 = vmul.f32 %v2864_v4, %v559_v2  ;;  %vm566_vm3 = vweird.f32 %v2864_v4 }
 0x5e4   :  { %v618_v59 = vmul.f32 %v616_v56, %v593_v58  ;;  %vm567_vm5 = vmor %vm565_vm4, %vm566_vm3 }
 0x5e5   :  { %v562_v12 = vsub.f32 1.0, %v561_v8 }
 0x5e6   :  { %620 = vrot.lane.b32.xlu1 %v618_v59, %s3083_s5  ;;  %v794_v59 = vsel %vm659_vm13, 1, %v3081_v3 }
 0x5e7   :  { %v563_v13 = vmul.f32 %v2864_v4, %v562_v12 }
 0x5e8   :  { %632 = vperm.xlu2 %2814, %v630_v60  }
 0x5e9   :  { %v564_v15 = vadd.f32 %v2864_v4, %v563_v13 }
 0x5eb   :  { %v568_v23 = vsel %vm567_vm5, %v2864_v4, %v564_v15 }
 0x5ec   :  { %v573_v29 = vsel %vm570_vm6, %v572_v24, %v568_v23 }
 0x5ed   :  { %v596_v37 = vmul.f32 %v573_v29, %v3406_v36 }
 0x632   :  { %v599_v25 = vpop.permute.xlu2 %598 }
 0x633   :  { %v601_v32 = vmul.f32 %v599_v25, %v573_v29 }
 0x635   :  { %603 = vrot.lane.b32.xlu0 %v601_v32, %s3083_s5 }
 0x63a   :  { %v3413_v39 = vpop.permute.xlu2 %644 }
 0x63b   :  { %vm646_vm8 = vcmp.eq.s32.totalorder %v3413_v39, 1 }
 0x642   :  { %v3427_v42 = vpop.permute.xlu2 %632 }
 0x643   :  { %vm634_vm10 = vcmp.eq.s32.totalorder %v3427_v42, 1 }
 0x658   :  { %v621_v31 = vpop.permute.xlu1 %620 }
 0x659   :  { %v3398_v34 = vadd.f32 %v621_v31, %v613_v33 }
 0x65b   :  { %2865 = vtanh.f32 %v3398_v34 }
 0x661   :  { %v2866_v35 = vpop.eup %2865 }
 0x662   :  { %626 = vrot.lane.b32.xlu1 %v2866_v35, %s3082_s0 }
 0x6a7   :  { %v604_v1 = vpop.permute.xlu0 %603 }
 0x6a8   :  { %v3409_v7 = vadd.f32 %v604_v1, %v596_v37 }
 0x6aa   :  { %2867 = vtanh.f32 %v3409_v7 }
 0x6b0   :  { %v2868_v38 = vpop.eup %2867 }
 0x6b1   :  { %609 = vrot.lane.b32.xlu1 %v2868_v38, %s3082_s0 }
 0x6d4   :  { %v627_v40 = vpop.permute.xlu1 %626 }
 0x6d5   :  { %v3415_v41 = vmul.f32 %v627_v40, %v593_v58 }
 0x6d7   :  { %v3422_v9 = vsel %vm646_vm8, %v3415_v41, %v3356_v57 }
 0x6d8   :  { %v687_v61 = vpack.c.bf16 %v3422_v9, %v3422_v9 }
 0x6da   :  { %689 = vrot.lane.b32.xlu0 %v687_v61, %s3083_s5 }
 0x723   :  { %v610_v43 = vpop.permute.xlu1 %609 }
 0x724   :  { %v3429_v44 = vmul.f32 %v610_v43, %v573_v29 }
 0x726   :  { %v3436_v45 = vsel %vm634_vm10, %v3429_v44, %v3375_v28  ;;  %v3447_v28 = vld [vmem:[#allocation2 + $0x24] sm:$0xff]  }
 0x727   :  { %v663_v57 = vpack.c.bf16 %v3436_v45, %v3436_v45  ;;  %v686_v48 = vunpack.c.l.bf16 %v3447_v28 }
 0x729   :  { %665 = vrot.lane.b32.xlu0 %v663_v57, %s3083_s5 }
 0x74c   :  { %v690_v46 = vpop.permute.xlu0 %689 }
 0x74d   :  { %2683 = vmatmul.msk.bf16.vlgmr.msrb.gmra.mxu3 %vm105_vm0, %v690_v46 }
 0x74e   :  { %1256 = vmatpush.bf16.msrb.mxu3 %v3236_v21  ;;  %v3451_v21 = vld [vmem:[#allocation2 + $0x18] sm:$0xff]  }
 0x752   :  { %1257 = vmatpush.bf16.msrb.mxu3 %v3243_v22  ;;  %v662_v22 = vunpack.c.l.bf16 %v3451_v21 }
 0x79b   :  { %v666_v47 = vpop.permute.xlu0 %665 }
 0x79c   :  { %2682 = vmatmul.msk.bf16.vlgmr.msrb.gmra.mxu2 %vm105_vm0, %v666_v47  ;;  %v3465_v47 = vsel %vm646_vm8, %v3398_v34, %v3395_v30  ;;  %v3480_v30 = vsel %vm634_vm10, %v3409_v7, %v3406_v36 }
 0x79d   :  { %1233 = vmatpush.bf16.msrb.mxu2 %v3206_v14 }
 0x7a1   :  { %1234 = vmatpush.bf16.msrb.mxu2 %v3212_v16 }
 0x7d0   :  { %v703_v49 = vpop.f32.mrf.mxu3 }
 0x7d1   :  { %v707_v50 = vadd.f32 %v703_v49, %v686_v48 }
 0x7d3   :  { %2869 = vtanh.f32 %v707_v50  ;;  %v2685_v53 = vmul.f32 -1.442695, %v707_v50 }
 0x7d8   :  { %v705_v51 = vpop.f32.mrf.mxu3 }
 0x7d9   :  { %v2870_v52 = vpop.eup %2869 }
 0x7da   :  { %767 = vrot.lane.b32.xlu1 %v2870_v52, %s3082_s0 }
 0x81f   :  { %v679_v54 = vpop.f32.mrf.mxu2 }
 0x820   :  { %v683_v14 = vadd.f32 %v679_v54, %v662_v22 }
 0x822   :  { %2871 = vtanh.f32 %v683_v14  ;;  %v2684_v63 = vmul.f32 -1.442695, %v683_v14 }
 0x823   :  { %2873 = vpow2.f32 %v2685_v53 }
 0x827   :  { %v681_v16 = vpop.f32.mrf.mxu2 }
 0x828   :  { %v2872_v55 = vpop.eup %2871 }
 0x829   :  { %v2874_v56 = vpop.eup %2873  ;;  %750 = vrot.lane.b32.xlu0 %v2872_v55, %s3082_s0 }
 0x82a   :  { %v731_v58 = vadd.f32 1.0, %v2874_v56 }
 0x82c   :  { %2875 = vrcp.f32 %v731_v58  ;;  %v743_v12 = vand.u32 2147483648, %v731_v58  ;;  %vm737_vm1 = vweird.f32 %v731_v58  ;;  %v741_v13 = vand.u32 2147483647, %v731_v58 }
 0x82d   :  { %2877 = vpow2.f32 %v2684_v63 }
 0x82e   :  { %v744_v18 = vor.u32 1.1754944e-38, %v743_v12  ;;  %vm742_vm3 = vcmp.eq.f32.partialorder %v741_v13, 8.507059e+37 }
 0x831   :  { %796 = vperm.xlu0 %2815, %v794_v59  }
 0x832   :  { %v2876_v60 = vpop.eup %2875 }
 0x833   :  { %v733_v0 = vmul.f32 %v2876_v60, %v731_v58  ;;  %vm738_vm15 = vweird.f32 %v2876_v60  ;;  %v2878_v25 = vpop.eup %2877 }
 0x834   :  { %vm739_vm2 = vmor %vm737_vm1, %vm738_vm15  ;;  %v711_v29 = vadd.f32 1.0, %v2878_v25 }
 0x835   :  { %v734_v2 = vsub.f32 1.0, %v733_v0  ;;  %v834_v0 = vunpack.c.h.bf16 %v3451_v21 }
 0x836   :  { %2879 = vrcp.f32 %v711_v29  ;;  %v723_v1 = vand.u32 2147483648, %v711_v29  ;;  %vm717_vm5 = vweird.f32 %v711_v29  ;;  %v721_v38 = vand.u32 2147483647, %v711_v29 }
 0x837   :  { %v735_v4 = vmul.f32 %v2876_v60, %v734_v2 }
 0x838   :  { %v724_v61 = vor.u32 1.1754944e-38, %v723_v1  ;;  %vm722_vm13 = vcmp.eq.f32.partialorder %v721_v38, 8.507059e+37 }
 0x839   :  { %784 = vperm.xlu0 %2815, %v782_v62   ;;  %v736_v8 = vadd.f32 %v2876_v60, %v735_v4 }
 0x83b   :  { %v740_v15 = vsel %vm739_vm2, %v2876_v60, %v736_v8 }
 0x83c   :  { %v745_v20 = vsel %vm742_vm3, %v744_v18, %v740_v15  ;;  %v2880_v32 = vpop.eup %2879 }
 0x83d   :  { %v713_v33 = vmul.f32 %v2880_v32, %v711_v29  ;;  %vm718_vm4 = vweird.f32 %v2880_v32  ;;  %v765_v48 = vmul.f32 %v745_v20, %v3465_v47 }
 0x83e   :  { %vm719_vm6 = vmor %vm717_vm5, %vm718_vm4 }
 0x83f   :  { %v714_v31 = vsub.f32 1.0, %v713_v33  ;;  %v810_v33 = vld [vmem:[#allocation2 + $0x20] sm:$0xf] }
 0x840   :  { %v811_v1 = vunpack.c.l.bf16 %v810_v33 }
 0x841   :  { %v715_v35 = vmul.f32 %v2880_v32, %v714_v31 }
 0x843   :  { %v716_v37 = vadd.f32 %v2880_v32, %v715_v35 }
 0x845   :  { %v720_v40 = vsel %vm719_vm6, %v2880_v32, %v716_v37 }
 0x846   :  { %v725_v57 = vsel %vm722_vm13, %v724_v61, %v720_v40 }
 0x847   :  { %v748_v34 = vmul.f32 %v725_v57, %v3480_v30 }
 0x84c   :  { %v768_v23 = vpop.permute.xlu1 %767 }
 0x84d   :  { %v770_v24 = vmul.f32 %v768_v23, %v745_v20 }
 0x84f   :  { %772 = vrot.lane.b32.xlu2 %v770_v24, %s3083_s5 }
 0x89b   :  { %v751_v43 = vpop.permute.xlu0 %750 }
 0x89c   :  { %v753_v46 = vmul.f32 %v751_v43, %v725_v57 }
 0x89e   :  { %755 = vrot.lane.b32.xlu1 %v753_v46, %s3083_s5 }
 0x8a3   :  { %v3472_v52 = vpop.permute.xlu0 %796 }
 0x8a4   :  { %vm798_vm14 = vcmp.eq.s32.totalorder %v3472_v52, 1 }
 0x8a9   :  { %v773_v49 = vpop.permute.xlu2 %772 }
 0x8aa   :  { %v3468_v50 = vadd.f32 %v773_v49, %v765_v48 }
 0x8ab   :  { %v3497_v7 = vpop.permute.xlu0 %784 }
 0x8ac   :  { %2881 = vtanh.f32 %v3468_v50  ;;  %vm786_vm15 = vcmp.eq.s32.totalorder %v3497_v7, 1 }
 0x8b2   :  { %v2882_v51 = vpop.eup %2881 }
 0x8b3   :  { %778 = vrot.lane.b32.xlu2 %v2882_v51, %s3082_s0 }
 0x90d   :  { %v779_v22 = vpop.permute.xlu2 %778 }
 0x90e   :  { %v3474_v53 = vmul.f32 %v779_v22, %v745_v20 }
 0x910   :  { %v756_v54 = vpop.permute.xlu1 %755  ;;  %v3488_v14 = vsel %vm798_vm14, %v3474_v53, %v3422_v9 }
 0x911   :  { %v3490_v16 = vadd.f32 %v756_v54, %v748_v34  ;;  %v835_v55 = vpack.c.bf16 %v3488_v14, %v3488_v14  ;;  %v3521_v34 = vsel %vm798_vm14, %v3468_v50, %v3465_v47 }
 0x913   :  { %2883 = vtanh.f32 %v3490_v16  ;;  %837 = vrot.lane.b32.xlu1 %v835_v55, %s3083_s5 }
 0x919   :  { %v2884_v36 = vpop.eup %2883 }
 0x91a   :  { %761 = vrot.lane.b32.xlu2 %v2884_v36, %s3082_s0 }
 0x974   :  { %v762_v56 = vpop.permute.xlu2 %761 }
 0x975   :  { %v3499_v58 = vmul.f32 %v762_v56, %v725_v57 }
 0x977   :  { %v3506_v9 = vsel %vm786_vm15, %v3499_v58, %v3436_v45 }
 0x978   :  { %v812_v59 = vpack.c.bf16 %v3506_v9, %v3506_v9 }
 0x97a   :  { %814 = vrot.lane.b32.xlu1 %v812_v59, %s3083_s5 }
 0x985   :  { %v838_v60 = vpop.permute.xlu1 %837 }
 0x986   :  { %2687 = vmatmul.msk.bf16.vlgmr.msrb.gmra.mxu1 %vm105_vm0, %v838_v60 }
 0x9ec   :  { %v815_v62 = vpop.permute.xlu1 %814 }
 0x9ed   :  { %2686 = vmatmul.msk.bf16.vlgmr.msrb.gmra.mxu0 %vm105_vm0, %v815_v62 }
 0xa03   :  { %v851_v2 = vpop.f32.mrf.mxu1 }
 0xa04   :  { %v855_v4 = vadd.f32 %v851_v2, %v834_v0 }
 0xa06   :  { %2885 = vtanh.f32 %v855_v4  ;;  %v2689_v45 = vmul.f32 -1.442695, %v855_v4 }
 0xa08   :  { %2887 = vpow2.f32 %v2689_v45 }
 0xa0b   :  { %v853_v8 = vpop.f32.mrf.mxu1 }
 0xa0c   :  { %v2886_v12 = vpop.eup %2885 }
 0xa0d   :  { %915 = vrot.lane.b32.xlu2 %v2886_v12, %s3082_s0  ;;  %v3533_v12 = vsel %vm786_vm15, %v3490_v16, %v3480_v30 }
 0xa0e   :  { %v2888_v13 = vpop.eup %2887 }
 0xa0f   :  { %v879_v15 = vadd.f32 1.0, %v2888_v13 }
 0xa11   :  { %2889 = vrcp.f32 %v879_v15  ;;  %v891_v25 = vand.u32 2147483648, %v879_v15  ;;  %vm885_vm2 = vweird.f32 %v879_v15  ;;  %v889_v21 = vand.u32 2147483647, %v879_v15 }
 0xa13   :  { %v892_v32 = vor.u32 1.1754944e-38, %v891_v25  ;;  %vm890_vm4 = vcmp.eq.f32.partialorder %v889_v21, 8.507059e+37 }
 0xa17   :  { %v2890_v18 = vpop.eup %2889 }
 0xa18   :  { %v881_v20 = vmul.f32 %v2890_v18, %v879_v15  ;;  %vm886_vm1 = vweird.f32 %v2890_v18 }
 0xa19   :  { %vm887_vm3 = vmor %vm885_vm2, %vm886_vm1 }
 0xa1a   :  { %v882_v23 = vsub.f32 1.0, %v881_v20 }
 0xa1c   :  { %v883_v24 = vmul.f32 %v2890_v18, %v882_v23 }
 0xa1e   :  { %v884_v63 = vadd.f32 %v2890_v18, %v883_v24 }
 0xa20   :  { %v888_v29 = vsel %vm887_vm3, %v2890_v18, %v884_v63 }
 0xa21   :  { %v893_v35 = vsel %vm890_vm4, %v892_v32, %v888_v29  ;;  %v969_v32 = vld [vmem:[#allocation2 + $0x14] sm:$0xf] }
 0xa22   :  { %v913_v54 = vmul.f32 %v893_v35, %v3521_v34  ;;  %v970_v33 = vunpack.c.l.bf16 %v969_v32 }
 0xa67   :  { %v916_v31 = vpop.permute.xlu2 %915 }
 0xa68   :  { %v918_v37 = vmul.f32 %v916_v31, %v893_v35 }
 0xa6a   :  { %920 = vrot.lane.b32.xlu0 %v918_v37, %s3083_s5  ;;  %v828_v38 = vpop.f32.mrf.mxu0 }
 0xa6b   :  { %v832_v40 = vadd.f32 %v828_v38, %v811_v1 }
 0xa6d   :  { %2891 = vtanh.f32 %v832_v40  ;;  %v2688_v57 = vmul.f32 -1.442695, %v832_v40 }
 0xa6f   :  { %2893 = vpow2.f32 %v2688_v57 }
 0xa72   :  { %v830_v61 = vpop.f32.mrf.mxu0 }
 0xa73   :  { %v2892_v43 = vpop.eup %2891 }
 0xa74   :  { %898 = vrot.lane.b32.xlu1 %v2892_v43, %s3082_s0 }
 0xa75   :  { %v2894_v46 = vpop.eup %2893 }
 0xa76   :  { %v859_v48 = vadd.f32 1.0, %v2894_v46 }
 0xa78   :  { %2895 = vrcp.f32 %v859_v48  ;;  %v871_v60 = vand.u32 2147483648, %v859_v48  ;;  %vm865_vm6 = vweird.f32 %v859_v48  ;;  %v869_v62 = vand.u32 2147483647, %v859_v48 }
 0xa7a   :  { %v872_v2 = vor.u32 1.1754944e-38, %v871_v60  ;;  %vm870_vm1 = vcmp.eq.f32.partialorder %v869_v62, 8.507059e+37 }
 0xa7e   :  { %v2896_v49 = vpop.eup %2895 }
 0xa7f   :  { %v861_v51 = vmul.f32 %v2896_v49, %v859_v48  ;;  %vm866_vm5 = vweird.f32 %v2896_v49 }
 0xa80   :  { %vm867_vm13 = vmor %vm865_vm6, %vm866_vm5 }
 0xa81   :  { %v862_v22 = vsub.f32 1.0, %v861_v51 }
 0xa83   :  { %v863_v55 = vmul.f32 %v2896_v49, %v862_v22 }
 0xa85   :  { %v864_v59 = vadd.f32 %v2896_v49, %v863_v55 }
 0xa87   :  { %v868_v0 = vsel %vm867_vm13, %v2896_v49, %v864_v59 }
 0xa88   :  { %v873_v50 = vsel %vm870_vm1, %v872_v2, %v868_v0 }
 0xa89   :  { %v896_v45 = vmul.f32 %v873_v50, %v3533_v12 }
 0xadc   :  { %v921_v36 = vpop.permute.xlu0 %920 }
 0xadd   :  { %v3524_v56 = vadd.f32 %v921_v36, %v913_v54 }
 0xadf   :  { %2897 = vtanh.f32 %v3524_v56 }
 0xae5   :  { %v2898_v4 = vpop.eup %2897 }
 0xae6   :  { %926 = vrot.lane.b32.xlu0 %v2898_v4, %s3082_s0  ;;  %v899_v47 = vpop.permute.xlu1 %898 }
 0xae7   :  { %v901_v8 = vmul.f32 %v899_v47, %v873_v50 }
 0xae9   :  { %903 = vrot.lane.b32.xlu2 %v901_v8, %s3083_s5 }
 0xb43   :  { %v904_v13 = vpop.permute.xlu2 %903 }
 0xb44   :  { %v3536_v15 = vadd.f32 %v904_v13, %v896_v45 }
 0xb46   :  { %2899 = vtanh.f32 %v3536_v15 }
 0xb4c   :  { %v2900_v18 = vpop.eup %2899 }
 0xb4d   :  { %909 = vrot.lane.b32.xlu2 %v2900_v18, %s3082_s0 }
 0xb58   :  { %v927_v20 = vpop.permute.xlu0 %926 }
 0xb59   :  { %v3540_v23 = vmul.f32 %v927_v20, %v893_v35 }
 0xb5b   :  { %v3546_v24 = vsel %vm786_vm15, %v3540_v23, %v3488_v14 }
 0xb5c   :  { %v971_v30 = vpack.c.bf16 %v3546_v24, %v3546_v24 }
 0xb5e   :  { %973 = vrot.lane.b32.xlu1 %v971_v30, %s3083_s5 }
 0xba7   :  { %v910_v16 = vpop.permute.xlu2 %909 }
 0xba8   :  { %v3551_v63 = vmul.f32 %v910_v16, %v873_v50 }
 0xbaa   :  { %v3557_v25 = vsel %vm798_vm14, %v3551_v63, %v3506_v9  ;;  %v947_v9 = vunpack.c.h.bf16 %v3447_v28 }
 0xbab   :  { %v948_v21 = vpack.c.bf16 %v3557_v25, %v3557_v25 }
 0xbad   :  { %950 = vrot.lane.b32.xlu0 %v948_v21, %s3083_s5 }
 0xbd0   :  { %v974_v14 = vpop.permute.xlu1 %973 }
 0xbd1   :  { %2691 = vmatmul.msk.bf16.vlgmr.msra.gmra.mxu3 %vm105_vm0, %v974_v14 }
 0xc1f   :  { %v951_v29 = vpop.permute.xlu0 %950 }
 0xc20   :  { %2690 = vmatmul.msk.bf16.vlgmr.msra.gmra.mxu2 %vm105_vm0, %v951_v29 }
 0xc54   :  { %v987_v31 = vpop.f32.mrf.mxu3 }
 0xc55   :  { %v991_v35 = vadd.f32 %v987_v31, %v970_v33  ;;  %v3573_v31 = vsel %vm786_vm15, %v3524_v56, %v3521_v34 }
 0xc57   :  { %2901 = vtanh.f32 %v991_v35  ;;  %v2693_v38 = vmul.f32 -1.442695, %v991_v35 }
 0xc5c   :  { %v989_v37 = vpop.f32.mrf.mxu3 }
 0xc5d   :  { %v2902_v1 = vpop.eup %2901 }
 0xc5e   :  { %1051 = vrot.lane.b32.xlu1 %v2902_v1, %s3082_s0 }
 0xca3   :  { %v964_v40 = vpop.f32.mrf.mxu2 }
 0xca4   :  { %v968_v61 = vadd.f32 %v964_v40, %v947_v9 }
 0xca6   :  { %2903 = vtanh.f32 %v968_v61  ;;  %v2692_v4 = vmul.f32 -1.442695, %v968_v61  ;;  %v3586_v61 = vsel %vm798_vm14, %v3536_v15, %v3533_v12 }
 0xca7   :  { %2905 = vpow2.f32 %v2693_v38 }
 0xcab   :  { %v966_v43 = vpop.f32.mrf.mxu2 }
 0xcac   :  { %v2904_v57 = vpop.eup %2903 }
 0xcad   :  { %v2906_v46 = vpop.eup %2905  ;;  %1034 = vrot.lane.b32.xlu0 %v2904_v57, %s3082_s0 }
 0xcae   :  { %v1015_v48 = vadd.f32 1.0, %v2906_v46 }
 0xcb0   :  { %2907 = vrcp.f32 %v1015_v48  ;;  %v1027_v36 = vand.u32 2147483648, %v1015_v48  ;;  %vm1021_vm3 = vweird.f32 %v1015_v48  ;;  %v1025_v28 = vand.u32 2147483647, %v1015_v48 }
 0xcb1   :  { %2909 = vpow2.f32 %v2692_v4 }
 0xcb2   :  { %v1028_v60 = vor.u32 1.1754944e-38, %v1027_v36  ;;  %vm1026_vm5 = vcmp.eq.f32.partialorder %v1025_v28, 8.507059e+37 }
 0xcb6   :  { %v2908_v49 = vpop.eup %2907 }
 0xcb7   :  { %v1017_v51 = vmul.f32 %v2908_v49, %v1015_v48  ;;  %vm1022_vm2 = vweird.f32 %v2908_v49  ;;  %v2910_v47 = vpop.eup %2909 }
 0xcb8   :  { %vm1023_vm4 = vmor %vm1021_vm3, %vm1022_vm2  ;;  %v995_v50 = vadd.f32 1.0, %v2910_v47 }
 0xcb9   :  { %v1018_v22 = vsub.f32 1.0, %v1017_v51 }
 0xcba   :  { %2911 = vrcp.f32 %v995_v50  ;;  %v1007_v30 = vand.u32 2147483648, %v995_v50  ;;  %vm1001_vm13 = vweird.f32 %v995_v50  ;;  %v1005_v16 = vand.u32 2147483647, %v995_v50 }
 0xcbb   :  { %v1019_v54 = vmul.f32 %v2908_v49, %v1018_v22 }
 0xcbc   :  { %v1008_v14 = vor.u32 1.1754944e-38, %v1007_v30  ;;  %vm1006_vm2 = vcmp.eq.f32.partialorder %v1005_v16, 8.507059e+37 }
 0xcbd   :  { %v1020_v55 = vadd.f32 %v2908_v49, %v1019_v54  ;;  %v1105_v54 = vld [vmem:[#allocation2 + $0xc] sm:$0xf] }
 0xcbf   :  { %v1024_v59 = vsel %vm1023_vm4, %v2908_v49, %v1020_v55  ;;  %v1106_v55 = vunpack.c.l.bf16 %v1105_v54 }
 0xcc0   :  { %v1029_v0 = vsel %vm1026_vm5, %v1028_v60, %v1024_v59  ;;  %v2912_v8 = vpop.eup %2911 }
 0xcc1   :  { %v997_v45 = vmul.f32 %v2912_v8, %v995_v50  ;;  %vm1002_vm6 = vweird.f32 %v2912_v8  ;;  %v1049_v35 = vmul.f32 %v1029_v0, %v3573_v31 }
 0xcc2   :  { %vm1003_vm1 = vmor %vm1001_vm13, %vm1002_vm6 }
 0xcc3   :  { %v998_v13 = vsub.f32 1.0, %v997_v45 }
 0xcc5   :  { %v999_v18 = vmul.f32 %v2912_v8, %v998_v13 }
 0xcc7   :  { %v1000_v20 = vadd.f32 %v2912_v8, %v999_v18 }
 0xcc9   :  { %v1004_v21 = vsel %vm1003_vm1, %v2912_v8, %v1000_v20 }
 0xcca   :  { %v1009_v32 = vsel %vm1006_vm2, %v1008_v14, %v1004_v21 }
 0xccb   :  { %v1032_v34 = vmul.f32 %v1009_v32, %v3586_v61 }
 0xcd0   :  { %v1052_v62 = vpop.permute.xlu1 %1051 }
 0xcd1   :  { %v1054_v2 = vmul.f32 %v1052_v62, %v1029_v0 }
 0xcd3   :  { %1056 = vrot.lane.b32.xlu2 %v1054_v2, %s3083_s5  ;;  %v1082_v2 = vld [vmem:[#allocation2 + $0x30] sm:$0xf] }
 0xcd4   :  { %v1083_v47 = vunpack.c.l.bf16 %v1082_v2 }
 0xd1f   :  { %v1035_v29 = vpop.permute.xlu0 %1034 }
 0xd20   :  { %v1037_v33 = vmul.f32 %v1035_v29, %v1009_v32 }
 0xd22   :  { %1039 = vrot.lane.b32.xlu1 %v1037_v33, %s3083_s5 }
 0xd2d   :  { %v1057_v37 = vpop.permute.xlu2 %1056 }
 0xd2e   :  { %v3576_v1 = vadd.f32 %v1057_v37, %v1049_v35 }
 0xd30   :  { %2913 = vtanh.f32 %v3576_v1 }
 0xd36   :  { %v2914_v9 = vpop.eup %2913 }
 0xd37   :  { %1062 = vrot.lane.b32.xlu2 %v2914_v9, %s3082_s0 }
 0xd91   :  { %v1063_v38 = vpop.permute.xlu2 %1062 }
 0xd92   :  { %v3580_v40 = vmul.f32 %v1063_v38, %v1029_v0 }
 0xd94   :  { %v1040_v56 = vpop.permute.xlu1 %1039  ;;  %v3593_v43 = vsel %vm634_vm10, %v3580_v40, %v3546_v24 }
 0xd95   :  { %v3595_v57 = vadd.f32 %v1040_v56, %v1032_v34  ;;  %v1107_v46 = vpack.c.bf16 %v3593_v43, %v3593_v43 }
 0xd97   :  { %2915 = vtanh.f32 %v3595_v57  ;;  %1109 = vrot.lane.b32.xlu0 %v1107_v46, %s3083_s5 }
 0xd9d   :  { %v2916_v12 = vpop.eup %2915 }
 0xd9e   :  { %1045 = vrot.lane.b32.xlu1 %v2916_v12, %s3082_s0 }
 0xe09   :  { %v1110_v15 = vpop.permute.xlu0 %1109 }
 0xe0a   :  { %2695 = vmatmul.msk.bf16.vlgmr.msra.gmra.mxu1 %vm105_vm0, %v1110_v15 }
 0xe10   :  { %v1046_v48 = vpop.permute.xlu1 %1045 }
 0xe11   :  { %v3603_v49 = vmul.f32 %v1046_v48, %v1009_v32 }
 0xe13   :  { %v3609_v24 = vsel %vm646_vm8, %v3603_v49, %v3557_v25 }
 0xe14   :  { %v1084_v51 = vpack.c.bf16 %v3609_v24, %v3609_v24 }
 0xe16   :  { %1086 = vrot.lane.b32.xlu2 %v1084_v51, %s3083_s5 }
 0xe70   :  { %v1087_v22 = vpop.permute.xlu2 %1086 }
 0xe71   :  { %2694 = vmatmul.msk.bf16.vlgmr.msra.gmra.mxu0 %vm105_vm0, %v1087_v22 }
 0xe87   :  { %v1123_v36 = vpop.f32.mrf.mxu1 }
 0xe88   :  { %v1127_v28 = vadd.f32 %v1123_v36, %v1106_v55 }
 0xe8a   :  { %2917 = vtanh.f32 %v1127_v28  ;;  %v2697_v62 = vmul.f32 -1.442695, %v1127_v28 }
 0xe8c   :  { %2919 = vpow2.f32 %v2697_v62 }
 0xe8f   :  { %v1125_v59 = vpop.f32.mrf.mxu1 }
 0xe90   :  { %v2918_v60 = vpop.eup %2917 }
 0xe91   :  { %1187 = vrot.lane.b32.xlu0 %v2918_v60, %s3082_s0  ;;  %v3623_v60 = vsel %vm634_vm10, %v3576_v1, %v3573_v31 }
 0xe92   :  { %v2920_v25 = vpop.eup %2919 }
 0xe93   :  { %v1151_v0 = vadd.f32 1.0, %v2920_v25 }
 0xe95   :  { %2921 = vrcp.f32 %v1151_v0  ;;  %v1163_v21 = vand.u32 2147483648, %v1151_v0  ;;  %vm1157_vm4 = vweird.f32 %v1151_v0  ;;  %v1161_v14 = vand.u32 2147483647, %v1151_v0 }
 0xe97   :  { %v1164_v32 = vor.u32 1.1754944e-38, %v1163_v21  ;;  %vm1162_vm6 = vcmp.eq.f32.partialorder %v1161_v14, 8.507059e+37 }
 0xe9b   :  { %v2922_v4 = vpop.eup %2921 }
 0xe9c   :  { %v1153_v45 = vmul.f32 %v2922_v4, %v1151_v0  ;;  %vm1158_vm3 = vweird.f32 %v2922_v4 }
 0xe9d   :  { %vm1159_vm5 = vmor %vm1157_vm4, %vm1158_vm3 }
 0xe9e   :  { %v1154_v13 = vsub.f32 1.0, %v1153_v45 }
 0xea0   :  { %v1155_v30 = vmul.f32 %v2922_v4, %v1154_v13 }
 0xea2   :  { %v1156_v16 = vadd.f32 %v2922_v4, %v1155_v30 }
 0xea4   :  { %v1160_v29 = vsel %vm1159_vm5, %v2922_v4, %v1156_v16  ;;  %v3634_v4 = vsel %vm646_vm8, %v3595_v57, %v3586_v61 }
 0xea5   :  { %v1165_v35 = vsel %vm1162_vm6, %v1164_v32, %v1160_v29 }
 0xea6   :  { %v1185_v62 = vmul.f32 %v1165_v35, %v3623_v60 }
 0xeee   :  { %v1100_v50 = vpop.f32.mrf.mxu0 }
 0xeef   :  { %v1104_v8 = vadd.f32 %v1100_v50, %v1083_v47 }
 0xef1   :  { %2923 = vtanh.f32 %v1104_v8  ;;  %v2696_v9 = vmul.f32 -1.442695, %v1104_v8 }
 0xef3   :  { %2925 = vpow2.f32 %v2696_v9 }
 0xef6   :  { %v1102_v18 = vpop.f32.mrf.mxu0 }
 0xef7   :  { %v2924_v20 = vpop.eup %2923 }
 0xef8   :  { %1170 = vrot.lane.b32.xlu2 %v2924_v20, %s3082_s0 }
 0xef9   :  { %v2926_v38 = vpop.eup %2925 }
 0xefa   :  { %v1131_v34 = vadd.f32 1.0, %v2926_v38 }
 0xefc   :  { %2927 = vrcp.f32 %v1131_v34  ;;  %v1143_v51 = vand.u32 2147483648, %v1131_v34  ;;  %vm1137_vm1 = vweird.f32 %v1131_v34  ;;  %v1141_v22 = vand.u32 2147483647, %v1131_v34 }
 0xefe   :  { %v1144_v55 = vor.u32 1.1754944e-38, %v1143_v51  ;;  %vm1142_vm3 = vcmp.eq.f32.partialorder %v1141_v22, 8.507059e+37 }
 0xf02   :  { %v2928_v56 = vpop.eup %2927 }
 0xf03   :  { %v1188_v33 = vpop.permute.xlu0 %1187  ;;  %v1133_v46 = vmul.f32 %v2928_v56, %v1131_v34  ;;  %vm1138_vm13 = vweird.f32 %v2928_v56 }
 0xf04   :  { %v1190_v37 = vmul.f32 %v1188_v33, %v1165_v35  ;;  %vm1139_vm2 = vmor %vm1137_vm1, %vm1138_vm13 }
 0xf05   :  { %v1134_v12 = vsub.f32 1.0, %v1133_v46 }
 0xf06   :  { %1192 = vrot.lane.b32.xlu1 %v1190_v37, %s3083_s5 }
 0xf07   :  { %v1135_v15 = vmul.f32 %v2928_v56, %v1134_v12 }
 0xf09   :  { %v1136_v48 = vadd.f32 %v2928_v56, %v1135_v15 }
 0xf0b   :  { %v1140_v54 = vsel %vm1139_vm2, %v2928_v56, %v1136_v48 }
 0xf0c   :  { %v1145_v28 = vsel %vm1142_vm3, %v1144_v55, %v1140_v54  ;;  %v1218_v54 = vld [vmem:[#allocation2 + $0x38] sm:$0xf] }
 0xf0d   :  { %v1168_v47 = vmul.f32 %v1145_v28, %v3634_v4 }
 0xf52   :  { %v1171_v36 = vpop.permute.xlu2 %1170 }
 0xf53   :  { %v1173_v59 = vmul.f32 %v1171_v36, %v1145_v28 }
 0xf55   :  { %1175 = vrot.lane.b32.xlu0 %v1173_v59, %s3083_s5  ;;  %v1219_v59 = vunpack.c.l.bf16 %v1218_v54 }
 0xf78   :  { %v1193_v25 = vpop.permute.xlu1 %1192 }
 0xf79   :  { %v3626_v0 = vadd.f32 %v1193_v25, %v1185_v62 }
 0xf7b   :  { %2929 = vtanh.f32 %v3626_v0 }
 0xf81   :  { %v2930_v2 = vpop.eup %2929 }
 0xf82   :  { %1198 = vrot.lane.b32.xlu1 %v2930_v2, %s3082_s0 }
 0xfc7   :  { %v1176_v31 = vpop.permute.xlu0 %1175 }
 0xfc8   :  { %v3637_v1 = vadd.f32 %v1176_v31, %v1168_v47 }
 0xfca   :  { %2931 = vtanh.f32 %v3637_v1 }
 0xfd0   :  { %v2932_v50 = vpop.eup %2931 }
 0xfd1   :  { %1181 = vrot.lane.b32.xlu0 %v2932_v50, %s3082_s0 }
 0xff4   :  { %v1199_v8 = vpop.permute.xlu1 %1198 }
 0xff5   :  { %v3641_v45 = vmul.f32 %v1199_v8, %v1165_v35 }
 0xff7   :  { %v1216_v13 = vsel %vm482_vm9, %v3641_v45, %v3593_v43  ;;  %v1241_v43 = vld [vmem:[#allocation2 + $0x4] sm:$0xf] }
 0xff8   :  { %v1243_v61 = vpack.c.bf16 %v1216_v13, %v1216_v13  ;;  %v1242_v14 = vunpack.c.l.bf16 %v1241_v43 }
 0xffa   :  { %1245 = vrot.lane.b32.xlu2 %v1243_v61, %s3083_s5 }
0x1043   :  { %v1182_v57 = vpop.permute.xlu0 %1181 }
0x1044   :  { %v3648_v18 = vmul.f32 %v1182_v57, %v1145_v28 }
0x1046   :  { %v1214_v20 = vsel %vm494_vm7, %v3648_v18, %v3609_v24 }
0x1047   :  { %v1220_v30 = vpack.c.bf16 %v1214_v20, %v1214_v20  ;;  %v1217_v20 = vsel %vm482_vm9, %v3626_v0, %v3623_v60  ;;  %v1208_v0 = vsel %vm482_vm9, %v3641_v45, 0.0  ;;  %v1072_v45 = vsel %vm634_vm10, %v3580_v40, 0.0 }
0x1049   :  { %1222 = vrot.lane.b32.xlu1 %v1220_v30, %s3083_s5 }
0x1054   :  { %v1246_v16 = vpop.permute.xlu2 %1245 }
0x1055   :  { %2699 = vmatmul.msk.bf16.vlgmr.msrb.gmra.mxu3 %vm105_vm0, %v1246_v16 }
0x10bb   :  { %v1223_v21 = vpop.permute.xlu1 %1222 }
0x10bc   :  { %2698 = vmatmul.msk.bf16.vlgmr.msrb.gmra.mxu2 %vm105_vm0, %v1223_v21 }
0x10d8   :  { %v1259_v29 = vpop.f32.mrf.mxu3 }
0x10d9   :  { %v1263_v32 = vadd.f32 %v1259_v29, %v1242_v14 }
0x10db   :  { %2933 = vtanh.f32 %v1263_v32  ;;  %v2701_v37 = vmul.f32 -1.442695, %v1263_v32 }
0x10dd   :  { %2935 = vpow2.f32 %v2701_v37 }
0x10e0   :  { %v1261_v33 = vpop.f32.mrf.mxu3 }
0x10e1   :  { %v2934_v35 = vpop.eup %2933 }
0x10e2   :  { %1323 = vrot.lane.b32.xlu2 %v2934_v35, %s3082_s0 }
0x10e3   :  { %v2936_v24 = vpop.eup %2935 }
0x10e4   :  { %v1287_v9 = vadd.f32 1.0, %v2936_v24 }
0x10e6   :  { %2937 = vrcp.f32 %v1287_v9  ;;  %v1299_v15 = vand.u32 2147483648, %v1287_v9  ;;  %vm1293_vm5 = vweird.f32 %v1287_v9  ;;  %v1297_v48 = vand.u32 2147483647, %v1287_v9 }
0x10e8   :  { %v1300_v22 = vor.u32 1.1754944e-38, %v1299_v15  ;;  %vm1298_vm13 = vcmp.eq.f32.partialorder %v1297_v48, 8.507059e+37 }
0x10ec   :  { %v2938_v38 = vpop.eup %2937 }
0x10ed   :  { %v1289_v34 = vmul.f32 %v2938_v38, %v1287_v9  ;;  %vm1294_vm4 = vweird.f32 %v2938_v38 }
0x10ee   :  { %vm1295_vm6 = vmor %vm1293_vm5, %vm1294_vm4  ;;  %vm350_vm5 = vcmask 523520  }
0x10ef   :  { %v1290_v56 = vsub.f32 1.0, %v1289_v34  ;;  %v635_v34 = vsel %vm634_vm10, %v3429_v44, 0.0  ;;  %v1215_v44 = vsel %vm494_vm7, %v3637_v1, %v3634_v4 }
0x10f1   :  { %v1291_v46 = vmul.f32 %v2938_v38, %v1290_v56  ;;  %v930_v56 = vsel %vm798_vm14, %v3551_v63, 0.0 }
0x10f3   :  { %v1292_v12 = vadd.f32 %v2938_v38, %v1291_v46 }
0x10f5   :  { %v1296_v51 = vsel %vm1295_vm6, %v2938_v38, %v1292_v12  ;;  %v483_v38 = vsel %vm482_vm9, %v3366_v26, 0.0  ;;  %v495_v26 = vsel %vm494_vm7, %v3349_v19, 0.0  ;;  %v936_v19 = vsel %vm786_vm15, %v3540_v23, 0.0 }
0x10f6   :  { %v3658_v36 = vsel %vm1298_vm13, %v1300_v22, %v1296_v51  ;;  %v799_v51 = vsel %vm798_vm14, %v3474_v53, 0.0  ;;  %v787_v23 = vsel %vm786_vm15, %v3499_v58, 0.0  ;;  %v647_v53 = vsel %vm646_vm8, %v3415_v41, 0.0  ;;  %v2728_v41 = vld [vmem:[%s4250_s6 + $0x30] sm:$0xf] }
0x10f7   :  { %v1321_v30 = vmul.f32 %v3658_v36, %v1217_v20  ;;  %v1066_v58 = vsel %vm646_vm8, %v3603_v49, 0.0  ;;  %v2805_v49 = vld [vmem:[%s4250_s6 + $0x34] sm:$0xf0]  ;;  %vm1424_vm6 = vcmask 523264  }
0x113c   :  { %v1324_v55 = vpop.permute.xlu2 %1323 }
0x113d   :  { %v1326_v28 = vmul.f32 %v1324_v55, %v3658_v36 }
0x113f   :  { %1328 = vrot.lane.b32.xlu0 %v1326_v28, %s3083_s5  ;;  %v1236_v62 = vpop.f32.mrf.mxu2 }
0x1140   :  { %v1240_v25 = vadd.f32 %v1236_v62, %v1219_v59  ;;  %v2804_v59 = vld [vmem:[%s4250_s6 + $0x34] sm:$0xf]  ;;  %v2729_v62 = vor.u32 %v2805_v49, %v2728_v41 }
0x1142   :  { %2939 = vtanh.f32 %v1240_v25  ;;  %v2700_v31 = vmul.f32 -1.442695, %v1240_v25  ;;  %v2720_v25 = vld [vmem:[%s4250_s6 + $0x20] sm:$0xf]  ;;  %1441 = vmatpush.bf16.msrb.mxu0 %v2729_v62 }
0x1144   :  { %2941 = vpow2.f32 %v2700_v31  ;;  %v2802_v31 = vld [vmem:[%s4250_s6 + $0x24] sm:$0xf] }
0x1147   :  { %v1238_v2 = vpop.f32.mrf.mxu2 }
0x1148   :  { %v2940_v47 = vpop.eup %2939  ;;  %v2803_v2 = vld [vmem:[%s4250_s6 + $0x24] sm:$0xf0] }
0x1149   :  { %1306 = vrot.lane.b32.xlu1 %v2940_v47, %s3082_s0 }
0x114a   :  { %v2942_v50 = vpop.eup %2941 }
0x114b   :  { %v1267_v8 = vadd.f32 1.0, %v2942_v50  ;;  %v2722_v50 = vld [vmem:[%s4250_s6 + $0x28] sm:$0xf0] }
0x114d   :  { %2943 = vrcp.f32 %v1267_v8  ;;  %v1279_v14 = vand.u32 2147483648, %v1267_v8  ;;  %vm1273_vm2 = vweird.f32 %v1267_v8  ;;  %v1277_v29 = vand.u32 2147483647, %v1267_v8 }
0x114f   :  { %v1280_v33 = vor.u32 1.1754944e-38, %v1279_v14  ;;  %vm1278_vm4 = vcmp.eq.f32.partialorder %v1277_v29, 8.507059e+37  ;;  %v2714_v14 = vld [vmem:[%s4250_s6 + $0x18] sm:$0xf0]  ;;  %v2704_v29 = vld [vmem:[%s4250_s6] sm:$0xf] }
0x1151   :  { %335 = vrot.lane.b32.xlu1 %v3310_v11, %s3083_s5 }
0x1153   :  { %v2944_v13 = vpop.eup %2943 }
0x1154   :  { %v1269_v61 = vmul.f32 %v2944_v13, %v1267_v8  ;;  %vm1274_vm1 = vweird.f32 %v2944_v13  ;;  %v2721_v8 = vor.u32 %v2803_v2, %v2720_v25 }
0x1155   :  { %vm1275_vm3 = vmor %vm1273_vm2, %vm1274_vm1 }
0x1156   :  { %v1270_v57 = vsub.f32 1.0, %v1269_v61  ;;  %1442 = vmatpush.bf16.msrb.mxu0 %v2721_v8 }
0x1158   :  { %v1271_v16 = vmul.f32 %v2944_v13, %v1270_v57 }
0x115a   :  { %v1272_v11 = vadd.f32 %v2944_v13, %v1271_v16  ;;  %v2712_v16 = vld [vmem:[%s4250_s6 + $0x10] sm:$0xf] }
0x115c   :  { %v1276_v32 = vsel %vm1275_vm3, %v2944_v13, %v1272_v11  ;;  %v2725_v13 = vor.u32 %v2802_v31, %v2722_v50 }
0x115d   :  { %v3670_v24 = vsel %vm1278_vm4, %v1280_v33, %v1276_v32  ;;  %v2799_v32 = vld [vmem:[%s4250_s6 + $0x4] sm:$0xf0] }
0x115e   :  { %v1304_v40 = vmul.f32 %v3670_v24, %v1215_v44 }
0x11b1   :  { %v1329_v21 = vpop.permute.xlu0 %1328 }
0x11b2   :  { %v1331_v43 = vadd.f32 %v1329_v21, %v1321_v30  ;;  %v2801_v21 = vld [vmem:[%s4250_s6 + $0x14] sm:$0xf0] }
0x11b3   :  { %v2713_v11 = vor.u32 %v2801_v21, %v2712_v16 }
0x11b4   :  { %2945 = vtanh.f32 %v1331_v43  ;;  %v2800_v43 = vld [vmem:[%s4250_s6 + $0x14] sm:$0xf] }
0x11b5   :  { %v2717_v33 = vor.u32 %v2800_v43, %v2714_v14  ;;  %1443 = vmatpush.bf16.msrb.mxu0 %v2713_v11 }
0x11ba   :  { %v2946_v35 = vpop.eup %2945 }
0x11bb   :  { %v1307_v37 = vpop.permute.xlu1 %1306  ;;  %1334 = vrot.lane.b32.xlu0 %v2946_v35, %s3082_s0  ;;  %v2798_v35 = vld [vmem:[%s4250_s6 + $0x4] sm:$0xf] }
0x11bc   :  { %v1309_v60 = vmul.f32 %v1307_v37, %v3670_v24  ;;  %v2706_v37 = vld [vmem:[%s4250_s6 + $0x8] sm:$0xf0] }
0x11be   :  { %1311 = vrot.lane.b32.xlu2 %v1309_v60, %s3083_s5  ;;  %v2709_v60 = vor.u32 %v2798_v35, %v2706_v37 }
0x11c3   :  { %v336_v9 = vpop.permute.xlu1 %335  ;;  %1210 = vrot.lane.b32.xlu0 %v1208_v0, %s3082_s0 }
0x11c4   :  { %338 = vst.msk [vmem:[#allocation3] sm:$0xff] %vm105_vm0, %v336_v9  ;;  %v3798_v9 = vld [vmem:[%s4251_s7 + $0x8] sm:$0xff] }
0x11c5   :  { %1531 = vmatpush.bf16.msra.mxu2 %v3798_v9 }
0x11c6   :  { %485 = vrot.lane.b32.xlu2 %v483_v38, %s3083_s5  ;;  %v3804_v38 = vld [vmem:[%s4251_s7] sm:$0xff] }
0x11c9   :  { %1532 = vmatpush.bf16.msra.mxu2 %v3804_v38 }
0x11cb   :  { %637 = vrot.lane.b32.xlu0 %v635_v34, %s3083_s5 }
0x11cc   :  { %1533 = vmatmul.bf16.vlgmr.msra.gmra.mxu2 %v3081_v3 }
0x11cd   :  { %1660 = vmatpush.bf16.msrb.mxu2 %v3798_v9 }
0x11d1   :  { %1661 = vmatpush.bf16.msrb.mxu2 %v3804_v38 }
0x11d3   :  { %1074 = vrot.lane.b32.xlu0 %v1072_v45, %s3082_s0 }
0x11d5   :  { %1784 = vmatpush.bf16.msra.mxu2 %v3798_v9 }
0x11d9   :  { %1785 = vmatpush.bf16.msra.mxu2 %v3804_v38 }
0x11db   :  { %932 = vrot.lane.b32.xlu0 %v930_v56, %s3083_s5 }
0x11e3   :  { %497 = vrot.lane.b32.xlu0 %v495_v26, %s3082_s0 }
0x1218   :  { %v1312_v46 = vpop.permute.xlu2 %1311 }
0x1219   :  { %v1314_v12 = vadd.f32 %v1312_v46, %v1304_v40 }
0x121b   :  { %2947 = vtanh.f32 %v1314_v12 }
0x1220   :  { %v486_v15 = vpop.permute.xlu2 %485 }
0x1221   :  { %v2948_v63 = vpop.eup %2947  ;;  %489 = vst.msk [vmem:[#allocation3 + $0x8] sm:$0xff] %vm105_vm0, %v486_v15 }
0x1222   :  { %1317 = vrot.lane.b32.xlu2 %v2948_v63, %s3082_s0 }
0x122a   :  { %938 = vrot.lane.b32.xlu2 %v936_v19, %s3082_s0 }
0x122d   :  { %v1335_v48 = vpop.permute.xlu0 %1334 }
0x122e   :  { %v1337_v4 = vmul.f32 %v1335_v48, %v3658_v36 }
0x1230   :  { %v1344_v1 = vsel %vm332_vm12, %v1337_v4, 0.0  ;;  %v3830_v4 = vld [vmem:[%s4252_s8 + $0x8] sm:$0xff] }
0x1231   :  { %1346 = vrot.lane.b32.xlu1 %v1344_v1, %s3082_s0  ;;  %1559 = vmatpush.bf16.msra.mxu3 %v3830_v4  ;;  %v3836_v1 = vld [vmem:[%s4252_s8] sm:$0xff] }
0x1232   :  { %801 = vrot.lane.b32.xlu2 %v799_v51, %s3082_s0 }
0x1235   :  { %v1211_v22 = vpop.permute.xlu0 %1210  ;;  %1560 = vmatpush.bf16.msra.mxu3 %v3836_v1 }
0x1236   :  { %1213 = vst.msk [vmem:[#allocation3 + $0x8] sm:$0xff] %vm350_vm5, %v1211_v22 }
0x1238   :  { %1561 = vmatmul.bf16.vlgmr.msra.gmra.mxu3 %v3081_v3 }
0x1239   :  { %789 = vrot.lane.b32.xlu1 %v787_v23, %s3083_s5  ;;  %1683 = vmatpush.bf16.msrb.mxu3 %v3830_v4 }
0x123a   :  { %346 = vrot.lane.b32.xlu2 %v3300_v6, %s3082_s0  ;;  %v1202_v6 = vsel %vm494_vm7, %v3648_v18, 0.0  ;;  %v2730_v18 = vld [vmem:[%s4250_s6 + $0x38] sm:$0xf0] }
0x123b   :  { %v2733_v47 = vor.u32 %v2804_v59, %v2730_v18 }
0x123d   :  { %v638_v54 = vpop.permute.xlu0 %637  ;;  %1470 = vmatpush.bf16.msrb.mxu1 %v2733_v47  ;;  %v1368_v44 = vld [vmem:[#allocation3 + $0x8] sm:$0xff]  ;;  %1684 = vmatpush.bf16.msrb.mxu3 %v3836_v1 }
0x123e   :  { %641 = vst.msk [vmem:[#allocation3 + $0x10] sm:$0xff] %vm105_vm0, %v638_v54 }
0x1241   :  { %649 = vrot.lane.b32.xlu1 %v647_v53, %s3082_s0  ;;  %1471 = vmatpush.bf16.msrb.mxu1 %v2725_v13 }
0x1242   :  { %1807 = vmatpush.bf16.msra.mxu3 %v3830_v4 }
0x1245   :  { %v1075_v55 = vpop.permute.xlu0 %1074  ;;  %1472 = vmatpush.bf16.msrb.mxu1 %v2717_v33 }
0x1246   :  { %1077 = vst.msk [vmem:[#allocation3 + $0x10] sm:$0xff] %vm350_vm5, %v1075_v55  ;;  %1808 = vmatpush.bf16.msra.mxu3 %v3836_v1 }
0x1249   :  { %1068 = vrot.lane.b32.xlu1 %v1066_v58, %s3083_s5  ;;  %1473 = vmatpush.bf16.msrb.mxu1 %v2709_v60 }
0x124d   :  { %v933_v36 = vpop.permute.xlu0 %932  ;;  %v1369_v63 = vld [vmem:[#allocation3 + $0x10] sm:$0xff]  ;;  %2055 = vmatpush.bf16.msra.mxu1 %v3830_v4 }
0x1251   :  { %1204 = vrot.lane.b32.xlu1 %v1202_v6, %s3083_s5  ;;  %2056 = vmatpush.bf16.msra.mxu1 %v3836_v1  ;;  %v1366_v6 = vld [vmem:[%s4253_s9] sm:$0x3] }
0x1252   :  { %v1381_v41 = vperm.slane %v1366_v6, 1 }
0x1255   :  { %v498_v28 = vpop.permute.xlu0 %497 }
0x1256   :  { %501 = vst.msk [vmem:[#allocation3 + $0x30] sm:$0xff] %vm350_vm5, %v498_v28  ;;  %v1380_v28 = vperm.slane %v1366_v6, 0 }
0x127c   :  { %v1318_v61 = vpop.permute.xlu2 %1317 }
0x127d   :  { %v1320_v57 = vmul.f32 %v1318_v61, %v3670_v24  ;;  %v2705_v24 = vor.u32 %v2799_v32, %v2704_v29 }
0x127f   :  { %v1338_v20 = vsel %vm343_vm11, %v1320_v57, 0.0  ;;  %1444 = vmatpush.bf16.msrb.mxu0 %v2705_v24 }
0x1280   :  { %1340 = vrot.lane.b32.xlu2 %v1338_v20, %s3083_s5 }
0x1283   :  { %2032 = vmatpush.bf16.msra.mxu0 %v3798_v9 }
0x1284   :  { %v939_v30 = vpop.permute.xlu2 %938 }
0x1287   :  { %2033 = vmatpush.bf16.msra.mxu0 %v3804_v38 }
0x128c   :  { %v802_v0 = vpop.permute.xlu2 %801 }
0x128d   :  { %805 = vst.msk [vmem:[#allocation3 + $0x20] sm:$0xff] %vm350_vm5, %v802_v0 }
0x128e   :  { %935 = vst.msk [vmem:[#allocation3 + $0x20] sm:$0xff] %vm105_vm0, %v933_v36  ;;  %v1534_v36 = vpop.f32.mrf.mxu2 }
0x1294   :  { %v347_v34 = vpop.permute.xlu2 %346 }
0x1295   :  { %351 = vst.msk [vmem:[#allocation3 + $0x38] sm:$0xff] %vm350_vm5, %v347_v34  ;;  %v1371_v22 = vld [vmem:[#allocation3 + $0x20] sm:$0xff] }
0x1296   :  { %v1536_v3 = vpop.f32.mrf.mxu2 }
0x12a3   :  { %v1347_v45 = vpop.permute.xlu1 %1346 }
0x12a4   :  { %1349 = vst.msk [vmem:[#allocation3] sm:$0xff] %vm350_vm5, %v1347_v45 }
0x12ab   :  { %v790_v56 = vpop.permute.xlu1 %789  ;;  %v1367_v26 = vld [vmem:[#allocation3] sm:$0xff] }
0x12ac   :  { %793 = vst.msk [vmem:[#allocation3 + $0x18] sm:$0xff] %vm105_vm0, %v790_v56  ;;  %v1375_v40 = vpack.c.bf16 %v1368_v44, %v1367_v26 }
0x12ad   :  { %941 = vst.msk [vmem:[#allocation3 + $0x18] sm:$0xff] %vm350_vm5, %v939_v30 }
0x12ae   :  { %2734 = vmatmul.msk.bf16.vlgmr.msrb.gmra.mxu0 %vm1424_vm6, %v1375_v40  ;;  %2738 = vmatmul.msk.bf16.vlgmr.msrb.gmra.mxu1 %vm1424_vm6, %v1375_v40 }
0x12af   :  { %2280 = vmatpush.bf16.msrb.mxu0 %v3798_v9  ;;  %2303 = vmatpush.bf16.msrb.mxu1 %v3830_v4 }
0x12b3   :  { %v650_v46 = vpop.permute.xlu1 %649  ;;  %2281 = vmatpush.bf16.msrb.mxu0 %v3804_v38  ;;  %2304 = vmatpush.bf16.msrb.mxu1 %v3836_v1 }
0x12b4   :  { %653 = vst.msk [vmem:[#allocation3 + $0x28] sm:$0xff] %vm350_vm5, %v650_v46  ;;  %v1370_v12 = vld [vmem:[#allocation3 + $0x18] sm:$0xff] }
0x12b5   :  { %v1376_v19 = vpack.c.bf16 %v1370_v12, %v1369_v63 }
0x12bb   :  { %v1069_v15 = vpop.permute.xlu1 %1068  ;;  %v1562_v45 = vpop.f32.mrf.mxu3 }
0x12bc   :  { %1071 = vst.msk [vmem:[#allocation3 + $0x28] sm:$0xff] %vm105_vm0, %v1069_v15 }
0x12be   :  { %2735 = vmatmul.msk.bf16.gmra.mxu0 %vm1424_vm6, %v1376_v19  ;;  %2739 = vmatmul.msk.bf16.gmra.mxu1 %vm1424_vm6, %v1376_v19 }
0x12c3   :  { %v1205_v48 = vpop.permute.xlu1 %1204  ;;  %v1372_v51 = vld [vmem:[#allocation3 + $0x28] sm:$0xff]  ;;  %v1564_v12 = vpop.f32.mrf.mxu3 }
0x12c4   :  { %1207 = vst.msk [vmem:[#allocation3 + $0x30] sm:$0xff] %vm105_vm0, %v1205_v48  ;;  %v1377_v23 = vpack.c.bf16 %v1372_v51, %v1371_v22 }
0x12cb   :  { %v1373_v53 = vld [vmem:[#allocation3 + $0x30] sm:$0xff] }
0x12ce   :  { %2736 = vmatmul.msk.bf16.gmra.mxu0 %vm1424_vm6, %v1377_v23  ;;  %2740 = vmatmul.msk.bf16.gmra.mxu1 %vm1424_vm6, %v1377_v23 }
0x12da   :  { %v1341_v54 = vpop.permute.xlu2 %1340 }
0x12db   :  { %1343 = vst.msk [vmem:[#allocation3 + $0x38] sm:$0xff] %vm105_vm0, %v1341_v54 }
0x12e2   :  { %v1374_v55 = vld [vmem:[#allocation3 + $0x38] sm:$0xff] }
0x12e3   :  { %v1378_v58 = vpack.c.bf16 %v1374_v55, %v1373_v53 }
0x12e5   :  { %2737 = vmatmul.msk.bf16.gmra.mxu0 %vm1424_vm6, %v1378_v58  ;;  %2741 = vmatmul.msk.bf16.gmra.mxu1 %vm1424_vm6, %v1378_v58 }
0x132b   :  { %v1446_v49 = vpop.f32.mrf.mxu0  ;;  %v1475_v59 = vpop.f32.mrf.mxu1 }
0x132c   :  { %v1447_v62 = vadd.f32 %v1446_v49, %v1380_v28  ;;  %v1476_v18 = vadd.f32 %v1475_v59, %v1381_v41 }
0x132e   :  { %v1495_v25 = vpack.c.bf16 %v1476_v18, %v1447_v62 }
0x1330   :  { %1503 = vst [vmem:[#allocation2] sm:$0xff] %v1495_v25 }
0x1333   :  { %v1448_v2 = vpop.f32.mrf.mxu0  ;;  %v1477_v47 = vpop.f32.mrf.mxu1 }
0x1334   :  { %v1449_v31 = vadd.f32 %v1448_v2, %v1380_v28  ;;  %v1478_v50 = vadd.f32 %v1477_v47, %v1381_v41 }
0x1336   :  { %v1496_v8 = vpack.c.bf16 %v1478_v50, %v1449_v31 }
0x1337   :  { %v1511_v13 = vld [vmem:[#allocation2] sm:$0xf] }
0x1338   :  { %1504 = vst [vmem:[#allocation2 + $0x8] sm:$0xff] %v1496_v8  ;;  %v1512_v61 = vunpack.c.l.bf16 %v1511_v13 }
0x133a   :  { %v1538_v57 = vadd.f32 %v1534_v36, %v1512_v61 }
0x133b   :  { %v1451_v20 = vpop.f32.mrf.mxu0  ;;  %v1480_v30 = vpop.f32.mrf.mxu1 }
0x133c   :  { %2949 = vtanh.f32 %v1538_v57  ;;  %v1452_v16 = vadd.f32 %v1451_v20, %v1380_v28  ;;  %v1481_v21 = vadd.f32 %v1480_v30, %v1381_v41  ;;  %v2758_v49 = vmul.f32 -1.442695, %v1538_v57 }
0x133e   :  { %v1497_v43 = vpack.c.bf16 %v1481_v21, %v1452_v16 }
0x1340   :  { %1505 = vst [vmem:[#allocation2 + $0x10] sm:$0xff] %v1497_v43 }
0x1342   :  { %v2950_v11 = vpop.eup %2949 }
0x1343   :  { %v1453_v14 = vpop.f32.mrf.mxu0  ;;  %v1482_v29 = vpop.f32.mrf.mxu1  ;;  %1609 = vrot.lane.b32.xlu0 %v2950_v11, %s3082_s0 }
0x1344   :  { %v1454_v32 = vadd.f32 %v1453_v14, %v1380_v28  ;;  %v1483_v33 = vadd.f32 %v1482_v29, %v1381_v41 }
0x1346   :  { %v1498_v35 = vpack.c.bf16 %v1483_v33, %v1454_v32 }
0x1348   :  { %1506 = vst [vmem:[#allocation2 + $0x18] sm:$0xff] %v1498_v35 }
0x134b   :  { %v1456_v37 = vpop.f32.mrf.mxu0  ;;  %v1485_v24 = vpop.f32.mrf.mxu1 }
0x134c   :  { %v1457_v60 = vadd.f32 %v1456_v37, %v1380_v28  ;;  %v1486_v0 = vadd.f32 %v1485_v24, %v1381_v41 }
0x134e   :  { %v1499_v34 = vpack.c.bf16 %v1486_v0, %v1457_v60 }
0x1350   :  { %1507 = vst [vmem:[#allocation2 + $0x20] sm:$0xff] %v1499_v34 }
0x1353   :  { %v1458_v56 = vpop.f32.mrf.mxu0  ;;  %v1487_v26 = vpop.f32.mrf.mxu1 }
0x1354   :  { %v1459_v44 = vadd.f32 %v1458_v56, %v1380_v28  ;;  %v1488_v40 = vadd.f32 %v1487_v26, %v1381_v41 }
0x1356   :  { %v1500_v46 = vpack.c.bf16 %v1488_v40, %v1459_v44 }
0x1358   :  { %1508 = vst [vmem:[#allocation2 + $0x28] sm:$0xff] %v1500_v46 }
0x1362   :  { %v1461_v15 = vpop.f32.mrf.mxu0  ;;  %v1490_v63 = vpop.f32.mrf.mxu1 }
0x1363   :  { %v1462_v19 = vadd.f32 %v1461_v15, %v1380_v28  ;;  %v1491_v48 = vadd.f32 %v1490_v63, %v1381_v41 }
0x1365   :  { %v1501_v51 = vpack.c.bf16 %v1491_v48, %v1462_v19 }
0x1367   :  { %1509 = vst [vmem:[#allocation2 + $0x30] sm:$0xff] %v1501_v51 }
0x136a   :  { %v1463_v22 = vpop.f32.mrf.mxu0  ;;  %v1492_v23 = vpop.f32.mrf.mxu1 }
0x136b   :  { %v1464_v54 = vadd.f32 %v1463_v22, %v1380_v28  ;;  %v1493_v53 = vadd.f32 %v1492_v23, %v1381_v41 }
0x136d   :  { %v1502_v55 = vpack.c.bf16 %v1493_v53, %v1464_v54 }
0x136f   :  { %1510 = vst [vmem:[#allocation2 + $0x38] sm:$0xff] %v1502_v55 }
0x1376   :  { %v1539_v58 = vld [vmem:[#allocation2 + $0x3c] sm:$0xf] }
0x1377   :  { %v1540_v36 = vunpack.c.l.bf16 %v1539_v58  ;;  %v1645_v58 = vld [vmem:[#allocation2 + $0x8] sm:$0xf] }
0x1379   :  { %v1566_v3 = vadd.f32 %v1562_v45, %v1540_v36  ;;  %v1646_v36 = vunpack.c.l.bf16 %v1645_v58 }
0x137b   :  { %2951 = vtanh.f32 %v1566_v3  ;;  %v2759_v20 = vmul.f32 -1.442695, %v1566_v3 }
0x137c   :  { %2953 = vpow2.f32 %v2758_v49 }
0x1381   :  { %v2952_v6 = vpop.eup %2951 }
0x1382   :  { %1626 = vrot.lane.b32.xlu1 %v2952_v6, %s3082_s0  ;;  %v2954_v59 = vpop.eup %2953 }
0x1383   :  { %v1570_v62 = vadd.f32 1.0, %v2954_v59 }
0x1385   :  { %2955 = vrcp.f32 %v1570_v62  ;;  %v1582_v41 = vand.u32 2147483648, %v1570_v62  ;;  %vm1576_vm1 = vweird.f32 %v1570_v62  ;;  %v1580_v31 = vand.u32 2147483647, %v1570_v62 }
0x1386   :  { %2957 = vpow2.f32 %v2759_v20 }
0x1387   :  { %v1583_v8 = vor.u32 1.1754944e-38, %v1582_v41  ;;  %vm1581_vm3 = vcmp.eq.f32.partialorder %v1580_v31, 8.507059e+37 }
0x138b   :  { %v2956_v18 = vpop.eup %2955 }
0x138c   :  { %v1572_v25 = vmul.f32 %v2956_v18, %v1570_v62  ;;  %vm1577_vm13 = vweird.f32 %v2956_v18  ;;  %v2958_v30 = vpop.eup %2957 }
0x138d   :  { %vm1578_vm2 = vmor %vm1576_vm1, %vm1577_vm13  ;;  %v1590_v16 = vadd.f32 1.0, %v2958_v30 }
0x138e   :  { %v1573_v2 = vsub.f32 1.0, %v1572_v25 }
0x138f   :  { %2959 = vrcp.f32 %v1590_v16  ;;  %v1602_v32 = vand.u32 2147483648, %v1590_v16  ;;  %vm1596_vm5 = vweird.f32 %v1590_v16  ;;  %v1600_v33 = vand.u32 2147483647, %v1590_v16 }
0x1390   :  { %v1574_v47 = vmul.f32 %v2956_v18, %v1573_v2 }
0x1391   :  { %v1603_v37 = vor.u32 1.1754944e-38, %v1602_v32  ;;  %vm1601_vm1 = vcmp.eq.f32.partialorder %v1600_v33, 8.507059e+37 }
0x1392   :  { %v1575_v28 = vadd.f32 %v2956_v18, %v1574_v47 }
0x1394   :  { %v1579_v50 = vsel %vm1578_vm2, %v2956_v18, %v1575_v28  ;;  %v1668_v18 = vld [vmem:[#allocation2 + $0x34] sm:$0xf] }
0x1395   :  { %v1584_v61 = vsel %vm1581_vm3, %v1583_v8, %v1579_v50  ;;  %v2960_v21 = vpop.eup %2959  ;;  %v1669_v25 = vunpack.c.l.bf16 %v1668_v18 }
0x1396   :  { %v1592_v43 = vmul.f32 %v2960_v21, %v1590_v16  ;;  %vm1597_vm4 = vweird.f32 %v2960_v21  ;;  %v1607_v34 = vmul.f32 0.0, %v1584_v61 }
0x1397   :  { %vm1598_vm13 = vmor %vm1596_vm5, %vm1597_vm4 }
0x1398   :  { %v1593_v11 = vsub.f32 1.0, %v1592_v43 }
0x139a   :  { %v1594_v14 = vmul.f32 %v2960_v21, %v1593_v11 }
0x139c   :  { %v1595_v29 = vadd.f32 %v2960_v21, %v1594_v14 }
0x139e   :  { %v1599_v35 = vsel %vm1598_vm13, %v2960_v21, %v1595_v29 }
0x139f   :  { %v1604_v60 = vsel %vm1601_vm1, %v1603_v37, %v1599_v35 }
0x13a0   :  { %v1624_v44 = vmul.f32 0.0, %v1604_v60 }
0x13b5   :  { %v1610_v13 = vpop.permute.xlu0 %1609 }
0x13b6   :  { %v1612_v57 = vmul.f32 %v1610_v13, %v1584_v61 }
0x13b8   :  { %1614 = vrot.lane.b32.xlu2 %v1612_v57, %s3083_s5 }
0x13f4   :  { %v1627_v24 = vpop.permute.xlu1 %1626 }
0x13f5   :  { %v1629_v0 = vmul.f32 %v1627_v24, %v1604_v60 }
0x13f7   :  { %1631 = vrot.lane.b32.xlu0 %v1629_v0, %s3083_s5 }
0x1412   :  { %v1615_v45 = vpop.permute.xlu2 %1614 }
0x1413   :  { %v3860_v56 = vadd.f32 %v1615_v45, %v1607_v34 }
0x1415   :  { %2961 = vtanh.f32 %v3860_v56 }
0x141b   :  { %v2962_v26 = vpop.eup %2961 }
0x141c   :  { %1620 = vrot.lane.b32.xlu1 %v2962_v26, %s3082_s0 }
0x1469   :  { %v1632_v40 = vpop.permute.xlu0 %1631 }
0x146a   :  { %v3864_v46 = vadd.f32 %v1632_v40, %v1624_v44 }
0x146c   :  { %2963 = vtanh.f32 %v3864_v46 }
0x1472   :  { %v2964_v12 = vpop.eup %2963 }
0x1473   :  { %1637 = vrot.lane.b32.xlu2 %v2964_v12, %s3082_s0 }
0x148e   :  { %v1621_v15 = vpop.permute.xlu1 %1620 }
0x148f   :  { %v1623_v63 = vmul.f32 %v1621_v15, %v1584_v61 }
0x1491   :  { %v3870_v19 = vsel %vm332_vm12, %v1623_v63, 0.0 }
0x1492   :  { %v1647_v48 = vpack.c.bf16 %v3870_v19, %v3870_v19 }
0x1494   :  { %1649 = vrot.lane.b32.xlu0 %v1647_v48, %s3083_s5  ;;  %v3895_v48 = vsel %vm332_vm12, %v3860_v56, 0.0 }
0x14cd   :  { %v1638_v51 = vpop.permute.xlu2 %1637 }
0x14ce   :  { %v1640_v22 = vmul.f32 %v1638_v51, %v1604_v60 }
0x14d0   :  { %v3877_v23 = vsel %vm343_vm11, %v1640_v22, 0.0 }
0x14d1   :  { %v1670_v54 = vpack.c.bf16 %v3877_v23, %v3877_v23 }
0x14d3   :  { %1672 = vrot.lane.b32.xlu1 %v1670_v54, %s3083_s5 }
0x1506   :  { %v1650_v53 = vpop.permute.xlu0 %1649 }
0x1507   :  { %2760 = vmatmul.msk.bf16.vlgmr.msrb.gmra.mxu2 %vm105_vm0, %v1650_v53 }
0x1508   :  { %1908 = vmatpush.bf16.msrb.mxu2 %v3798_v9 }
0x150c   :  { %1909 = vmatpush.bf16.msrb.mxu2 %v3804_v38 }
0x1545   :  { %v1673_v55 = vpop.permute.xlu1 %1672 }
0x1546   :  { %2761 = vmatmul.msk.bf16.vlgmr.msrb.gmra.mxu3 %vm105_vm0, %v1673_v55  ;;  %v3905_v55 = vsel %vm343_vm11, %v3864_v46, 0.0 }
0x1547   :  { %1931 = vmatpush.bf16.msrb.mxu3 %v3830_v4 }
0x154b   :  { %1932 = vmatpush.bf16.msrb.mxu3 %v3836_v1 }
0x158a   :  { %v1663_v3 = vpop.f32.mrf.mxu2 }
0x158b   :  { %v1667_v6 = vadd.f32 %v1663_v3, %v1646_v36 }
0x158d   :  { %2965 = vtanh.f32 %v1667_v6  ;;  %v2762_v62 = vmul.f32 -1.442695, %v1667_v6 }
0x158f   :  { %2967 = vpow2.f32 %v2762_v62 }
0x1592   :  { %v1665_v49 = vpop.f32.mrf.mxu2 }
0x1593   :  { %v2966_v59 = vpop.eup %2965 }
0x1594   :  { %1733 = vrot.lane.b32.xlu2 %v2966_v59, %s3082_s0 }
0x1595   :  { %v2968_v28 = vpop.eup %2967 }
0x1596   :  { %v1694_v41 = vadd.f32 1.0, %v2968_v28 }
0x1598   :  { %v1706_v30 = vand.u32 2147483648, %v1694_v41  ;;  %vm1700_vm3 = vweird.f32 %v1694_v41  ;;  %v1704_v16 = vand.u32 2147483647, %v1694_v41 }
0x159a   :  { %v1707_v43 = vor.u32 1.1754944e-38, %v1706_v30  ;;  %vm1705_vm5 = vcmp.eq.f32.partialorder %v1704_v16, 8.507059e+37 }
0x15c9   :  { %v1686_v2 = vpop.f32.mrf.mxu3 }
0x15ca   :  { %v1690_v47 = vadd.f32 %v1686_v2, %v1669_v25 }
0x15cc   :  { %2969 = vtanh.f32 %v1690_v47  ;;  %v2763_v32 = vmul.f32 -1.442695, %v1690_v47 }
0x15cd   :  { %2971 = vrcp.f32 %v1694_v41 }
0x15ce   :  { %2973 = vpow2.f32 %v2763_v32 }
0x15d1   :  { %v1688_v31 = vpop.f32.mrf.mxu3 }
0x15d2   :  { %v2970_v50 = vpop.eup %2969 }
0x15d3   :  { %1750 = vrot.lane.b32.xlu0 %v2970_v50, %s3082_s0  ;;  %v2972_v8 = vpop.eup %2971 }
0x15d4   :  { %v1696_v13 = vmul.f32 %v2972_v8, %v1694_v41  ;;  %vm1701_vm2 = vweird.f32 %v2972_v8  ;;  %v2974_v33 = vpop.eup %2973 }
0x15d5   :  { %vm1702_vm4 = vmor %vm1700_vm3, %vm1701_vm2  ;;  %v1714_v35 = vadd.f32 1.0, %v2974_v33 }
0x15d6   :  { %v1697_v61 = vsub.f32 1.0, %v1696_v13 }
0x15d7   :  { %2975 = vrcp.f32 %v1714_v35  ;;  %v1726_v45 = vand.u32 2147483648, %v1714_v35  ;;  %vm1720_vm1 = vweird.f32 %v1714_v35  ;;  %v1724_v26 = vand.u32 2147483647, %v1714_v35 }
0x15d8   :  { %v1698_v57 = vmul.f32 %v2972_v8, %v1697_v61  ;;  %v1792_v61 = vld [vmem:[#allocation2 + $0x2c] sm:$0xf] }
0x15d9   :  { %v1727_v40 = vor.u32 1.1754944e-38, %v1726_v45  ;;  %vm1725_vm3 = vcmp.eq.f32.partialorder %v1724_v26, 8.507059e+37 }
0x15da   :  { %v1699_v20 = vadd.f32 %v2972_v8, %v1698_v57  ;;  %v1793_v57 = vunpack.c.l.bf16 %v1792_v61 }
0x15dc   :  { %v1703_v21 = vsel %vm1702_vm4, %v2972_v8, %v1699_v20 }
0x15dd   :  { %v1708_v14 = vsel %vm1705_vm5, %v1707_v43, %v1703_v21  ;;  %v2976_v37 = vpop.eup %2975 }
0x15de   :  { %v1716_v24 = vmul.f32 %v2976_v37, %v1714_v35  ;;  %vm1721_vm13 = vweird.f32 %v2976_v37  ;;  %v1731_v51 = vmul.f32 %v1708_v14, %v3895_v48 }
0x15df   :  { %vm1722_vm2 = vmor %vm1720_vm1, %vm1721_vm13 }
0x15e0   :  { %v1717_v60 = vsub.f32 1.0, %v1716_v24 }
0x15e2   :  { %v1718_v0 = vmul.f32 %v2976_v37, %v1717_v60 }
0x15e4   :  { %v1719_v34 = vadd.f32 %v2976_v37, %v1718_v0 }
0x15e6   :  { %v1723_v44 = vsel %vm1722_vm2, %v2976_v37, %v1719_v34 }
0x15e7   :  { %v1728_v15 = vsel %vm1725_vm3, %v1727_v40, %v1723_v44 }
0x15e8   :  { %v1748_v58 = vmul.f32 %v1728_v15, %v3905_v55 }
0x15ee   :  { %v1734_v11 = vpop.permute.xlu2 %1733 }
0x15ef   :  { %v1736_v29 = vmul.f32 %v1734_v11, %v1708_v14 }
0x15f1   :  { %1738 = vrot.lane.b32.xlu1 %v1736_v29, %s3083_s5 }
0x1645   :  { %v1751_v12 = vpop.permute.xlu0 %1750 }
0x1646   :  { %v1753_v63 = vmul.f32 %v1751_v12, %v1728_v15 }
0x1648   :  { %1755 = vrot.lane.b32.xlu2 %v1753_v63, %s3083_s5 }
0x1663   :  { %v1739_v22 = vpop.permute.xlu1 %1738 }
0x1664   :  { %v3898_v54 = vadd.f32 %v1739_v22, %v1731_v51 }
0x1666   :  { %2977 = vtanh.f32 %v3898_v54 }
0x166c   :  { %v2978_v53 = vpop.eup %2977 }
0x166d   :  { %1744 = vrot.lane.b32.xlu0 %v2978_v53, %s3082_s0 }
0x16a2   :  { %v1756_v36 = vpop.permute.xlu2 %1755 }
0x16a3   :  { %v3908_v56 = vadd.f32 %v1756_v36, %v1748_v58 }
0x16a5   :  { %2979 = vtanh.f32 %v3908_v56 }
0x16ab   :  { %v2980_v3 = vpop.eup %2979 }
0x16ac   :  { %1761 = vrot.lane.b32.xlu1 %v2980_v3, %s3082_s0 }
0x16df   :  { %v1745_v6 = vpop.permute.xlu0 %1744 }
0x16e0   :  { %v1747_v49 = vmul.f32 %v1745_v6, %v1708_v14 }
0x16e2   :  { %v3915_v59 = vsel %vm482_vm9, %v1747_v49, %v3870_v19 }
0x16e3   :  { %v1771_v46 = vpack.c.bf16 %v3915_v59, %v3915_v59 }
0x16e5   :  { %1773 = vrot.lane.b32.xlu2 %v1771_v46, %s3083_s5 }
0x171e   :  { %v1762_v62 = vpop.permute.xlu1 %1761 }
0x171f   :  { %v1764_v18 = vmul.f32 %v1762_v62, %v1728_v15 }
0x1721   :  { %v3923_v25 = vsel %vm494_vm7, %v1764_v18, %v3877_v23  ;;  %v1769_v23 = vld [vmem:[#allocation2 + $0x10] sm:$0xf]  ;;  %v3942_v18 = vsel %vm482_vm9, %v3898_v54, %v3895_v48 }
0x1722   :  { %v1794_v2 = vpack.c.bf16 %v3923_v25, %v3923_v25  ;;  %v1770_v28 = vunpack.c.l.bf16 %v1769_v23 }
0x1724   :  { %1796 = vrot.lane.b32.xlu0 %v1794_v2, %s3083_s5 }
0x173f   :  { %v1774_v47 = vpop.permute.xlu2 %1773 }
0x1740   :  { %2764 = vmatmul.msk.bf16.vlgmr.msra.gmra.mxu2 %vm105_vm0, %v1774_v47 }
0x1741   :  { %2156 = vmatpush.bf16.msra.mxu2 %v3798_v9 }
0x1745   :  { %2157 = vmatpush.bf16.msra.mxu2 %v3804_v38 }
0x1796   :  { %v1797_v19 = vpop.permute.xlu0 %1796 }
0x1797   :  { %2765 = vmatmul.msk.bf16.vlgmr.msra.gmra.mxu3 %vm105_vm0, %v1797_v19 }
0x1798   :  { %2179 = vmatpush.bf16.msra.mxu3 %v3830_v4 }
0x179c   :  { %2180 = vmatpush.bf16.msra.mxu3 %v3836_v1 }
0x17c3   :  { %v1787_v41 = vpop.f32.mrf.mxu2 }
0x17c4   :  { %v1791_v31 = vadd.f32 %v1787_v41, %v1770_v28  ;;  %v3953_v28 = vsel %vm494_vm7, %v3908_v56, %v3905_v55 }
0x17c6   :  { %2981 = vtanh.f32 %v1791_v31  ;;  %v2766_v13 = vmul.f32 -1.442695, %v1791_v31 }
0x17c8   :  { %2983 = vpow2.f32 %v2766_v13 }
0x17cb   :  { %v1789_v50 = vpop.f32.mrf.mxu2 }
0x17cc   :  { %v2982_v8 = vpop.eup %2981 }
0x17cd   :  { %1857 = vrot.lane.b32.xlu1 %v2982_v8, %s3082_s0 }
0x17ce   :  { %v2984_v16 = vpop.eup %2983 }
0x17cf   :  { %v1818_v21 = vadd.f32 1.0, %v2984_v16 }
0x17d1   :  { %v1830_v37 = vand.u32 2147483648, %v1818_v21  ;;  %vm1824_vm5 = vweird.f32 %v1818_v21  ;;  %v1828_v24 = vand.u32 2147483647, %v1818_v21 }
0x17d3   :  { %v1831_v0 = vor.u32 1.1754944e-38, %v1830_v37  ;;  %vm1829_vm1 = vcmp.eq.f32.partialorder %v1828_v24, 8.507059e+37 }
0x181a   :  { %v1810_v20 = vpop.f32.mrf.mxu3 }
0x181b   :  { %v1814_v30 = vadd.f32 %v1810_v20, %v1793_v57 }
0x181d   :  { %2985 = vtanh.f32 %v1814_v30  ;;  %v2767_v44 = vmul.f32 -1.442695, %v1814_v30 }
0x181e   :  { %2987 = vrcp.f32 %v1818_v21 }
0x181f   :  { %2989 = vpow2.f32 %v2767_v44 }
0x1822   :  { %v1812_v43 = vpop.f32.mrf.mxu3 }
0x1823   :  { %v2986_v11 = vpop.eup %2985 }
0x1824   :  { %1874 = vrot.lane.b32.xlu2 %v2986_v11, %s3082_s0  ;;  %v2988_v14 = vpop.eup %2987 }
0x1825   :  { %v1820_v29 = vmul.f32 %v2988_v14, %v1818_v21  ;;  %vm1825_vm4 = vweird.f32 %v2988_v14  ;;  %v2990_v40 = vpop.eup %2989 }
0x1826   :  { %vm1826_vm13 = vmor %vm1824_vm5, %vm1825_vm4  ;;  %v1838_v12 = vadd.f32 1.0, %v2990_v40 }
0x1827   :  { %v1821_v32 = vsub.f32 1.0, %v1820_v29 }
0x1828   :  { %2991 = vrcp.f32 %v1838_v12  ;;  %v1850_v58 = vand.u32 2147483648, %v1838_v12  ;;  %vm1844_vm3 = vweird.f32 %v1838_v12  ;;  %v1848_v36 = vand.u32 2147483647, %v1838_v12 }
0x1829   :  { %v1822_v33 = vmul.f32 %v2988_v14, %v1821_v32 }
0x182a   :  { %v1851_v6 = vor.u32 1.1754944e-38, %v1850_v58  ;;  %vm1849_vm5 = vcmp.eq.f32.partialorder %v1848_v36, 8.507059e+37 }
0x182b   :  { %v1823_v35 = vadd.f32 %v2988_v14, %v1822_v33 }
0x182d   :  { %v1827_v60 = vsel %vm1826_vm13, %v2988_v14, %v1823_v35 }
0x182e   :  { %v1832_v34 = vsel %vm1829_vm1, %v1831_v0, %v1827_v60  ;;  %v2992_v15 = vpop.eup %2991 }
0x182f   :  { %v1840_v63 = vmul.f32 %v2992_v15, %v1838_v12  ;;  %vm1845_vm2 = vweird.f32 %v2992_v15  ;;  %v1855_v2 = vmul.f32 %v1832_v34, %v3942_v18 }
0x1830   :  { %vm1846_vm4 = vmor %vm1844_vm3, %vm1845_vm2 }
0x1831   :  { %v1841_v51 = vsub.f32 1.0, %v1840_v63 }
0x1833   :  { %v1842_v22 = vmul.f32 %v2992_v15, %v1841_v51 }
0x1835   :  { %v1843_v53 = vadd.f32 %v2992_v15, %v1842_v22 }
0x1837   :  { %v1847_v3 = vsel %vm1846_vm4, %v2992_v15, %v1843_v53 }
0x1838   :  { %v1852_v46 = vsel %vm1849_vm5, %v1851_v6, %v1847_v3 }
0x1839   :  { %v1872_v41 = vmul.f32 %v1852_v46, %v3953_v28 }
0x183f   :  { %v1858_v45 = vpop.permute.xlu1 %1857 }
0x1840   :  { %v1860_v26 = vmul.f32 %v1858_v45, %v1832_v34 }
0x1842   :  { %1862 = vrot.lane.b32.xlu0 %v1860_v26, %s3083_s5 }
0x187e   :  { %v1875_v49 = vpop.permute.xlu2 %1874 }
0x187f   :  { %v1877_v62 = vmul.f32 %v1875_v49, %v1852_v46 }
0x1881   :  { %1879 = vrot.lane.b32.xlu1 %v1877_v62, %s3083_s5 }
0x18b4   :  { %v1863_v47 = vpop.permute.xlu0 %1862 }
0x18b5   :  { %v3945_v19 = vadd.f32 %v1863_v47, %v1855_v2 }
0x18b7   :  { %2993 = vtanh.f32 %v3945_v19 }
0x18bd   :  { %v2994_v23 = vpop.eup %2993 }
0x18be   :  { %1868 = vrot.lane.b32.xlu2 %v2994_v23, %s3082_s0 }
0x18f3   :  { %v1880_v48 = vpop.permute.xlu1 %1879 }
0x18f4   :  { %v3956_v54 = vadd.f32 %v1880_v48, %v1872_v41 }
0x18f6   :  { %2995 = vtanh.f32 %v3956_v54 }
0x18fc   :  { %v2996_v31 = vpop.eup %2995 }
0x18fd   :  { %1885 = vrot.lane.b32.xlu0 %v2996_v31, %s3082_s0 }
0x1918   :  { %v1869_v50 = vpop.permute.xlu2 %1868 }
0x1919   :  { %v1871_v8 = vmul.f32 %v1869_v50, %v1832_v34  ;;  %v3996_v50 = vsel %vm634_vm10, %v3945_v19, %v3942_v18 }
0x191b   :  { %v3963_v13 = vsel %vm634_vm10, %v1871_v8, %v3915_v59 }
0x191c   :  { %v1895_v55 = vpack.c.bf16 %v3963_v13, %v3963_v13 }
0x191e   :  { %1897 = vrot.lane.b32.xlu1 %v1895_v55, %s3083_s5 }
0x196f   :  { %v1886_v56 = vpop.permute.xlu0 %1885 }
0x1970   :  { %v1888_v61 = vmul.f32 %v1886_v56, %v1852_v46 }
0x1972   :  { %v3971_v57 = vsel %vm646_vm8, %v1888_v61, %v3923_v25  ;;  %v3982_v25 = vld [vmem:[#allocation2 + $0x18] sm:$0xff]  }
0x1973   :  { %v1918_v20 = vpack.c.bf16 %v3971_v57, %v3971_v57  ;;  %v1894_v16 = vunpack.c.l.bf16 %v3982_v25 }
0x1975   :  { %1920 = vrot.lane.b32.xlu2 %v1918_v20, %s3083_s5  ;;  %v4007_v20 = vsel %vm646_vm8, %v3956_v54, %v3953_v28 }
0x1990   :  { %v1898_v30 = vpop.permute.xlu1 %1897 }
0x1991   :  { %2768 = vmatmul.msk.bf16.vlgmr.msrb.gmra.mxu2 %vm105_vm0, %v1898_v30 }
0x1992   :  { %2404 = vmatpush.bf16.msrb.mxu2 %v3798_v9  ;;  %v3986_v9 = vld [vmem:[#allocation2 + $0x24] sm:$0xff]  }
0x1996   :  { %2405 = vmatpush.bf16.msrb.mxu2 %v3804_v38  ;;  %v1917_v38 = vunpack.c.l.bf16 %v3986_v9 }
0x19cf   :  { %v1921_v59 = vpop.permute.xlu2 %1920 }
0x19d0   :  { %2769 = vmatmul.msk.bf16.vlgmr.msrb.gmra.mxu3 %vm105_vm0, %v1921_v59 }
0x19d1   :  { %2427 = vmatpush.bf16.msrb.mxu3 %v3830_v4 }
0x19d5   :  { %2428 = vmatpush.bf16.msrb.mxu3 %v3836_v1 }
0x1a14   :  { %v1911_v21 = vpop.f32.mrf.mxu2 }
0x1a15   :  { %v1915_v43 = vadd.f32 %v1911_v21, %v1894_v16 }
0x1a17   :  { %2997 = vtanh.f32 %v1915_v43  ;;  %v2770_v33 = vmul.f32 -1.442695, %v1915_v43 }
0x1a1c   :  { %v1913_v11 = vpop.f32.mrf.mxu2 }
0x1a1d   :  { %v2998_v14 = vpop.eup %2997 }
0x1a1e   :  { %1981 = vrot.lane.b32.xlu0 %v2998_v14, %s3082_s0 }
0x1a53   :  { %v1934_v29 = vpop.f32.mrf.mxu3 }
0x1a54   :  { %v1938_v32 = vadd.f32 %v1934_v29, %v1917_v38 }
0x1a56   :  { %2999 = vtanh.f32 %v1938_v32  ;;  %v2771_v22 = vmul.f32 -1.442695, %v1938_v32  ;;  %v2017_v32 = vld [vmem:[#allocation2 + $0x20] sm:$0xf] }
0x1a57   :  { %3001 = vpow2.f32 %v2770_v33 }
0x1a5b   :  { %v1936_v4 = vpop.f32.mrf.mxu3 }
0x1a5c   :  { %v3000_v1 = vpop.eup %2999  ;;  %v2018_v4 = vunpack.c.l.bf16 %v2017_v32 }
0x1a5d   :  { %1998 = vrot.lane.b32.xlu1 %v3000_v1, %s3082_s0  ;;  %v3002_v35 = vpop.eup %3001 }
0x1a5e   :  { %v1942_v37 = vadd.f32 1.0, %v3002_v35 }
0x1a60   :  { %3003 = vrcp.f32 %v1942_v37  ;;  %v1954_v26 = vand.u32 2147483648, %v1942_v37  ;;  %vm1948_vm1 = vweird.f32 %v1942_v37  ;;  %v1952_v44 = vand.u32 2147483647, %v1942_v37 }
0x1a61   :  { %3005 = vpow2.f32 %v2771_v22 }
0x1a62   :  { %v1955_v12 = vor.u32 1.1754944e-38, %v1954_v26  ;;  %vm1953_vm3 = vcmp.eq.f32.partialorder %v1952_v44, 8.507059e+37 }
0x1a66   :  { %v3004_v24 = vpop.eup %3003 }
0x1a67   :  { %v1944_v60 = vmul.f32 %v3004_v24, %v1942_v37  ;;  %vm1949_vm13 = vweird.f32 %v3004_v24  ;;  %v3006_v53 = vpop.eup %3005 }
0x1a68   :  { %vm1950_vm2 = vmor %vm1948_vm1, %vm1949_vm13  ;;  %v1962_v58 = vadd.f32 1.0, %v3006_v53 }
0x1a69   :  { %v1945_v0 = vsub.f32 1.0, %v1944_v60 }
0x1a6a   :  { %3007 = vrcp.f32 %v1962_v58  ;;  %v1974_v62 = vand.u32 2147483648, %v1962_v58  ;;  %vm1968_vm5 = vweird.f32 %v1962_v58  ;;  %v1972_v2 = vand.u32 2147483647, %v1962_v58 }
0x1a6b   :  { %v1946_v34 = vmul.f32 %v3004_v24, %v1945_v0 }
0x1a6c   :  { %v1975_v23 = vor.u32 1.1754944e-38, %v1974_v62  ;;  %vm1973_vm1 = vcmp.eq.f32.partialorder %v1972_v2, 8.507059e+37 }
0x1a6d   :  { %v1947_v45 = vadd.f32 %v3004_v24, %v1946_v34 }
0x1a6f   :  { %v1951_v40 = vsel %vm1950_vm2, %v3004_v24, %v1947_v45  ;;  %v2041_v24 = vunpack.c.h.bf16 %v3982_v25 }
0x1a70   :  { %v1956_v63 = vsel %vm1953_vm3, %v1955_v12, %v1951_v40  ;;  %v3008_v36 = vpop.eup %3007 }
0x1a71   :  { %v1964_v3 = vmul.f32 %v3008_v36, %v1962_v58  ;;  %vm1969_vm4 = vweird.f32 %v3008_v36  ;;  %v1979_v8 = vmul.f32 %v1956_v63, %v3996_v50 }
0x1a72   :  { %vm1970_vm13 = vmor %vm1968_vm5, %vm1969_vm4 }
0x1a73   :  { %v1965_v6 = vsub.f32 1.0, %v1964_v3 }
0x1a75   :  { %v1966_v49 = vmul.f32 %v3008_v36, %v1965_v6 }
0x1a77   :  { %v1967_v46 = vadd.f32 %v3008_v36, %v1966_v49 }
0x1a79   :  { %v1971_v47 = vsel %vm1970_vm13, %v3008_v36, %v1967_v46 }
0x1a7a   :  { %v1976_v41 = vsel %vm1973_vm1, %v1975_v23, %v1971_v47 }
0x1a7b   :  { %v1996_v30 = vmul.f32 %v1976_v41, %v4007_v20 }
0x1a90   :  { %v1982_v15 = vpop.permute.xlu0 %1981 }
0x1a91   :  { %v1984_v51 = vmul.f32 %v1982_v15, %v1956_v63 }
0x1a93   :  { %1986 = vrot.lane.b32.xlu2 %v1984_v51, %s3083_s5 }
0x1acf   :  { %v1999_v48 = vpop.permute.xlu1 %1998 }
0x1ad0   :  { %v2001_v31 = vmul.f32 %v1999_v48, %v1976_v41 }
0x1ad2   :  { %2003 = vrot.lane.b32.xlu0 %v2001_v31, %s3083_s5 }
0x1aed   :  { %v1987_v55 = vpop.permute.xlu2 %1986 }
0x1aee   :  { %v3999_v56 = vadd.f32 %v1987_v55, %v1979_v8 }
0x1af0   :  { %3009 = vtanh.f32 %v3999_v56 }
0x1af6   :  { %v3010_v61 = vpop.eup %3009 }
0x1af7   :  { %1992 = vrot.lane.b32.xlu1 %v3010_v61, %s3082_s0 }
0x1b44   :  { %v2004_v18 = vpop.permute.xlu0 %2003 }
0x1b45   :  { %v4010_v19 = vadd.f32 %v2004_v18, %v1996_v30 }
0x1b47   :  { %3011 = vtanh.f32 %v4010_v19 }
0x1b4d   :  { %v3012_v59 = vpop.eup %3011 }
0x1b4e   :  { %2009 = vrot.lane.b32.xlu2 %v3012_v59, %s3082_s0 }
0x1b69   :  { %v1993_v16 = vpop.permute.xlu1 %1992 }
0x1b6a   :  { %v1995_v21 = vmul.f32 %v1993_v16, %v1956_v63  ;;  %v4041_v16 = vsel %vm786_vm15, %v3999_v56, %v3996_v50 }
0x1b6c   :  { %v4017_v43 = vsel %vm786_vm15, %v1995_v21, %v3963_v13 }
0x1b6d   :  { %v2019_v28 = vpack.c.bf16 %v4017_v43, %v4017_v43 }
0x1b6f   :  { %2021 = vrot.lane.b32.xlu0 %v2019_v28, %s3083_s5 }
0x1ba8   :  { %v2010_v54 = vpop.permute.xlu2 %2009 }
0x1ba9   :  { %v2012_v11 = vmul.f32 %v2010_v54, %v1976_v41 }
0x1bab   :  { %v4025_v14 = vsel %vm798_vm14, %v2012_v11, %v3971_v57 }
0x1bac   :  { %v2042_v38 = vpack.c.bf16 %v4025_v14, %v4025_v14 }
0x1bae   :  { %2044 = vrot.lane.b32.xlu1 %v2042_v38, %s3083_s5  ;;  %v4052_v38 = vsel %vm798_vm14, %v4010_v19, %v4007_v20 }
0x1be1   :  { %v2022_v29 = vpop.permute.xlu0 %2021 }
0x1be2   :  { %2772 = vmatmul.msk.bf16.vlgmr.msra.gmra.mxu0 %vm105_vm0, %v2022_v29 }
0x1c20   :  { %v2045_v13 = vpop.permute.xlu1 %2044 }
0x1c21   :  { %2773 = vmatmul.msk.bf16.vlgmr.msra.gmra.mxu1 %vm105_vm0, %v2045_v13 }
0x1c5f   :  { %v2035_v1 = vpop.f32.mrf.mxu0 }
0x1c60   :  { %v2039_v33 = vadd.f32 %v2035_v1, %v2018_v4 }
0x1c62   :  { %3013 = vtanh.f32 %v2039_v33  ;;  %v2774_v57 = vmul.f32 -1.442695, %v2039_v33 }
0x1c64   :  { %3015 = vpow2.f32 %v2774_v57 }
0x1c67   :  { %v2037_v35 = vpop.f32.mrf.mxu0 }
0x1c68   :  { %v3014_v37 = vpop.eup %3013 }
0x1c69   :  { %2105 = vrot.lane.b32.xlu2 %v3014_v37, %s3082_s0 }
0x1c6a   :  { %v3016_v34 = vpop.eup %3015 }
0x1c6b   :  { %v2066_v45 = vadd.f32 1.0, %v3016_v34 }
0x1c6d   :  { %v2078_v22 = vand.u32 2147483648, %v2066_v45  ;;  %vm2072_vm3 = vweird.f32 %v2066_v45  ;;  %v2076_v53 = vand.u32 2147483647, %v2066_v45 }
0x1c6f   :  { %v2079_v58 = vor.u32 1.1754944e-38, %v2078_v22  ;;  %vm2077_vm5 = vcmp.eq.f32.partialorder %v2076_v53, 8.507059e+37 }
0x1c9e   :  { %v2058_v60 = vpop.f32.mrf.mxu1 }
0x1c9f   :  { %v2062_v0 = vadd.f32 %v2058_v60, %v2041_v24  ;;  %v2142_v24 = vunpack.c.h.bf16 %v3986_v9 }
0x1ca1   :  { %3017 = vtanh.f32 %v2062_v0  ;;  %v2775_v49 = vmul.f32 -1.442695, %v2062_v0 }
0x1ca2   :  { %3019 = vrcp.f32 %v2066_v45 }
0x1ca3   :  { %3021 = vpow2.f32 %v2775_v49 }
0x1ca6   :  { %v2060_v26 = vpop.f32.mrf.mxu1 }
0x1ca7   :  { %v3018_v44 = vpop.eup %3017  ;;  %v2164_v26 = vld [vmem:[#allocation2 + $0x14] sm:$0xf] }
0x1ca8   :  { %2122 = vrot.lane.b32.xlu0 %v3018_v44, %s3082_s0  ;;  %v3020_v40 = vpop.eup %3019  ;;  %v2165_v44 = vunpack.c.l.bf16 %v2164_v26 }
0x1ca9   :  { %v2068_v12 = vmul.f32 %v3020_v40, %v2066_v45  ;;  %vm2073_vm2 = vweird.f32 %v3020_v40  ;;  %v3022_v46 = vpop.eup %3021 }
0x1caa   :  { %vm2074_vm4 = vmor %vm2072_vm3, %vm2073_vm2  ;;  %v2086_v62 = vadd.f32 1.0, %v3022_v46 }
0x1cab   :  { %v2069_v15 = vsub.f32 1.0, %v2068_v12 }
0x1cac   :  { %3023 = vrcp.f32 %v2086_v62  ;;  %v2098_v31 = vand.u32 2147483648, %v2086_v62  ;;  %vm2092_vm1 = vweird.f32 %v2086_v62  ;;  %v2096_v8 = vand.u32 2147483647, %v2086_v62 }
0x1cad   :  { %v2070_v63 = vmul.f32 %v3020_v40, %v2069_v15 }
0x1cae   :  { %v2099_v61 = vor.u32 1.1754944e-38, %v2098_v31  ;;  %vm2097_vm3 = vcmp.eq.f32.partialorder %v2096_v8, 8.507059e+37 }
0x1caf   :  { %v2071_v51 = vadd.f32 %v3020_v40, %v2070_v63 }
0x1cb1   :  { %v2075_v25 = vsel %vm2074_vm4, %v3020_v40, %v2071_v51 }
0x1cb2   :  { %v2080_v3 = vsel %vm2077_vm5, %v2079_v58, %v2075_v25  ;;  %v3024_v2 = vpop.eup %3023 }
0x1cb3   :  { %v2088_v47 = vmul.f32 %v3024_v2, %v2086_v62  ;;  %vm2093_vm13 = vweird.f32 %v3024_v2  ;;  %v2103_v21 = vmul.f32 %v2080_v3, %v4041_v16 }
0x1cb4   :  { %vm2094_vm2 = vmor %vm2092_vm1, %vm2093_vm13 }
0x1cb5   :  { %v2089_v23 = vsub.f32 1.0, %v2088_v47 }
0x1cb7   :  { %v2090_v41 = vmul.f32 %v3024_v2, %v2089_v23 }
0x1cb9   :  { %v2091_v48 = vadd.f32 %v3024_v2, %v2090_v41 }
0x1cbb   :  { %v2095_v55 = vsel %vm2094_vm2, %v3024_v2, %v2091_v48 }
0x1cbc   :  { %v2100_v18 = vsel %vm2097_vm3, %v2099_v61, %v2095_v55 }
0x1cbd   :  { %v2120_v29 = vmul.f32 %v2100_v18, %v4052_v38 }
0x1cc3   :  { %v2106_v36 = vpop.permute.xlu2 %2105 }
0x1cc4   :  { %v2108_v6 = vmul.f32 %v2106_v36, %v2080_v3 }
0x1cc6   :  { %2110 = vrot.lane.b32.xlu1 %v2108_v6, %s3083_s5 }
0x1d1a   :  { %v2123_v30 = vpop.permute.xlu0 %2122 }
0x1d1b   :  { %v2125_v59 = vmul.f32 %v2123_v30, %v2100_v18 }
0x1d1d   :  { %2127 = vrot.lane.b32.xlu2 %v2125_v59, %s3083_s5 }
0x1d38   :  { %v2111_v28 = vpop.permute.xlu1 %2110 }
0x1d39   :  { %v4044_v54 = vadd.f32 %v2111_v28, %v2103_v21 }
0x1d3b   :  { %3025 = vtanh.f32 %v4044_v54 }
0x1d41   :  { %v3026_v11 = vpop.eup %3025 }
0x1d42   :  { %2116 = vrot.lane.b32.xlu0 %v3026_v11, %s3082_s0 }
0x1d77   :  { %v2128_v50 = vpop.permute.xlu2 %2127 }
0x1d78   :  { %v4055_v56 = vadd.f32 %v2128_v50, %v2120_v29 }
0x1d7a   :  { %3027 = vtanh.f32 %v4055_v56 }
0x1d80   :  { %v3028_v13 = vpop.eup %3027 }
0x1d81   :  { %2133 = vrot.lane.b32.xlu1 %v3028_v13, %s3082_s0  ;;  %v4086_v13 = vsel %vm798_vm14, %v4044_v54, %v4041_v16 }
0x1db4   :  { %v2117_v32 = vpop.permute.xlu0 %2116 }
0x1db5   :  { %v2119_v4 = vmul.f32 %v2117_v32, %v2080_v3 }
0x1db7   :  { %v4062_v1 = vsel %vm798_vm14, %v2119_v4, %v4017_v43 }
0x1db8   :  { %v2143_v20 = vpack.c.bf16 %v4062_v1, %v4062_v1 }
0x1dba   :  { %2145 = vrot.lane.b32.xlu2 %v2143_v20, %s3083_s5 }
0x1df3   :  { %v2134_v19 = vpop.permute.xlu1 %2133 }
0x1df4   :  { %v2136_v33 = vmul.f32 %v2134_v19, %v2100_v18 }
0x1df6   :  { %v4070_v35 = vsel %vm786_vm15, %v2136_v33, %v4025_v14  ;;  %v4097_v33 = vsel %vm786_vm15, %v4055_v56, %v4052_v38 }
0x1df7   :  { %v2166_v37 = vpack.c.bf16 %v4070_v35, %v4070_v35 }
0x1df9   :  { %2168 = vrot.lane.b32.xlu0 %v2166_v37, %s3083_s5 }
0x1e14   :  { %v2146_v57 = vpop.permute.xlu2 %2145 }
0x1e15   :  { %2776 = vmatmul.msk.bf16.vlgmr.msra.gmra.mxu2 %vm105_vm0, %v2146_v57 }
0x1e6b   :  { %v2169_v43 = vpop.permute.xlu0 %2168 }
0x1e6c   :  { %2777 = vmatmul.msk.bf16.vlgmr.msra.gmra.mxu3 %vm105_vm0, %v2169_v43 }
0x1e98   :  { %v2159_v60 = vpop.f32.mrf.mxu2 }
0x1e99   :  { %v2163_v0 = vadd.f32 %v2159_v60, %v2142_v24 }
0x1e9b   :  { %3029 = vtanh.f32 %v2163_v0  ;;  %v2778_v14 = vmul.f32 -1.442695, %v2163_v0 }
0x1e9d   :  { %3031 = vpow2.f32 %v2778_v14 }
0x1ea0   :  { %v2161_v34 = vpop.f32.mrf.mxu2 }
0x1ea1   :  { %v3030_v45 = vpop.eup %3029 }
0x1ea2   :  { %2229 = vrot.lane.b32.xlu1 %v3030_v45, %s3082_s0  ;;  %v2265_v45 = vld [vmem:[#allocation2 + $0x30] sm:$0xf] }
0x1ea3   :  { %v3032_v15 = vpop.eup %3031  ;;  %v2266_v14 = vunpack.c.l.bf16 %v2265_v45 }
0x1ea4   :  { %v2190_v63 = vadd.f32 1.0, %v3032_v15 }
0x1ea6   :  { %v2202_v3 = vand.u32 2147483648, %v2190_v63  ;;  %vm2196_vm5 = vweird.f32 %v2190_v63  ;;  %v2200_v6 = vand.u32 2147483647, %v2190_v63 }
0x1ea8   :  { %v2203_v46 = vor.u32 1.1754944e-38, %v2202_v3  ;;  %vm2201_vm1 = vcmp.eq.f32.partialorder %v2200_v6, 8.507059e+37 }
0x1eef   :  { %v2182_v40 = vpop.f32.mrf.mxu3 }
0x1ef0   :  { %v2186_v12 = vadd.f32 %v2182_v40, %v2165_v44 }
0x1ef2   :  { %3033 = vtanh.f32 %v2186_v12  ;;  %v2779_v23 = vmul.f32 -1.442695, %v2186_v12 }
0x1ef3   :  { %3035 = vrcp.f32 %v2190_v63 }
0x1ef4   :  { %3037 = vpow2.f32 %v2779_v23 }
0x1ef7   :  { %v2184_v51 = vpop.f32.mrf.mxu3 }
0x1ef8   :  { %v3034_v22 = vpop.eup %3033 }
0x1ef9   :  { %2246 = vrot.lane.b32.xlu2 %v3034_v22, %s3082_s0  ;;  %v3036_v9 = vpop.eup %3035 }
0x1efa   :  { %v2192_v53 = vmul.f32 %v3036_v9, %v2190_v63  ;;  %vm2197_vm4 = vweird.f32 %v3036_v9  ;;  %v3038_v41 = vpop.eup %3037 }
0x1efb   :  { %vm2198_vm13 = vmor %vm2196_vm5, %vm2197_vm4  ;;  %v2210_v48 = vadd.f32 1.0, %v3038_v41 }
0x1efc   :  { %v2193_v25 = vsub.f32 1.0, %v2192_v53 }
0x1efd   :  { %3039 = vrcp.f32 %v2210_v48  ;;  %v2222_v18 = vand.u32 2147483648, %v2210_v48  ;;  %vm2216_vm3 = vweird.f32 %v2210_v48  ;;  %v2220_v59 = vand.u32 2147483647, %v2210_v48 }
0x1efe   :  { %v2194_v58 = vmul.f32 %v3036_v9, %v2193_v25 }
0x1eff   :  { %v2223_v28 = vor.u32 1.1754944e-38, %v2222_v18  ;;  %vm2221_vm5 = vcmp.eq.f32.partialorder %v2220_v59, 8.507059e+37 }
0x1f00   :  { %v2195_v36 = vadd.f32 %v3036_v9, %v2194_v58 }
0x1f02   :  { %v2199_v49 = vsel %vm2198_vm13, %v3036_v9, %v2195_v36 }
0x1f03   :  { %v2204_v62 = vsel %vm2201_vm1, %v2203_v46, %v2199_v49  ;;  %v3040_v31 = vpop.eup %3039 }
0x1f04   :  { %v2212_v8 = vmul.f32 %v3040_v31, %v2210_v48  ;;  %vm2217_vm2 = vweird.f32 %v3040_v31  ;;  %v2227_v32 = vmul.f32 %v2204_v62, %v4086_v13 }
0x1f05   :  { %vm2218_vm4 = vmor %vm2216_vm3, %vm2217_vm2 }
0x1f06   :  { %v2213_v55 = vsub.f32 1.0, %v2212_v8 }
0x1f08   :  { %v2214_v61 = vmul.f32 %v3040_v31, %v2213_v55 }
0x1f0a   :  { %v2215_v30 = vadd.f32 %v3040_v31, %v2214_v61 }
0x1f0c   :  { %v2219_v21 = vsel %vm2218_vm4, %v3040_v31, %v2215_v30 }
0x1f0d   :  { %v2224_v29 = vsel %vm2221_vm5, %v2223_v28, %v2219_v21 }
0x1f0e   :  { %v2244_v52 = vmul.f32 %v2224_v29, %v4097_v33 }
0x1f14   :  { %v2230_v2 = vpop.permute.xlu1 %2229 }
0x1f15   :  { %v2232_v47 = vmul.f32 %v2230_v2, %v2204_v62 }
0x1f17   :  { %2234 = vrot.lane.b32.xlu0 %v2232_v47, %s3083_s5 }
0x1f53   :  { %v2247_v11 = vpop.permute.xlu2 %2246 }
0x1f54   :  { %v2249_v50 = vmul.f32 %v2247_v11, %v2224_v29 }
0x1f56   :  { %2251 = vrot.lane.b32.xlu1 %v2249_v50, %s3083_s5 }
0x1f89   :  { %v2235_v4 = vpop.permute.xlu0 %2234 }
0x1f8a   :  { %v4089_v20 = vadd.f32 %v2235_v4, %v2227_v32 }
0x1f8c   :  { %3041 = vtanh.f32 %v4089_v20 }
0x1f92   :  { %v3042_v19 = vpop.eup %3041 }
0x1f93   :  { %2240 = vrot.lane.b32.xlu2 %v3042_v19, %s3082_s0 }
0x1fc8   :  { %v2252_v16 = vpop.permute.xlu1 %2251 }
0x1fc9   :  { %v4100_v54 = vadd.f32 %v2252_v16, %v2244_v52  ;;  %v4130_v16 = vsel %vm646_vm8, %v4089_v20, %v4086_v13 }
0x1fcb   :  { %3043 = vtanh.f32 %v4100_v54 }
0x1fd1   :  { %v3044_v37 = vpop.eup %3043 }
0x1fd2   :  { %2257 = vrot.lane.b32.xlu0 %v3044_v37, %s3082_s0 }
0x1fed   :  { %v2241_v57 = vpop.permute.xlu2 %2240 }
0x1fee   :  { %v2243_v43 = vmul.f32 %v2241_v57, %v2204_v62 }
0x1ff0   :  { %v4107_v24 = vsel %vm646_vm8, %v2243_v43, %v4062_v1 }
0x1ff1   :  { %v2267_v7 = vpack.c.bf16 %v4107_v24, %v4107_v24 }
0x1ff3   :  { %2269 = vrot.lane.b32.xlu1 %v2267_v7, %s3083_s5 }
0x2044   :  { %v2258_v38 = vpop.permute.xlu0 %2257 }
0x2045   :  { %v2260_v56 = vmul.f32 %v2258_v38, %v2224_v29  ;;  %v4141_v38 = vsel %vm634_vm10, %v4100_v54, %v4097_v33 }
0x2047   :  { %v4115_v60 = vsel %vm634_vm10, %v2260_v56, %v4070_v35  ;;  %v2288_v35 = vld [vmem:[#allocation2 + $0xc] sm:$0xf] }
0x2048   :  { %v2290_v0 = vpack.c.bf16 %v4115_v60, %v4115_v60  ;;  %v2289_v15 = vunpack.c.l.bf16 %v2288_v35 }
0x204a   :  { %2292 = vrot.lane.b32.xlu2 %v2290_v0, %s3083_s5 }
0x2065   :  { %v2270_v34 = vpop.permute.xlu1 %2269 }
0x2066   :  { %2780 = vmatmul.msk.bf16.vlgmr.msrb.gmra.mxu0 %vm105_vm0, %v2270_v34 }
0x20a4   :  { %v2293_v1 = vpop.permute.xlu2 %2292 }
0x20a5   :  { %2781 = vmatmul.msk.bf16.vlgmr.msrb.gmra.mxu1 %vm105_vm0, %v2293_v1 }
0x20e3   :  { %v2283_v26 = vpop.f32.mrf.mxu0 }
0x20e4   :  { %v2287_v44 = vadd.f32 %v2283_v26, %v2266_v14 }
0x20e6   :  { %3045 = vtanh.f32 %v2287_v44  ;;  %v2782_v53 = vmul.f32 -1.442695, %v2287_v44  ;;  %v2389_v44 = vld [vmem:[#allocation2 + $0x38] sm:$0xf] }
0x20eb   :  { %v2285_v40 = vpop.f32.mrf.mxu0 }
0x20ec   :  { %v3046_v12 = vpop.eup %3045  ;;  %v2390_v40 = vunpack.c.l.bf16 %v2389_v44 }
0x20ed   :  { %2353 = vrot.lane.b32.xlu0 %v3046_v12, %s3082_s0 }
0x2122   :  { %v2306_v63 = vpop.f32.mrf.mxu1 }
0x2123   :  { %v2310_v51 = vadd.f32 %v2306_v63, %v2289_v15 }
0x2125   :  { %3047 = vtanh.f32 %v2310_v51  ;;  %v2783_v8 = vmul.f32 -1.442695, %v2310_v51  ;;  %v2412_v51 = vld [vmem:[#allocation2 + $0x4] sm:$0xf] }
0x2126   :  { %3049 = vpow2.f32 %v2782_v53 }
0x212a   :  { %v2308_v22 = vpop.f32.mrf.mxu1 }
0x212b   :  { %v3048_v9 = vpop.eup %3047  ;;  %v2413_v22 = vunpack.c.l.bf16 %v2412_v51 }
0x212c   :  { %2370 = vrot.lane.b32.xlu1 %v3048_v9, %s3082_s0  ;;  %v3050_v25 = vpop.eup %3049 }
0x212d   :  { %v2314_v58 = vadd.f32 1.0, %v3050_v25 }
0x212f   :  { %3051 = vrcp.f32 %v2314_v58  ;;  %v2326_v62 = vand.u32 2147483648, %v2314_v58  ;;  %vm2320_vm15 = vweird.f32 %v2314_v58  ;;  %v2324_v2 = vand.u32 2147483647, %v2314_v58 }
0x2130   :  { %3053 = vpow2.f32 %v2783_v8 }
0x2131   :  { %v2327_v23 = vor.u32 1.1754944e-38, %v2326_v62  ;;  %vm2325_vm1 = vcmp.eq.f32.partialorder %v2324_v2, 8.507059e+37 }
0x2135   :  { %v3052_v36 = vpop.eup %3051 }
0x2136   :  { %v2316_v3 = vmul.f32 %v3052_v36, %v2314_v58  ;;  %vm2321_vm14 = vweird.f32 %v3052_v36  ;;  %v3054_v55 = vpop.eup %3053 }
0x2137   :  { %vm2322_vm13 = vmor %vm2320_vm15, %vm2321_vm14  ;;  %v2334_v61 = vadd.f32 1.0, %v3054_v55 }
0x2138   :  { %v2317_v6 = vsub.f32 1.0, %v2316_v3 }
0x2139   :  { %3055 = vrcp.f32 %v2334_v61  ;;  %v2346_v11 = vand.u32 2147483648, %v2334_v61  ;;  %vm2340_vm3 = vweird.f32 %v2334_v61  ;;  %v2344_v29 = vand.u32 2147483647, %v2334_v61 }
0x213a   :  { %v2318_v49 = vmul.f32 %v3052_v36, %v2317_v6 }
0x213b   :  { %v2347_v32 = vor.u32 1.1754944e-38, %v2346_v11  ;;  %vm2345_vm5 = vcmp.eq.f32.partialorder %v2344_v29, 8.507059e+37 }
0x213c   :  { %v2319_v46 = vadd.f32 %v3052_v36, %v2318_v49 }
0x213e   :  { %v2323_v47 = vsel %vm2322_vm13, %v3052_v36, %v2319_v46 }
0x213f   :  { %v2328_v48 = vsel %vm2325_vm1, %v2327_v23, %v2323_v47  ;;  %v3056_v30 = vpop.eup %3055 }
0x2140   :  { %v2336_v18 = vmul.f32 %v3056_v30, %v2334_v61  ;;  %vm2341_vm2 = vweird.f32 %v3056_v30  ;;  %v2351_v37 = vmul.f32 %v2328_v48, %v4130_v16 }
0x2141   :  { %vm2342_vm4 = vmor %vm2340_vm3, %vm2341_vm2 }
0x2142   :  { %v2337_v59 = vsub.f32 1.0, %v2336_v18 }
0x2144   :  { %v2338_v21 = vmul.f32 %v3056_v30, %v2337_v59 }
0x2146   :  { %v2339_v28 = vadd.f32 %v3056_v30, %v2338_v21 }
0x2148   :  { %v2343_v50 = vsel %vm2342_vm4, %v3056_v30, %v2339_v28 }
0x2149   :  { %v2348_v4 = vsel %vm2345_vm5, %v2347_v32, %v2343_v50 }
0x214a   :  { %v2368_v39 = vmul.f32 %v2348_v4, %v4141_v38 }
0x215f   :  { %v2354_v41 = vpop.permute.xlu0 %2353 }
0x2160   :  { %v2356_v31 = vmul.f32 %v2354_v41, %v2328_v48 }
0x2162   :  { %2358 = vrot.lane.b32.xlu2 %v2356_v31, %s3083_s5 }
0x219e   :  { %v2371_v19 = vpop.permute.xlu1 %2370 }
0x219f   :  { %v2373_v52 = vmul.f32 %v2371_v19, %v2348_v4 }
0x21a1   :  { %2375 = vrot.lane.b32.xlu0 %v2373_v52, %s3083_s5 }
0x21bc   :  { %v2359_v57 = vpop.permute.xlu2 %2358 }
0x21bd   :  { %v4133_v43 = vadd.f32 %v2359_v57, %v2351_v37 }
0x21bf   :  { %3057 = vtanh.f32 %v4133_v43 }
0x21c5   :  { %v3058_v7 = vpop.eup %3057 }
0x21c6   :  { %2364 = vrot.lane.b32.xlu1 %v3058_v7, %s3082_s0  ;;  %v2386_v7 = vsel %vm494_vm7, %v4133_v43, %v4130_v16 }
0x2213   :  { %v2376_v13 = vpop.permute.xlu0 %2375 }
0x2214   :  { %v4144_v20 = vadd.f32 %v2376_v13, %v2368_v39 }
0x2216   :  { %3059 = vtanh.f32 %v4144_v20 }
0x221c   :  { %v3060_v56 = vpop.eup %3059 }
0x221d   :  { %2381 = vrot.lane.b32.xlu2 %v3060_v56, %s3082_s0 }
0x2238   :  { %v2365_v0 = vpop.permute.xlu1 %2364 }
0x2239   :  { %v2367_v34 = vmul.f32 %v2365_v0, %v2328_v48 }
0x223b   :  { %v4151_v1 = vsel %vm494_vm7, %v2367_v34, %v4107_v24  ;;  %v2388_v34 = vsel %vm482_vm9, %v4144_v20, %v4141_v38 }
0x223c   :  { %v2391_v42 = vpack.c.bf16 %v4151_v1, %v4151_v1 }
0x223e   :  { %2393 = vrot.lane.b32.xlu0 %v2391_v42, %s3083_s5 }
0x2277   :  { %v2382_v33 = vpop.permute.xlu2 %2381 }
0x2278   :  { %v2384_v54 = vmul.f32 %v2382_v33, %v2348_v4 }
0x227a   :  { %v4159_v45 = vsel %vm482_vm9, %v2384_v54, %v4115_v60 }
0x227b   :  { %v2414_v14 = vpack.c.bf16 %v4159_v45, %v4159_v45 }
0x227d   :  { %2416 = vrot.lane.b32.xlu1 %v2414_v14, %s3083_s5 }
0x22b0   :  { %v2394_v26 = vpop.permute.xlu0 %2393 }
0x22b1   :  { %2784 = vmatmul.msk.bf16.vlgmr.msrb.gmra.mxu2 %vm105_vm0, %v2394_v26 }
0x22ef   :  { %v2417_v24 = vpop.permute.xlu1 %2416 }
0x22f0   :  { %2785 = vmatmul.msk.bf16.vlgmr.msrb.gmra.mxu3 %vm105_vm0, %v2417_v24 }
0x2334   :  { %v2407_v12 = vpop.f32.mrf.mxu2 }
0x2335   :  { %v2411_v35 = vadd.f32 %v2407_v12, %v2390_v40  ;;  %v3084_v12 = vmov 64.0  }
0x2337   :  { %3061 = vtanh.f32 %v2411_v35  ;;  %v2786_v60 = vmul.f32 -1.442695, %v2411_v35 }
0x2339   :  { %3063 = vpow2.f32 %v2786_v60 }
0x233c   :  { %v2409_v15 = vpop.f32.mrf.mxu2 }
0x233d   :  { %v3062_v63 = vpop.eup %3061 }
0x233e   :  { %2477 = vrot.lane.b32.xlu2 %v3062_v63, %s3082_s0 }
0x233f   :  { %v3064_v25 = vpop.eup %3063 }
0x2340   :  { %v2438_v58 = vadd.f32 1.0, %v3064_v25  ;;  %v2565_v25 = vld [vmem:[%s4257_s12 + $0x30] sm:$0xff] }
0x2342   :  { %v2450_v47 = vand.u32 2147483648, %v2438_v58  ;;  %vm2444_vm10 = vweird.f32 %v2438_v58  ;;  %v2448_v23 = vand.u32 2147483647, %v2438_v58 }
0x2344   :  { %v2451_v48 = vor.u32 1.1754944e-38, %v2450_v47  ;;  %vm2449_vm15 = vcmp.eq.f32.partialorder %v2448_v23, 8.507059e+37  ;;  %v2596_v47 = vld [vmem:[%s4258_s14 + $0x8] sm:$0xff] }
0x2373   :  { %v2430_v9 = vpop.f32.mrf.mxu3 }
0x2374   :  { %v2434_v53 = vadd.f32 %v2430_v9, %v2413_v22 }
0x2376   :  { %3065 = vtanh.f32 %v2434_v53  ;;  %v2787_v61 = vmul.f32 -1.442695, %v2434_v53  ;;  %v2566_v53 = vld [vmem:[%s4257_s12 + $0x38] sm:$0xff] }
0x2377   :  { %3067 = vrcp.f32 %v2438_v58  ;;  %2582 = vmatpush.msra.mxu0 %v2566_v53 }
0x2378   :  { %3069 = vpow2.f32 %v2787_v61 }
0x2379   :  { %2583 = vmatpush.msra.mxu0 %v2565_v25 }
0x237b   :  { %v2432_v36 = vpop.f32.mrf.mxu3 }
0x237c   :  { %v3066_v3 = vpop.eup %3065  ;;  %v2563_v36 = vld [vmem:[%s4257_s12 + $0x20] sm:$0xff] }
0x237d   :  { %2494 = vrot.lane.b32.xlu0 %v3066_v3, %s3082_s0  ;;  %v3068_v6 = vpop.eup %3067  ;;  %v2562_v3 = vld [vmem:[%s4257_s12 + $0x18] sm:$0xff] }
0x237e   :  { %v2440_v49 = vmul.f32 %v3068_v6, %v2438_v58  ;;  %vm2445_vm8 = vweird.f32 %v3068_v6  ;;  %v3070_v30 = vpop.eup %3069  ;;  %v2564_v58 = vld [vmem:[%s4257_s12 + $0x28] sm:$0xff] }
0x237f   :  { %vm2446_vm14 = vmor %vm2444_vm10, %vm2445_vm8  ;;  %v2458_v18 = vadd.f32 1.0, %v3070_v30  ;;  %2584 = vmatpush.msra.mxu0 %v2564_v58 }
0x2380   :  { %v2441_v46 = vsub.f32 1.0, %v2440_v49  ;;  %v2560_v49 = vld [vmem:[%s4257_s12 + $0x8] sm:$0xff] }
0x2381   :  { %3071 = vrcp.f32 %v2458_v18  ;;  %v2470_v50 = vand.u32 2147483648, %v2458_v18  ;;  %vm2464_vm1 = vweird.f32 %v2458_v18  ;;  %v2468_v32 = vand.u32 2147483647, %v2458_v18  ;;  %2585 = vmatpush.msra.mxu0 %v2563_v36 }
0x2382   :  { %v2442_v62 = vmul.f32 %v3068_v6, %v2441_v46  ;;  %v2559_v46 = vld [vmem:[%s4257_s12] sm:$0xff] }
0x2383   :  { %v2471_v19 = vor.u32 1.1754944e-38, %v2470_v50  ;;  %vm2469_vm3 = vcmp.eq.f32.partialorder %v2468_v32, 8.507059e+37  ;;  %2586 = vmatpush.msra.mxu0 %v2562_v3  ;;  %v2595_v32 = vld [vmem:[%s4258_s14] sm:$0xff] }
0x2384   :  { %v2443_v2 = vadd.f32 %v3068_v6, %v2442_v62  ;;  %v2598_v62 = vld [vmem:[%s4258_s14 + $0x18] sm:$0xff] }
0x2385   :  { %2618 = vmatpush.msra.mxu1 %v2598_v62 }
0x2386   :  { %v2447_v41 = vsel %vm2446_vm14, %v3068_v6, %v2443_v2  ;;  %v2561_v6 = vld [vmem:[%s4257_s12 + $0x10] sm:$0xff] }
0x2387   :  { %v2452_v8 = vsel %vm2449_vm15, %v2451_v48, %v2447_v41  ;;  %v3072_v59 = vpop.eup %3071  ;;  %2587 = vmatpush.msra.mxu0 %v2561_v6  ;;  %v2597_v2 = vld [vmem:[%s4258_s14 + $0x10] sm:$0xff] }
0x2388   :  { %v2460_v21 = vmul.f32 %v3072_v59, %v2458_v18  ;;  %vm2465_vm13 = vweird.f32 %v3072_v59  ;;  %v2475_v39 = vmul.f32 %v2452_v8, %v2386_v7  ;;  %2619 = vmatpush.msra.mxu1 %v2597_v2 }
0x2389   :  { %vm2466_vm2 = vmor %vm2464_vm1, %vm2465_vm13  ;;  %2588 = vmatpush.msra.mxu0 %v2560_v49 }
0x238a   :  { %v2461_v28 = vsub.f32 1.0, %v2460_v21  ;;  %2620 = vmatpush.msra.mxu1 %v2596_v47 }
0x238b   :  { %2589 = vmatpush.msra.mxu0 %v2559_v46 }
0x238c   :  { %v2462_v11 = vmul.f32 %v3072_v59, %v2461_v28  ;;  %v2818_v28 = vld [vmem:[%s4255_s11] ss:$0 sm:$0xff]  ;;  %2621 = vmatpush.msra.mxu1 %v2595_v32 }
0x238e   :  { %v2463_v29 = vadd.f32 %v3072_v59, %v2462_v11 }
0x2390   :  { %v2467_v4 = vsel %vm2466_vm2, %v3072_v59, %v2463_v29  ;;  %v2817_v59 = vld [vmem:[%s4254_s10] ss:$0 sm:$0xff] }
0x2391   :  { %v2472_v37 = vsel %vm2469_vm3, %v2471_v19, %v2467_v4  ;;  %v2819_v4 = vld [vmem:[%s4256_s13] ss:$0 sm:$0xff] }
0x2392   :  { %v2492_v42 = vmul.f32 %v2472_v37, %v2388_v34 }
0x2398   :  { %v2478_v31 = vpop.permute.xlu2 %2477 }
0x2399   :  { %v2480_v55 = vmul.f32 %v2478_v31, %v2452_v8 }
0x239b   :  { %2482 = vrot.lane.b32.xlu1 %v2480_v55, %s3083_s5 }
0x23ef   :  { %v2495_v52 = vpop.permute.xlu0 %2494 }
0x23f0   :  { %v2497_v57 = vmul.f32 %v2495_v52, %v2472_v37 }
0x23f2   :  { %2499 = vrot.lane.b32.xlu2 %v2497_v57, %s3083_s5  ;;  %v2820_v57 = vld [vmem:[%s4259_s15] ss:$0 sm:$0xff] }
0x240d   :  { %v2483_v13 = vpop.permute.xlu1 %2482 }
0x240e   :  { %v2485_v56 = vadd.f32 %v2483_v13, %v2475_v39 }
0x2410   :  { %3073 = vtanh.f32 %v2485_v56 }
0x2416   :  { %v3074_v0 = vpop.eup %3073 }
0x2417   :  { %2488 = vrot.lane.b32.xlu0 %v3074_v0, %s3082_s0 }
0x244c   :  { %v2500_v33 = vpop.permute.xlu2 %2499 }
0x244d   :  { %v2502_v54 = vadd.f32 %v2500_v33, %v2492_v42 }
0x244f   :  { %3075 = vtanh.f32 %v2502_v54 }
0x2450   :  { %3077 = vrcp.f32 %v3084_v12 }
0x2455   :  { %v3076_v14 = vpop.eup %3075 }
0x2456   :  { %2505 = vrot.lane.b32.xlu1 %v3076_v14, %s3082_s0  ;;  %v3078_v5 = vpop.eup %3077 }
0x2489   :  { %v2489_v17 = vpop.permute.xlu0 %2488 }
0x248a   :  { %v2491_v16 = vmul.f32 %v2489_v17, %v2452_v8 }
0x248c   :  { %v2509_v43 = vsel %vm343_vm11, %v2491_v16, %v4151_v1  ;;  %v2524_v1 = vmul.f32 64.0, %v3078_v5  ;;  %vm2528_vm11 = vweird.f32 %v3078_v5 }
0x248d   :  { %2512 = vrot.lane.b32.xlu2 %v2509_v43, %s3083_s5 }
0x248e   :  { %v2525_v35 = vsub.f32 1.0, %v2524_v1 }
0x2490   :  { %v2526_v15 = vmul.f32 %v3078_v5, %v2525_v35 }
0x2492   :  { %v2527_v63 = vadd.f32 %v3078_v5, %v2526_v15 }
0x2494   :  { %v2529_v60 = vsel %vm2528_vm11, %v3078_v5, %v2527_v63 }
0x24c8   :  { %v2506_v26 = vpop.permute.xlu1 %2505 }
0x24c9   :  { %v2508_v24 = vmul.f32 %v2506_v26, %v2472_v37 }
0x24cb   :  { %v2510_v27 = vsel %vm332_vm12, %v2508_v24, %v4159_v45 }
0x24cc   :  { %2516 = vrot.lane.b32.xlu0 %v2510_v27, %s3082_s0 }
0x24e7   :  { %v2513_v38 = vpop.permute.xlu2 %2512 }
0x253e   :  { %v2517_v20 = vpop.permute.xlu0 %2516 }
0x253f   :  { %v2519_v44 = vsel %vm105_vm0, %v2513_v38, %v2517_v20 }
0x2540   :  { %v2520_v40 = vsel %vm1424_vm6, %v2519_v44, 0.0 }
0x2541   :  { %2521 = vadd.xlane.f32.xlu1 %v2520_v40 }
0x25b4   :  { %v2522_v10 = vpop.xlane.xlu1 %2521 }
0x25b5   :  { %v2530_v45 = vmul.f32 %v2529_v60, %v2522_v10 }
0x25b7   :  { %v2531_v51 = vsub.f32 %v2519_v44, %v2530_v45 }
0x25b9   :  { %v2532_v22 = vmul.f32 %v2531_v51, %v2531_v51 }
0x25bb   :  { %v2533_v9 = vsel %vm1424_vm6, %v2532_v22, 0.0 }
0x25bc   :  { %2534 = vadd.xlane.f32.xlu2 %v2533_v9 }
0x262f   :  { %v2535_v23 = vpop.xlane.xlu2 %2534 }
0x2630   :  { %v2536_v41 = vmul.f32 %v2535_v23, %v2529_v60 }
0x2632   :  { %v2537_v48 = vadd.f32 1e-05, %v2536_v41 }
0x2634   :  { %3079 = vrsqrt.f32 %v2537_v48  ;;  %vm2544_vm7 = vweird.f32 %v2537_v48 }
0x263a   :  { %v3080_v31 = vpop.eup %3079 }
0x263b   :  { %v2539_v8 = vmul.f32 %v3080_v31, %v2537_v48  ;;  %vm2545_vm12 = vweird.f32 %v3080_v31 }
0x263c   :  { %vm2546_vm9 = vmor %vm2544_vm7, %vm2545_vm12 }
0x263d   :  { %v2540_v55 = vmul.f32 %v3080_v31, %v2539_v8 }
0x263f   :  { %v2541_v61 = vmul.f32 0.5, %v2540_v55 }
0x2641   :  { %v2542_v30 = vsub.f32 1.5, %v2541_v61 }
0x2643   :  { %v2543_v18 = vmul.f32 %v3080_v31, %v2542_v30 }
0x2645   :  { %v2547_v21 = vsel %vm2546_vm9, %v3080_v31, %v2543_v18 }
0x2646   :  { %v2548_v11 = vmul.f32 %v2547_v21, %v2531_v51 }
0x2648   :  { %v2553_v29 = vmul.f32 %v2817_v59, %v2548_v11 }
0x264a   :  { %v2558_v50 = vadd.f32 %v2818_v28, %v2553_v29 }
0x264c   :  { %2788 = vmatmul.msk.f32.vlgmr.msra.gmra.mxu0 %vm1424_vm6, %v2558_v50  ;;  %vm2626_vm6 = vcmask 31744  }
0x26c9   :  { %v2591_v19 = vpop.f32.mrf.mxu0 }
0x26ca   :  { %v2592_v52 = vadd.f32 %v2819_v4, %v2591_v19 }
0x26cc   :  { %v2594_v37 = vmax.f32 %v2592_v52, 0.0 }
0x26ce   :  { %2789 = vmatmul.msk.f32.vlgmr.msra.gmra.mxu1 %vm105_vm0, %v2594_v37 }
0x274b   :  { %v2623_v7 = vpop.f32.mrf.mxu1 }
0x274c   :  { %v2624_v39 = vadd.f32 %v2820_v57, %v2623_v7 }
0x274e   :  { %2627 = vst.msk [vmem:[%s4260_s16] sm:$0xff] %vm2626_vm6, %v2624_v39 }

</bundles_post_ra>
